<compile_context>
chip_gen: v7x
topology: tpu7x:2x2x1
jax: 0.10.0
libtpu: 0.0.40
codegen_flags: <defaults>
</compile_context>

<pallas_src>
import math
import functools

import jax
import jax.numpy as jnp
from jax import lax
from jax.experimental import pallas as pl
from jax.experimental.pallas import tpu as pltpu

LN_EPS = 1e-5
NEG_INF = float(jnp.finfo(jnp.float32).min)
VMEM_LIMIT_BYTES = 48 * 1024 * 1024  # scoped-VMEM limit; fits v5e/v6e (128 MiB) and v7x (64 MiB)


def _round_up(x, m):
    return (x + m - 1) // m * m


def _cdiv(a, b):
    return (a + b - 1) // b


def _pick_tile(n, candidates, max_single):
    """Largest candidate that evenly divides n; else n itself when small; else pad."""
    for c in candidates:
        if n >= c and n % c == 0:
            return c
    if n <= max_single:
        return n
    return candidates[0]


# --------------------------------------------------------------------------
# Standalone LayerNorm kernel (embedding LN, layer-0 ln1, final ln_f)
# --------------------------------------------------------------------------
def _layernorm_kernel(x_ref, w_ref, b_ref, o_ref, *, eps):
    x = x_ref[...].astype(jnp.float32)
    mean = jnp.mean(x, axis=-1, keepdims=True)
    msq = jnp.mean(x * x, axis=-1, keepdims=True)        # one-pass variance
    var = msq - mean * mean
    y = (x - mean) * lax.rsqrt(var + eps)
    o_ref[...] = (y * w_ref[...] + b_ref[...]).astype(o_ref.dtype)


def layernorm(x, w, b, eps=LN_EPS, out_dtype=jnp.bfloat16):
    M, H = x.shape
    # Adaptive row tile: keep the (tm, H) f32 working block <= ~4 MiB (v7x / v5e safe).
    tm = max(8, min(1024, (4 * 1024 * 1024) // max(1, 4 * H)))
    tm = max(8, (tm // 8) * 8)
    tm = min(tm, _round_up(M, 8))
    Mp = _round_up(M, tm)
    xp = x if Mp == M else jnp.pad(x, ((0, Mp - M), (0, 0)))
    out = pl.pallas_call(
        functools.partial(_layernorm_kernel, eps=eps),
        out_shape=jax.ShapeDtypeStruct((Mp, H), out_dtype),
        grid=(Mp // tm,),
        in_specs=[
            pl.BlockSpec((tm, H), lambda i: (i, 0)),
            pl.BlockSpec((1, H), lambda i: (0, 0)),
            pl.BlockSpec((1, H), lambda i: (0, 0)),
        ],
        out_specs=pl.BlockSpec((tm, H), lambda i: (i, 0)),
        compiler_params=pltpu.CompilerParams(
            dimension_semantics=("parallel",),
            vmem_limit_bytes=VMEM_LIMIT_BYTES),
    )(xp, w.reshape(1, H).astype(jnp.float32), b.reshape(1, H).astype(jnp.float32))
    return out[:M] if Mp != M else out


# --------------------------------------------------------------------------
# Linear kernel: y = act(x @ w + b) (+ residual) (+ fused epilogue LayerNorm)
# bf16 inputs, f32 accumulation in VMEM scratch resident across the K axis.
# --------------------------------------------------------------------------
def _linear_kernel(*refs, activation, has_residual, has_ln, inv_n, eps):
    x_ref, w_ref, b_ref = refs[0], refs[1], refs[2]
    pos = 3
    r_ref = None
    if has_residual:
        r_ref = refs[pos]
        pos += 1
    g_ref = be_ref = None
    if has_ln:
        g_ref, be_ref = refs[pos], refs[pos + 1]
        pos += 2
    o_ref = refs[pos]
    pos += 1
    ln_ref = refs[pos] if has_ln else None
    acc_ref = refs[-1]

    @pl.when(pl.program_id(2) == 0)
    def _():
        acc_ref[...] = jnp.zeros_like(acc_ref)

    acc_ref[...] += jnp.dot(x_ref[...], w_ref[...],
                            preferred_element_type=jnp.float32)

    @pl.when(pl.program_id(2) == pl.num_programs(2) - 1)
    def _():
        y = acc_ref[...] + b_ref[...]
        if activation == "gelu":
            # BLOOM tanh-approximation GELU (f32)
            y = 0.5 * y * (1.0 + jnp.tanh(0.79788456 * y * (1.0 + 0.044715 * y * y)))
        if has_residual:
            y = y + r_ref[...].astype(jnp.float32)
        o_ref[...] = y.astype(o_ref.dtype)
        if has_ln:
            # padded output columns are exactly zero -> normalize over the true N
            mean = jnp.sum(y, axis=-1, keepdims=True) * inv_n
            msq = jnp.sum(y * y, axis=-1, keepdims=True) * inv_n
            var = msq - mean * mean
            yn = (y - mean) * lax.rsqrt(var + eps)
            ln_ref[...] = (yn * g_ref[...] + be_ref[...]).astype(ln_ref.dtype)


def linear(x, w, b, residual=None, activation=None,
           ln_weight=None, ln_bias=None,
           out_dtype=jnp.bfloat16, ln_dtype=jnp.bfloat16, eps=LN_EPS):
    M, K = x.shape
    Kw, N = w.shape
    assert Kw == K
    has_res = residual is not None
    has_ln = ln_weight is not None

    if has_ln:
        Np = N if N < 128 else _round_up(N, 128)
        if Np > 8192:
            # TODO(synk): very wide hidden sizes - fused-LN output tile would not fit
            # v7x VMEM; fall back to an unfused linear + standalone layernorm.
            y = linear(x, w, b, residual=residual, activation=activation,
                       out_dtype=out_dtype)
            return y, layernorm(y, ln_weight, ln_bias, eps=eps, out_dtype=ln_dtype)
        tn = Np
        tk = _pick_tile(K, (512, 256, 128), 1024)
    else:
        tn = _pick_tile(N, (512, 256, 128), 1024)
        Np = _round_up(N, tn)
        tk = _pick_tile(K, (1024, 512, 256, 128), 1024)
    Kp = _round_up(K, tk)

    # Row tile: big for MXU / grid-overhead amortization, bounded by VMEM budget.
    acc_budget = (4 if has_ln else 8) * 1024 * 1024
    tm = min(512, _round_up(M, 8))
    while tm > 128 and tm * tn * 4 > acc_budget:
        tm //= 2
    # v7x dual-TensorCore occupancy: keep >= 4 parallel (i, j) grid steps if possible.
    while tm > 128 and _cdiv(M, tm) * (Np // tn) < 4:
        tm //= 2
    tm = max(8, (tm // 8) * 8)
    Mp = _round_up(M, tm)

    xp = x if (Mp, Kp) == (M, K) else jnp.pad(x, ((0, Mp - M), (0, Kp - K)))
    wp = w if (Kp, Np) == (K, N) else jnp.pad(w, ((0, Kp - K), (0, Np - N)))
    bp = b if Np == N else jnp.pad(b, (0, Np - N))
    bp = bp.reshape(1, Np).astype(jnp.float32)

    args = [xp, wp, bp]
    in_specs = [
        pl.BlockSpec((tm, tk), lambda i, j, k: (i, k)),
        pl.BlockSpec((tk, tn), lambda i, j, k: (k, j)),
        pl.BlockSpec((1, tn), lambda i, j, k: (0, j)),
    ]
    if has_res:
        rp = residual if (Mp, Np) == (M, N) else jnp.pad(residual,
                                                         ((0, Mp - M), (0, Np - N)))
        args.append(rp)
        in_specs.append(pl.BlockSpec((tm, tn), lambda i, j, k: (i, j)))
    if has_ln:
        gp = ln_weight if Np == N else jnp.pad(ln_weight, (0, Np - N))
        bep = ln_bias if Np == N else jnp.pad(ln_bias, (0, Np - N))
        args += [gp.reshape(1, Np).astype(jnp.float32),
                 bep.reshape(1, Np).astype(jnp.float32)]
        in_specs += [pl.BlockSpec((1, tn), lambda i, j, k: (0, j)),
                     pl.BlockSpec((1, tn), lambda i, j, k: (0, j))]

    out_spec = pl.BlockSpec((tm, tn), lambda i, j, k: (i, j))
    if has_ln:
        out_shape = (jax.ShapeDtypeStruct((Mp, Np), out_dtype),
                     jax.ShapeDtypeStruct((Mp, Np), ln_dtype))
        out_specs = (out_spec, out_spec)
    else:
        out_shape = jax.ShapeDtypeStruct((Mp, Np), out_dtype)
        out_specs = out_spec

    res = pl.pallas_call(
        functools.partial(_linear_kernel, activation=activation,
                          has_residual=has_res, has_ln=has_ln,
                          inv_n=1.0 / N, eps=eps),
        out_shape=out_shape,
        grid=(Mp // tm, Np // tn, Kp // tk),
        in_specs=in_specs,
        out_specs=out_specs,
        scratch_shapes=[pltpu.VMEM((tm, tn), jnp.float32)],
        compiler_params=pltpu.CompilerParams(
            dimension_semantics=("parallel", "parallel", "arbitrary"),
            vmem_limit_bytes=VMEM_LIMIT_BYTES),
    )(*args)

    if has_ln:
        y, ln_out = res
        if (Mp, Np) != (M, N):
            y = y[:M, :N]
            ln_out = ln_out[:M, :N]
        return y, ln_out
    y = res
    if (Mp, Np) != (M, N):
        y = y[:M, :N]
    return y


# --------------------------------------------------------------------------
# Flash attention: head-grouped blocks sliced straight from the fused QKV
# projection, ALiBi + causal/padding mask built in-kernel, online softmax
# over KV tiles, deferred normalization, context written in merged layout.
# --------------------------------------------------------------------------
def _flash_attn_kernel(q_ref, k_ref, v_ref, alibi_ref, pad_ref, o_ref,
                       m_sc, l_sc, acc_sc, *, hb, head_dim, tq, tk):
    qi = pl.program_id(2)
    kt = pl.program_id(3)

    @pl.when(kt == 0)
    def _():
        m_sc[...] = jnp.full(m_sc.shape, -jnp.inf, jnp.float32)
        l_sc[...] = jnp.zeros(l_sc.shape, jnp.float32)
        acc_sc[...] = jnp.zeros(acc_sc.shape, jnp.float32)

    q_start = qi * tq
    kv_start = kt * tk

    # Skip KV tiles that lie entirely in the causal future of this query tile.
    @pl.when(kv_start <= q_start + (tq - 1))
    def _():
        q = q_ref[0]            # (tq, hb*D) bf16 -- 1/sqrt(D) folded into W_q
        k = k_ref[0]            # (tk, hb*D) bf16
        v = v_ref[0]            # (tk, hb*D) bf16
        ab = alibi_ref[0, 0]    # (hb, tk)  f32, per-key ALiBi bias rows
        pad = pad_ref[0]        # (1, tk)   f32, 1.0 = masked (padded) key

        row = q_start + lax.broadcasted_iota(jnp.int32, (tq, tk), 0)
        col = kv_start + lax.broadcasted_iota(jnp.int32, (tq, tk), 1)
        masked = jnp.logical_or(col > row, pad > 0.5)

        for h in range(hb):
            sl = slice(h * head_dim, (h + 1) * head_dim)
            qh, kh, vh = q[:, sl], k[:, sl], v[:, sl]
            s = lax.dot_general(qh, kh, (((1,), (1,)), ((), ())),
                                preferred_element_type=jnp.float32)   # (tq, tk)
            s = s + ab[h:h + 1, :]
            s = jnp.where(masked, NEG_INF, s)

            m_prev = m_sc[h]                                           # (tq, 1)
            m_new = jnp.maximum(m_prev, jnp.max(s, axis=-1, keepdims=True))
            alpha = jnp.exp(m_prev - m_new)
            p = jnp.exp(s - m_new)
            l_sc[h] = alpha * l_sc[h] + jnp.sum(p, axis=-1, keepdims=True)
            acc_sc[h] = alpha * acc_sc[h] + lax.dot_general(
                p.astype(vh.dtype), vh, (((1,), (0,)), ((), ())),
                preferred_element_type=jnp.float32)                    # (tq, D)
            m_sc[h] = m_new

    @pl.when(kt == pl.num_programs(3) - 1)
    def _():
        outs = []
        for h in range(hb):
            inv = pl.reciprocal(l_sc[h], approx=True)   # deferred softmax normalization
            outs.append((acc_sc[h] * inv).astype(o_ref.dtype))
        o_ref[0] = outs[0] if hb == 1 else jnp.concatenate(outs, axis=-1)


def _pick_heads_per_block(n_head, head_dim, max_group_width=512):
    valid = [c for c in range(1, n_head + 1)
             if n_head % c == 0 and (c * head_dim) % 128 == 0]
    if not valid:
        # TODO(synk): configs with n_head*head_dim < 128 need per-head lane padding.
        raise ValueError(f"no lane-aligned head grouping for n_head={n_head}, "
                         f"head_dim={head_dim}")
    narrow = [c for c in valid if c * head_dim <= max_group_width]
    return max(narrow) if narrow else min(valid)


def flash_attention(fused, alibi, pad_mask, n_head, head_dim, hb,
                    out_dtype=jnp.bfloat16, kv_block=256):
    B, S, three_h = fused.shape
    H = n_head * head_dim
    assert three_h == 3 * H
    NHg = n_head // hb
    gw = hb * head_dim                      # head-group width (multiple of 128)

    if S <= 2 * kv_block:
        tq = tk = _round_up(S, 8)
        Sp = tq
    else:
        tq = tk = kv_block
        Sp = _round_up(S, kv_block)

    if Sp != S:
        fused = jnp.pad(fused, ((0, 0), (0, Sp - S), (0, 0)))
        alibi = jnp.pad(alibi, ((0, 0), (0, 0), (0, 0), (0, Sp - S)))
        pad_mask = jnp.pad(pad_mask, ((0, 0), (0, 0), (0, Sp - S)),
                           constant_values=1.0)

    def q_map(b, g, qi, kt):
        return (b, qi, g)

    def k_map(b, g, qi, kt):
        return (b, kt, NHg + g)

    def v_map(b, g, qi, kt):
        return (b, kt, 2 * NHg + g)

    out = pl.pallas_call(
        functools.partial(_flash_attn_kernel, hb=hb, head_dim=head_dim, tq=tq, tk=tk),
        out_shape=jax.ShapeDtypeStruct((B, Sp, H), out_dtype),
        grid=(B, NHg, Sp // tq, Sp // tk),
        in_specs=[
            pl.BlockSpec((1, tq, gw), q_map),
            pl.BlockSpec((1, tk, gw), k_map),
            pl.BlockSpec((1, tk, gw), v_map),
            pl.BlockSpec((1, 1, hb, tk), lambda b, g, qi, kt: (b, g, 0, kt)),
            pl.BlockSpec((1, 1, tk), lambda b, g, qi, kt: (b, 0, kt)),
        ],
        out_specs=pl.BlockSpec((1, tq, gw), q_map),
        scratch_shapes=[
            pltpu.VMEM((hb, tq, 1), jnp.float32),          # running max
            pltpu.VMEM((hb, tq, 1), jnp.float32),          # running sum
            pltpu.VMEM((hb, tq, head_dim), jnp.float32),   # context accumulator
        ],
        compiler_params=pltpu.CompilerParams(
            dimension_semantics=("parallel", "parallel", "parallel", "arbitrary"),
            vmem_limit_bytes=VMEM_LIMIT_BYTES),
    )(fused, fused, fused, alibi, pad_mask)

    if Sp != S:
        out = out[:, :S, :]
    return out


# --------------------------------------------------------------------------
# Plain-JAX glue mirroring the PyTorch module
# --------------------------------------------------------------------------
def alibi_slopes(num_heads):
    closest_power_of_2 = 2 ** math.floor(math.log2(num_heads))
    base = 2 ** (-(2 ** (-(math.log2(closest_power_of_2) - 3))))
    powers = jnp.arange(1, 1 + closest_power_of_2, dtype=jnp.float32)
    slopes = jnp.power(base, powers)
    if closest_power_of_2 != num_heads:
        extra_base = 2 ** (-(2 ** (-(math.log2(2 * closest_power_of_2) - 3))))
        num_remaining = min(closest_power_of_2, num_heads - closest_power_of_2)
        extra_powers = jnp.arange(1, 1 + 2 * num_remaining, 2, dtype=jnp.float32)
        slopes = jnp.concatenate([slopes, jnp.power(extra_base, extra_powers)], axis=0)
    return slopes  # (NH,)


def init_params(key, vocab_size, hidden, n_head, n_layer):
    bf16 = jnp.bfloat16
    inv_norm = 1.0 / math.sqrt(hidden // n_head)

    def norm(k, shape, scale=0.02, dtype=jnp.float32):
        return (scale * jax.random.normal(k, shape, jnp.float32)).astype(dtype)

    keys = jax.random.split(key, 5)
    params = {
        "word_embeddings": norm(keys[0], (vocab_size, hidden)),
        "emb_ln_w": 1.0 + norm(keys[1], (hidden,), 0.01),
        "emb_ln_b": norm(keys[2], (hidden,), 0.01),
        "ln_f_w": 1.0 + norm(keys[3], (hidden,), 0.01),
        "ln_f_b": norm(keys[4], (hidden,), 0.01),
        "blocks": [],
    }
    # Fold the 1/sqrt(D) attention normalization into the Q projection columns.
    qkv_scale = jnp.concatenate([jnp.full((hidden,), inv_norm, jnp.float32),
                                 jnp.ones((2 * hidden,), jnp.float32)])
    block_keys = jax.random.split(jax.random.fold_in(key, 1), n_layer)
    for lk in block_keys:
        ks = jax.random.split(lk, 12)
        # QKV columns laid out head-major: [Q_h0..Q_h{NH-1} | K_h0.. | V_h0..].
        # (Real HF checkpoints would need the same column permutation at load time.)
        qkv_w = norm(ks[2], (hidden, 3 * hidden)) * qkv_scale[None, :]
        qkv_b = norm(ks[3], (3 * hidden,), 0.01) * qkv_scale
        params["blocks"].append({
            "ln1_w": 1.0 + norm(ks[0], (hidden,), 0.01),
            "ln1_b": norm(ks[1], (hidden,), 0.01),
            "qkv_w": qkv_w.astype(bf16),
            "qkv_b": qkv_b,
            "dense_w": norm(ks[4], (hidden, hidden), dtype=bf16),
            "dense_b": norm(ks[5], (hidden,), 0.01),
            "ln2_w": 1.0 + norm(ks[6], (hidden,), 0.01),
            "ln2_b": norm(ks[7], (hidden,), 0.01),
            "h4h_w": norm(ks[8], (hidden, 4 * hidden), dtype=bf16),
            "h4h_b": norm(ks[9], (4 * hidden,), 0.01),
            "fhh_w": norm(ks[10], (4 * hidden, hidden), dtype=bf16),
            "fhh_b": norm(ks[11], (hidden,), 0.01),
        })
    return params


@functools.partial(jax.jit, static_argnums=(2,))
def bloom_forward(params, input_ids, n_head):
    B, S = input_ids.shape
    H = params["word_embeddings"].shape[1]
    D = H // n_head
    hb = _pick_heads_per_block(n_head, D)
    NHg = n_head // hb
    n_layer = len(params["blocks"])

    # Embedding gather + embedding layernorm; residual stream kept in bf16.
    emb = jnp.take(params["word_embeddings"], input_ids, axis=0).reshape(B * S, H)
    hidden = layernorm(emb, params["emb_ln_w"], params["emb_ln_b"])

    # ALiBi bias rows + padding mask (attention_mask defaults to all-ones, no past KV).
    attention_mask = jnp.ones((B, S), jnp.float32)
    slopes = alibi_slopes(n_head)
    arange_tensor = (jnp.cumsum(attention_mask, axis=-1) - 1.0) * attention_mask
    alibi = (slopes.reshape(1, NHg, hb, 1) *
             arange_tensor[:, None, None, :]).astype(jnp.float32)      # (B, NHg, hb, S)
    pad_mask = (1.0 - attention_mask)[:, None, :]                      # (B, 1, S) 1=masked

    # Layer-0 input layernorm; later ln1's are fused into the previous layer's
    # MLP-output epilogue, ln2 into the attention-dense epilogue.
    ln_in = layernorm(hidden, params["blocks"][0]["ln1_w"], params["blocks"][0]["ln1_b"])

    for i, blk in enumerate(params["blocks"]):
        fused = linear(ln_in, blk["qkv_w"], blk["qkv_b"])              # (B*S, 3H) bf16
        ctx = flash_attention(fused.reshape(B, S, 3 * H), alibi, pad_mask,
                              n_head, D, hb)                           # (B, S, H) bf16
        hidden, ln2 = linear(ctx.reshape(B * S, H), blk["dense_w"], blk["dense_b"],
                             residual=hidden,
                             ln_weight=blk["ln2_w"], ln_bias=blk["ln2_b"])
        h4 = linear(ln2, blk["h4h_w"], blk["h4h_b"], activation="gelu")
        if i + 1 < n_layer:
            nxt = params["blocks"][i + 1]
            hidden, ln_in = linear(h4, blk["fhh_w"], blk["fhh_b"], residual=hidden,
                                   ln_weight=nxt["ln1_w"], ln_bias=nxt["ln1_b"])
        else:
            hidden = linear(h4, blk["fhh_w"], blk["fhh_b"], residual=hidden)

    out = layernorm(hidden, params["ln_f_w"], params["ln_f_b"], out_dtype=jnp.float32)
    return out.reshape(B, S, H)


if __name__ == "__main__":
    B, S, H, NH, NL, VOCAB = 2, 8, 256, 4, 2, 100
    key = jax.random.PRNGKey(0)
    kp, ki = jax.random.split(key)
    params = init_params(kp, VOCAB, H, NH, NL)
    input_ids = jax.random.randint(ki, (B, S), 0, VOCAB)

    out = bloom_forward(params, input_ids, NH)
    out = jax.block_until_ready(out)

    assert out.shape == (B, S, H), out.shape
    assert bool(jnp.all(jnp.isfinite(out)))
    print("KERNEL_OK")
</pallas_src>

<mosaic_0001>
module attributes {stable_mosaic.version = 11 : i64} {
  func.func @_layernorm_kernel(%arg0: i32, %arg1: memref<16x256xf32, #tpu.memory_space<vmem>>, %arg2: memref<1x256xf32, #tpu.memory_space<vmem>>, %arg3: memref<1x256xf32, #tpu.memory_space<vmem>>, %arg4: memref<16x256xbf16, #tpu.memory_space<vmem>>) attributes {dimension_semantics = [#tpu.dimension_semantics<parallel>], iteration_bounds = array<i64: 1>, scalar_prefetch = 0 : i64, scratch_operands = 0 : i64, tpu.core_type = #tpu.core_type<tc>, window_params = [{transform_indices = @transform_0, window_bounds = array<i64: 16, 256>}, {pipeline_mode = #tpu.pipeline_mode<synchronous>, transform_indices = @transform_1, window_bounds = array<i64: 1, 256>}, {pipeline_mode = #tpu.pipeline_mode<synchronous>, transform_indices = @transform_2, window_bounds = array<i64: 1, 256>}, {transform_indices = @transform_3, window_bounds = array<i64: 16, 256>}]} {
    %c0 = arith.constant 0 : index
    %c0_0 = arith.constant 0 : index
    %0 = vector.load %arg1[%c0, %c0_0] : memref<16x256xf32, #tpu.memory_space<vmem>>, vector<16x256xf32>
    %cst = arith.constant dense<0.000000e+00> : vector<16xf32>
    %1 = vector.multi_reduction <add>, %0, %cst [1] : vector<16x256xf32> to vector<16xf32>
    %2 = vector.shape_cast %1 : vector<16xf32> to vector<16x1xf32>
    %cst_1 = arith.constant 2.560000e+02 : f32
    %3 = vector.broadcast %cst_1 : f32 to vector<16x1xf32>
    %4 = arith.divf %2, %3 : vector<16x1xf32>
    %5 = arith.mulf %0, %0 : vector<16x256xf32>
    %cst_2 = arith.constant dense<0.000000e+00> : vector<16xf32>
    %6 = vector.multi_reduction <add>, %5, %cst_2 [1] : vector<16x256xf32> to vector<16xf32>
    %7 = vector.shape_cast %6 : vector<16xf32> to vector<16x1xf32>
    %cst_3 = arith.constant 2.560000e+02 : f32
    %8 = vector.broadcast %cst_3 : f32 to vector<16x1xf32>
    %9 = arith.divf %7, %8 : vector<16x1xf32>
    %10 = arith.mulf %4, %4 : vector<16x1xf32>
    %11 = arith.subf %9, %10 : vector<16x1xf32>
    %12 = vector.broadcast %4 : vector<16x1xf32> to vector<16x256xf32>
    %13 = arith.subf %0, %12 : vector<16x256xf32>
    %cst_4 = arith.constant 9.99999974E-6 : f32
    %14 = vector.broadcast %cst_4 : f32 to vector<16x1xf32>
    %15 = arith.addf %11, %14 : vector<16x1xf32>
    %16 = math.rsqrt %15 : vector<16x1xf32>
    %17 = vector.broadcast %16 : vector<16x1xf32> to vector<16x256xf32>
    %18 = arith.mulf %13, %17 : vector<16x256xf32>
    %c0_5 = arith.constant 0 : index
    %c0_6 = arith.constant 0 : index
    %19 = vector.load %arg2[%c0_5, %c0_6] : memref<1x256xf32, #tpu.memory_space<vmem>>, vector<1x256xf32>
    %20 = vector.broadcast %19 : vector<1x256xf32> to vector<16x256xf32>
    %21 = arith.mulf %18, %20 : vector<16x256xf32>
    %c0_7 = arith.constant 0 : index
    %c0_8 = arith.constant 0 : index
    %22 = vector.load %arg3[%c0_7, %c0_8] : memref<1x256xf32, #tpu.memory_space<vmem>>, vector<1x256xf32>
    %23 = vector.broadcast %22 : vector<1x256xf32> to vector<16x256xf32>
    %24 = arith.addf %21, %23 : vector<16x256xf32>
    %25 = arith.truncf %24 : vector<16x256xf32> to vector<16x256xbf16>
    %c0_9 = arith.constant 0 : index
    %c0_10 = arith.constant 0 : index
    %26 = vector.load %arg4[%c0_9, %c0_10] : memref<16x256xbf16, #tpu.memory_space<vmem>>, vector<16x256xbf16>
    tpu.vector_store %arg4[%c0_9, %c0_10], %25 {strides = array<i32>} : memref<16x256xbf16, #tpu.memory_space<vmem>>, vector<16x256xbf16>,
    return
  }
  func.func @transform_0(%arg0: i32) -> (i32, i32) {
    %c0_i32 = arith.constant 0 : i32
    %c0_i32_0 = arith.constant 0 : i32
    return %arg0, %c0_i32 : i32, i32
  }
  func.func @transform_1(%arg0: i32) -> (i32, i32) {
    %c0_i32 = arith.constant 0 : i32
    %c0_i32_0 = arith.constant 0 : i32
    %c0_i32_1 = arith.constant 0 : i32
    return %c0_i32, %c0_i32_0 : i32, i32
  }
  func.func @transform_2(%arg0: i32) -> (i32, i32) {
    %c0_i32 = arith.constant 0 : i32
    %c0_i32_0 = arith.constant 0 : i32
    %c0_i32_1 = arith.constant 0 : i32
    return %c0_i32, %c0_i32_0 : i32, i32
  }
  func.func @transform_3(%arg0: i32) -> (i32, i32) {
    %c0_i32 = arith.constant 0 : i32
    %c0_i32_0 = arith.constant 0 : i32
    return %arg0, %c0_i32 : i32, i32
  }
}

module attributes {stable_mosaic.version = 11 : i64} {
  func.func @_linear_kernel(%arg0: i32, %arg1: i32, %arg2: i32, %arg3: memref<16x256xbf16, #tpu.memory_space<vmem>>, %arg4: memref<256x256xbf16, #tpu.memory_space<vmem>>, %arg5: memref<1x256xf32, #tpu.memory_space<vmem>>, %arg6: memref<16x256xbf16, #tpu.memory_space<vmem>>, %arg7: memref<16x256xf32, #tpu.memory_space<vmem>>) attributes {dimension_semantics = [#tpu.dimension_semantics<parallel>, #tpu.dimension_semantics<parallel>, #tpu.dimension_semantics<arbitrary>], iteration_bounds = array<i64: 1, 3, 1>, scalar_prefetch = 0 : i64, scratch_operands = 1 : i64, tpu.core_type = #tpu.core_type<tc>, window_params = [{transform_indices = @transform_0, window_bounds = array<i64: 16, 256>}, {transform_indices = @transform_1, window_bounds = array<i64: 256, 256>}, {transform_indices = @transform_2, window_bounds = array<i64: 1, 256>}, {transform_indices = @transform_3, window_bounds = array<i64: 16, 256>}]} {
    %c0_i32 = arith.constant 0 : i32
    %0 = arith.cmpi eq, %arg2, %c0_i32 : i32
    %1 = arith.extui %0 : i1 to i32
    %c0_i32_0 = arith.constant 0 : i32
    %2 = arith.cmpi ne, %1, %c0_i32_0 : i32
    scf.if %2 {
      %cst_10 = arith.constant 0.000000e+00 : f32
      %12 = vector.broadcast %cst_10 : f32 to vector<16x256xf32>
      %c0_11 = arith.constant 0 : index
      %c0_12 = arith.constant 0 : index
      %13 = vector.load %arg7[%c0_11, %c0_12] : memref<16x256xf32, #tpu.memory_space<vmem>>, vector<16x256xf32>
      tpu.vector_store %arg7[%c0_11, %c0_12], %12 {strides = array<i32>} : memref<16x256xf32, #tpu.memory_space<vmem>>, vector<16x256xf32>,
    } else {
    }
    %c0 = arith.constant 0 : index
    %c0_1 = arith.constant 0 : index
    %3 = vector.load %arg7[%c0, %c0_1] : memref<16x256xf32, #tpu.memory_space<vmem>>, vector<16x256xf32>
    %c0_2 = arith.constant 0 : index
    %c0_3 = arith.constant 0 : index
    %4 = vector.load %arg3[%c0_2, %c0_3] : memref<16x256xbf16, #tpu.memory_space<vmem>>, vector<16x256xbf16>
    %c0_4 = arith.constant 0 : index
    %c0_5 = arith.constant 0 : index
    %5 = vector.load %arg4[%c0_4, %c0_5] : memref<256x256xbf16, #tpu.memory_space<vmem>>, vector<256x256xbf16>
    %cst = arith.constant dense<0.000000e+00> : vector<16x256xf32>
    %6 = tpu.matmul %4, %5, %cst {dimension_numbers = #tpu.dot_dimension_numbers<[1], [0], [0], [1], [0, 0, 1, 1], [], []>} : vector<16x256xbf16>, vector<256x256xbf16>, vector<16x256xf32> -> vector<16x256xf32>
    %7 = arith.addf %3, %6 : vector<16x256xf32>
    %c0_6 = arith.constant 0 : index
    %c0_7 = arith.constant 0 : index
    %8 = vector.load %arg7[%c0_6, %c0_7] : memref<16x256xf32, #tpu.memory_space<vmem>>, vector<16x256xf32>
    tpu.vector_store %arg7[%c0_6, %c0_7], %7 {strides = array<i32>} : memref<16x256xf32, #tpu.memory_space<vmem>>, vector<16x256xf32>,
    %c0_i32_8 = arith.constant 0 : i32
    %9 = arith.cmpi eq, %arg2, %c0_i32_8 : i32
    %10 = arith.extui %9 : i1 to i32
    %c0_i32_9 = arith.constant 0 : i32
    %11 = arith.cmpi ne, %10, %c0_i32_9 : i32
    scf.if %11 {
      %c0_10 = arith.constant 0 : index
      %c0_11 = arith.constant 0 : index
      %12 = vector.load %arg7[%c0_10, %c0_11] : memref<16x256xf32, #tpu.memory_space<vmem>>, vector<16x256xf32>
      %c0_12 = arith.constant 0 : index
      %c0_13 = arith.constant 0 : index
      %13 = vector.load %arg5[%c0_12, %c0_13] : memref<1x256xf32, #tpu.memory_space<vmem>>, vector<1x256xf32>
      %14 = vector.broadcast %13 : vector<1x256xf32> to vector<16x256xf32>
      %15 = arith.addf %12, %14 : vector<16x256xf32>
      %16 = arith.truncf %15 : vector<16x256xf32> to vector<16x256xbf16>
      %c0_14 = arith.constant 0 : index
      %c0_15 = arith.constant 0 : index
      %17 = vector.load %arg6[%c0_14, %c0_15] : memref<16x256xbf16, #tpu.memory_space<vmem>>, vector<16x256xbf16>
      tpu.vector_store %arg6[%c0_14, %c0_15], %16 {strides = array<i32>} : memref<16x256xbf16, #tpu.memory_space<vmem>>, vector<16x256xbf16>,
    } else {
    }
    return
  }
  func.func @transform_0(%arg0: i32, %arg1: i32, %arg2: i32) -> (i32, i32) {
    %c0_i32 = arith.constant 0 : i32
    return %arg0, %arg2 : i32, i32
  }
  func.func @transform_1(%arg0: i32, %arg1: i32, %arg2: i32) -> (i32, i32) {
    %c0_i32 = arith.constant 0 : i32
    return %arg2, %arg1 : i32, i32
  }
  func.func @transform_2(%arg0: i32, %arg1: i32, %arg2: i32) -> (i32, i32) {
    %c0_i32 = arith.constant 0 : i32
    %c0_i32_0 = arith.constant 0 : i32
    return %c0_i32, %arg1 : i32, i32
  }
  func.func @transform_3(%arg0: i32, %arg1: i32, %arg2: i32) -> (i32, i32) {
    %c0_i32 = arith.constant 0 : i32
    return %arg0, %arg1 : i32, i32
  }
}

module attributes {stable_mosaic.version = 11 : i64} {
  func.func @_layernorm_kernel(%arg0: i32, %arg1: memref<16x256xbf16, #tpu.memory_space<vmem>>, %arg2: memref<1x256xf32, #tpu.memory_space<vmem>>, %arg3: memref<1x256xf32, #tpu.memory_space<vmem>>, %arg4: memref<16x256xbf16, #tpu.memory_space<vmem>>) attributes {dimension_semantics = [#tpu.dimension_semantics<parallel>], iteration_bounds = array<i64: 1>, scalar_prefetch = 0 : i64, scratch_operands = 0 : i64, tpu.core_type = #tpu.core_type<tc>, window_params = [{transform_indices = @transform_0, window_bounds = array<i64: 16, 256>}, {pipeline_mode = #tpu.pipeline_mode<synchronous>, transform_indices = @transform_1, window_bounds = array<i64: 1, 256>}, {pipeline_mode = #tpu.pipeline_mode<synchronous>, transform_indices = @transform_2, window_bounds = array<i64: 1, 256>}, {transform_indices = @transform_3, window_bounds = array<i64: 16, 256>}]} {
    %c0 = arith.constant 0 : index
    %c0_0 = arith.constant 0 : index
    %0 = vector.load %arg1[%c0, %c0_0] : memref<16x256xbf16, #tpu.memory_space<vmem>>, vector<16x256xbf16>
    %1 = arith.extf %0 : vector<16x256xbf16> to vector<16x256xf32>
    %cst = arith.constant dense<0.000000e+00> : vector<16xf32>
    %2 = vector.multi_reduction <add>, %1, %cst [1] : vector<16x256xf32> to vector<16xf32>
    %3 = vector.shape_cast %2 : vector<16xf32> to vector<16x1xf32>
    %cst_1 = arith.constant 2.560000e+02 : f32
    %4 = vector.broadcast %cst_1 : f32 to vector<16x1xf32>
    %5 = arith.divf %3, %4 : vector<16x1xf32>
    %6 = arith.mulf %1, %1 : vector<16x256xf32>
    %cst_2 = arith.constant dense<0.000000e+00> : vector<16xf32>
    %7 = vector.multi_reduction <add>, %6, %cst_2 [1] : vector<16x256xf32> to vector<16xf32>
    %8 = vector.shape_cast %7 : vector<16xf32> to vector<16x1xf32>
    %cst_3 = arith.constant 2.560000e+02 : f32
    %9 = vector.broadcast %cst_3 : f32 to vector<16x1xf32>
    %10 = arith.divf %8, %9 : vector<16x1xf32>
    %11 = arith.mulf %5, %5 : vector<16x1xf32>
    %12 = arith.subf %10, %11 : vector<16x1xf32>
    %13 = vector.broadcast %5 : vector<16x1xf32> to vector<16x256xf32>
    %14 = arith.subf %1, %13 : vector<16x256xf32>
    %cst_4 = arith.constant 9.99999974E-6 : f32
    %15 = vector.broadcast %cst_4 : f32 to vector<16x1xf32>
    %16 = arith.addf %12, %15 : vector<16x1xf32>
    %17 = math.rsqrt %16 : vector<16x1xf32>
    %18 = vector.broadcast %17 : vector<16x1xf32> to vector<16x256xf32>
    %19 = arith.mulf %14, %18 : vector<16x256xf32>
    %c0_5 = arith.constant 0 : index
    %c0_6 = arith.constant 0 : index
    %20 = vector.load %arg2[%c0_5, %c0_6] : memref<1x256xf32, #tpu.memory_space<vmem>>, vector<1x256xf32>
    %21 = vector.broadcast %20 : vector<1x256xf32> to vector<16x256xf32>
    %22 = arith.mulf %19, %21 : vector<16x256xf32>
    %c0_7 = arith.constant 0 : index
    %c0_8 = arith.constant 0 : index
    %23 = vector.load %arg3[%c0_7, %c0_8] : memref<1x256xf32, #tpu.memory_space<vmem>>, vector<1x256xf32>
    %24 = vector.broadcast %23 : vector<1x256xf32> to vector<16x256xf32>
    %25 = arith.addf %22, %24 : vector<16x256xf32>
    %26 = arith.truncf %25 : vector<16x256xf32> to vector<16x256xbf16>
    %c0_9 = arith.constant 0 : index
    %c0_10 = arith.constant 0 : index
    %27 = vector.load %arg4[%c0_9, %c0_10] : memref<16x256xbf16, #tpu.memory_space<vmem>>, vector<16x256xbf16>
    tpu.vector_store %arg4[%c0_9, %c0_10], %26 {strides = array<i32>} : memref<16x256xbf16, #tpu.memory_space<vmem>>, vector<16x256xbf16>,
    return
  }
  func.func @transform_0(%arg0: i32) -> (i32, i32) {
    %c0_i32 = arith.constant 0 : i32
    %c0_i32_0 = arith.constant 0 : i32
    return %arg0, %c0_i32 : i32, i32
  }
  func.func @transform_1(%arg0: i32) -> (i32, i32) {
    %c0_i32 = arith.constant 0 : i32
    %c0_i32_0 = arith.constant 0 : i32
    %c0_i32_1 = arith.constant 0 : i32
    return %c0_i32, %c0_i32_0 : i32, i32
  }
  func.func @transform_2(%arg0: i32) -> (i32, i32) {
    %c0_i32 = arith.constant 0 : i32
    %c0_i32_0 = arith.constant 0 : i32
    %c0_i32_1 = arith.constant 0 : i32
    return %c0_i32, %c0_i32_0 : i32, i32
  }
  func.func @transform_3(%arg0: i32) -> (i32, i32) {
    %c0_i32 = arith.constant 0 : i32
    %c0_i32_0 = arith.constant 0 : i32
    return %arg0, %c0_i32 : i32, i32
  }
}

module attributes {stable_mosaic.version = 11 : i64} {
  func.func @_flash_attn_kernel(%arg0: i32, %arg1: i32, %arg2: i32, %arg3: i32, %arg4: memref<1x8x256xbf16, #tpu.memory_space<vmem>>, %arg5: memref<1x8x256xbf16, #tpu.memory_space<vmem>>, %arg6: memref<1x8x256xbf16, #tpu.memory_space<vmem>>, %arg7: memref<1x1x4x8xf32, #tpu.memory_space<vmem>>, %arg8: memref<1x1x8xf32, #tpu.memory_space<vmem>>, %arg9: memref<1x8x256xbf16, #tpu.memory_space<vmem>>, %arg10: memref<4x8x1xf32, #tpu.memory_space<vmem>>, %arg11: memref<4x8x1xf32, #tpu.memory_space<vmem>>, %arg12: memref<4x8x64xf32, #tpu.memory_space<vmem>>) attributes {dimension_semantics = [#tpu.dimension_semantics<parallel>, #tpu.dimension_semantics<parallel>, #tpu.dimension_semantics<parallel>, #tpu.dimension_semantics<arbitrary>], iteration_bounds = array<i64: 2, 1, 1, 1>, scalar_prefetch = 0 : i64, scratch_operands = 3 : i64, tpu.core_type = #tpu.core_type<tc>, window_params = [{transform_indices = @transform_0, window_bounds = array<i64: 1, 8, 256>}, {transform_indices = @transform_1, window_bounds = array<i64: 1, 8, 256>}, {transform_indices = @transform_2, window_bounds = array<i64: 1, 8, 256>}, {transform_indices = @transform_3, window_bounds = array<i64: 1, 1, 4, 8>}, {transform_indices = @transform_4, window_bounds = array<i64: 1, 1, 8>}, {transform_indices = @transform_5, window_bounds = array<i64: 1, 8, 256>}]} {
    %c0_i32 = arith.constant 0 : i32
    %0 = arith.cmpi eq, %arg3, %c0_i32 : i32
    %1 = arith.extui %0 : i1 to i32
    %c0_i32_0 = arith.constant 0 : i32
    %2 = arith.cmpi ne, %1, %c0_i32_0 : i32
    scf.if %2 {
      %cst = arith.constant 0xFF800000 : f32
      %12 = vector.broadcast %cst : f32 to vector<4x8x1xf32>
      %c0 = arith.constant 0 : index
      %c0_5 = arith.constant 0 : index
      %c0_6 = arith.constant 0 : index
      %13 = vector.load %arg10[%c0, %c0_5, %c0_6] : memref<4x8x1xf32, #tpu.memory_space<vmem>>, vector<4x8x1xf32>
      tpu.vector_store %arg10[%c0, %c0_5, %c0_6], %12 {strides = array<i32>} : memref<4x8x1xf32, #tpu.memory_space<vmem>>, vector<4x8x1xf32>,
      %cst_7 = arith.constant 0.000000e+00 : f32
      %14 = vector.broadcast %cst_7 : f32 to vector<4x8x1xf32>
      %c0_8 = arith.constant 0 : index
      %c0_9 = arith.constant 0 : index
      %c0_10 = arith.constant 0 : index
      %15 = vector.load %arg11[%c0_8, %c0_9, %c0_10] : memref<4x8x1xf32, #tpu.memory_space<vmem>>, vector<4x8x1xf32>
      tpu.vector_store %arg11[%c0_8, %c0_9, %c0_10], %14 {strides = array<i32>} : memref<4x8x1xf32, #tpu.memory_space<vmem>>, vector<4x8x1xf32>,
      %cst_11 = arith.constant 0.000000e+00 : f32
      %16 = vector.broadcast %cst_11 : f32 to vector<4x8x64xf32>
      %c0_12 = arith.constant 0 : index
      %c0_13 = arith.constant 0 : index
      %c0_14 = arith.constant 0 : index
      %17 = vector.load %arg12[%c0_12, %c0_13, %c0_14] : memref<4x8x64xf32, #tpu.memory_space<vmem>>, vector<4x8x64xf32>
      tpu.vector_store %arg12[%c0_12, %c0_13, %c0_14], %16 {strides = array<i32>} : memref<4x8x64xf32, #tpu.memory_space<vmem>>, vector<4x8x64xf32>,
    } else {
    }
    %c8_i32 = arith.constant 8 : i32
    %3 = arith.muli %arg2, %c8_i32 : i32
    %c8_i32_1 = arith.constant 8 : i32
    %4 = arith.muli %arg3, %c8_i32_1 : i32
    %c7_i32 = arith.constant 7 : i32
    %5 = arith.addi %3, %c7_i32 : i32
    %6 = arith.cmpi sle, %4, %5 : i32
    %7 = arith.extui %6 : i1 to i32
    %c0_i32_2 = arith.constant 0 : i32
    %8 = arith.cmpi ne, %7, %c0_i32_2 : i32
    scf.if %8 {
      %c0 = arith.constant 0 : index
      %c0_5 = arith.constant 0 : index
      %c0_6 = arith.constant 0 : index
      %12 = vector.load %arg4[%c0, %c0_5, %c0_6] : memref<1x8x256xbf16, #tpu.memory_space<vmem>>, vector<1x8x256xbf16>
      %13 = vector.shape_cast %12 : vector<1x8x256xbf16> to vector<8x256xbf16>
      %c0_7 = arith.constant 0 : index
      %c0_8 = arith.constant 0 : index
      %c0_9 = arith.constant 0 : index
      %14 = vector.load %arg5[%c0_7, %c0_8, %c0_9] : memref<1x8x256xbf16, #tpu.memory_space<vmem>>, vector<1x8x256xbf16>
      %15 = vector.shape_cast %14 : vector<1x8x256xbf16> to vector<8x256xbf16>
      %c0_10 = arith.constant 0 : index
      %c0_11 = arith.constant 0 : index
      %c0_12 = arith.constant 0 : index
      %16 = vector.load %arg6[%c0_10, %c0_11, %c0_12] : memref<1x8x256xbf16, #tpu.memory_space<vmem>>, vector<1x8x256xbf16>
      %17 = vector.shape_cast %16 : vector<1x8x256xbf16> to vector<8x256xbf16>
      %c0_13 = arith.constant 0 : index
      %c0_14 = arith.constant 0 : index
      %c0_15 = arith.constant 0 : index
      %c0_16 = arith.constant 0 : index
      %18 = vector.load %arg7[%c0_13, %c0_14, %c0_15, %c0_16] : memref<1x1x4x8xf32, #tpu.memory_space<vmem>>, vector<1x1x4x8xf32>
      %19 = vector.shape_cast %18 : vector<1x1x4x8xf32> to vector<4x8xf32>
      %c0_17 = arith.constant 0 : index
      %c0_18 = arith.constant 0 : index
      %c0_19 = arith.constant 0 : index
      %20 = vector.load %arg8[%c0_17, %c0_18, %c0_19] : memref<1x1x8xf32, #tpu.memory_space<vmem>>, vector<1x1x8xf32>
      %21 = vector.shape_cast %20 : vector<1x1x8xf32> to vector<1x8xf32>
      %22 = tpu.iota {dimensions = array<i32: 0>} : vector<8x8xi32>
      %23 = vector.broadcast %3 : i32 to vector<8x8xi32>
      %24 = arith.addi %23, %22 : vector<8x8xi32>
      %25 = tpu.iota {dimensions = array<i32: 1>} : vector<8x8xi32>
      %26 = vector.broadcast %4 : i32 to vector<8x8xi32>
      %27 = arith.addi %26, %25 : vector<8x8xi32>
      %28 = arith.cmpi sgt, %27, %24 : vector<8x8xi32>
      %cst = arith.constant 5.000000e-01 : f32
      %29 = vector.broadcast %cst : f32 to vector<1x8xf32>
      %30 = arith.cmpf ogt, %21, %29 : vector<1x8xf32>
      %31 = vector.broadcast %30 : vector<1x8xi1> to vector<8x8xi1>
      %32 = arith.ori %28, %31 : vector<8x8xi1>
      %33 = vector.extract_strided_slice %13 {offsets = [0, 0], sizes = [8, 64], strides = [1, 1]} : vector<8x256xbf16> to vector<8x64xbf16>
      %34 = vector.extract_strided_slice %15 {offsets = [0, 0], sizes = [8, 64], strides = [1, 1]} : vector<8x256xbf16> to vector<8x64xbf16>
      %35 = vector.extract_strided_slice %17 {offsets = [0, 0], sizes = [8, 64], strides = [1, 1]} : vector<8x256xbf16> to vector<8x64xbf16>
      %cst_20 = arith.constant dense<0.000000e+00> : vector<8x8xf32>
      %36 = tpu.matmul %33, %34, %cst_20 {dimension_numbers = #tpu.dot_dimension_numbers<[1], [1], [0], [0], [0, 0, 1, 0], [], []>} : vector<8x64xbf16>, vector<8x64xbf16>, vector<8x8xf32> -> vector<8x8xf32>
      %37 = vector.extract_strided_slice %19 {offsets = [0, 0], sizes = [1, 8], strides = [1, 1]} : vector<4x8xf32> to vector<1x8xf32>
      %38 = vector.broadcast %37 : vector<1x8xf32> to vector<8x8xf32>
      %39 = arith.addf %36, %38 : vector<8x8xf32>
      %cst_21 = arith.constant -3.40282347E+38 : f32
      %40 = vector.broadcast %cst_21 : f32 to vector<8x8xf32>
      %41 = arith.select %32, %40, %39 : vector<8x8xi1>, vector<8x8xf32>
      %c0_22 = arith.constant 0 : index
      %c0_23 = arith.constant 0 : index
      %c0_24 = arith.constant 0 : index
      %42 = vector.load %arg10[%c0_22, %c0_23, %c0_24] : memref<4x8x1xf32, #tpu.memory_space<vmem>>, vector<1x8x1xf32>
      %43 = vector.shape_cast %42 : vector<1x8x1xf32> to vector<8x1xf32>
      %cst_25 = arith.constant dense<0xFF800000> : vector<8xf32>
      %44 = vector.multi_reduction <maximumf>, %41, %cst_25 [1] : vector<8x8xf32> to vector<8xf32>
      %45 = vector.shape_cast %44 : vector<8xf32> to vector<8x1xf32>
      %46 = arith.maximumf %43, %45 : vector<8x1xf32>
      %47 = arith.subf %43, %46 : vector<8x1xf32>
      %48 = math.exp %47 : vector<8x1xf32>
      %49 = vector.broadcast %46 : vector<8x1xf32> to vector<8x8xf32>
      %50 = arith.subf %41, %49 : vector<8x8xf32>
      %51 = math.exp %50 : vector<8x8xf32>
      %c0_26 = arith.constant 0 : index
      %c0_27 = arith.constant 0 : index
      %c0_28 = arith.constant 0 : index
      %52 = vector.load %arg11[%c0_26, %c0_27, %c0_28] : memref<4x8x1xf32, #tpu.memory_space<vmem>>, vector<1x8x1xf32>
      %53 = vector.shape_cast %52 : vector<1x8x1xf32> to vector<8x1xf32>
      %54 = arith.mulf %48, %53 : vector<8x1xf32>
      %cst_29 = arith.constant dense<0.000000e+00> : vector<8xf32>
      %55 = vector.multi_reduction <add>, %51, %cst_29 [1] : vector<8x8xf32> to vector<8xf32>
      %56 = vector.shape_cast %55 : vector<8xf32> to vector<8x1xf32>
      %57 = arith.addf %54, %56 : vector<8x1xf32>
      %c0_30 = arith.constant 0 : index
      %c0_31 = arith.constant 0 : index
      %c0_32 = arith.constant 0 : index
      %58 = vector.load %arg11[%c0_30, %c0_31, %c0_32] : memref<4x8x1xf32, #tpu.memory_space<vmem>>, vector<1x8x1xf32>
      %59 = vector.shape_cast %58 : vector<1x8x1xf32> to vector<8x1xf32>
      %60 = vector.shape_cast %57 : vector<8x1xf32> to vector<1x8x1xf32>
      tpu.vector_store %arg11[%c0_30, %c0_31, %c0_32], %60 {strides = array<i32>} : memref<4x8x1xf32, #tpu.memory_space<vmem>>, vector<1x8x1xf32>,
      %c0_33 = arith.constant 0 : index
      %c0_34 = arith.constant 0 : index
      %c0_35 = arith.constant 0 : index
      %61 = vector.load %arg12[%c0_33, %c0_34, %c0_35] : memref<4x8x64xf32, #tpu.memory_space<vmem>>, vector<1x8x64xf32>
      %62 = vector.shape_cast %61 : vector<1x8x64xf32> to vector<8x64xf32>
      %63 = vector.broadcast %48 : vector<8x1xf32> to vector<8x64xf32>
      %64 = arith.mulf %63, %62 : vector<8x64xf32>
      %65 = arith.truncf %51 : vector<8x8xf32> to vector<8x8xbf16>
      %cst_36 = arith.constant dense<0.000000e+00> : vector<8x64xf32>
      %66 = tpu.matmul %65, %35, %cst_36 {dimension_numbers = #tpu.dot_dimension_numbers<[1], [0], [0], [1], [0, 0, 1, 1], [], []>} : vector<8x8xbf16>, vector<8x64xbf16>, vector<8x64xf32> -> vector<8x64xf32>
      %67 = arith.addf %64, %66 : vector<8x64xf32>
      %c0_37 = arith.constant 0 : index
      %c0_38 = arith.constant 0 : index
      %c0_39 = arith.constant 0 : index
      %68 = vector.load %arg12[%c0_37, %c0_38, %c0_39] : memref<4x8x64xf32, #tpu.memory_space<vmem>>, vector<1x8x64xf32>
      %69 = vector.shape_cast %68 : vector<1x8x64xf32> to vector<8x64xf32>
      %70 = vector.shape_cast %67 : vector<8x64xf32> to vector<1x8x64xf32>
      tpu.vector_store %arg12[%c0_37, %c0_38, %c0_39], %70 {strides = array<i32>} : memref<4x8x64xf32, #tpu.memory_space<vmem>>, vector<1x8x64xf32>,
      %c0_40 = arith.constant 0 : index
      %c0_41 = arith.constant 0 : index
      %c0_42 = arith.constant 0 : index
      %71 = vector.load %arg10[%c0_40, %c0_41, %c0_42] : memref<4x8x1xf32, #tpu.memory_space<vmem>>, vector<1x8x1xf32>
      %72 = vector.shape_cast %71 : vector<1x8x1xf32> to vector<8x1xf32>
      %73 = vector.shape_cast %46 : vector<8x1xf32> to vector<1x8x1xf32>
      tpu.vector_store %arg10[%c0_40, %c0_41, %c0_42], %73 {strides = array<i32>} : memref<4x8x1xf32, #tpu.memory_space<vmem>>, vector<1x8x1xf32>,
      %74 = vector.extract_strided_slice %13 {offsets = [0, 64], sizes = [8, 64], strides = [1, 1]} : vector<8x256xbf16> to vector<8x64xbf16>
      %75 = vector.extract_strided_slice %15 {offsets = [0, 64], sizes = [8, 64], strides = [1, 1]} : vector<8x256xbf16> to vector<8x64xbf16>
      %76 = vector.extract_strided_slice %17 {offsets = [0, 64], sizes = [8, 64], strides = [1, 1]} : vector<8x256xbf16> to vector<8x64xbf16>
      %cst_43 = arith.constant dense<0.000000e+00> : vector<8x8xf32>
      %77 = tpu.matmul %74, %75, %cst_43 {dimension_numbers = #tpu.dot_dimension_numbers<[1], [1], [0], [0], [0, 0, 1, 0], [], []>} : vector<8x64xbf16>, vector<8x64xbf16>, vector<8x8xf32> -> vector<8x8xf32>
      %78 = vector.extract_strided_slice %19 {offsets = [1, 0], sizes = [1, 8], strides = [1, 1]} : vector<4x8xf32> to vector<1x8xf32>
      %79 = vector.broadcast %78 : vector<1x8xf32> to vector<8x8xf32>
      %80 = arith.addf %77, %79 : vector<8x8xf32>
      %cst_44 = arith.constant -3.40282347E+38 : f32
      %81 = vector.broadcast %cst_44 : f32 to vector<8x8xf32>
      %82 = arith.select %32, %81, %80 : vector<8x8xi1>, vector<8x8xf32>
      %c1 = arith.constant 1 : index
      %c0_45 = arith.constant 0 : index
      %c0_46 = arith.constant 0 : index
      %83 = vector.load %arg10[%c1, %c0_45, %c0_46] : memref<4x8x1xf32, #tpu.memory_space<vmem>>, vector<1x8x1xf32>
      %84 = vector.shape_cast %83 : vector<1x8x1xf32> to vector<8x1xf32>
      %cst_47 = arith.constant dense<0xFF800000> : vector<8xf32>
      %85 = vector.multi_reduction <maximumf>, %82, %cst_47 [1] : vector<8x8xf32> to vector<8xf32>
      %86 = vector.shape_cast %85 : vector<8xf32> to vector<8x1xf32>
      %87 = arith.maximumf %84, %86 : vector<8x1xf32>
      %88 = arith.subf %84, %87 : vector<8x1xf32>
      %89 = math.exp %88 : vector<8x1xf32>
      %90 = vector.broadcast %87 : vector<8x1xf32> to vector<8x8xf32>
      %91 = arith.subf %82, %90 : vector<8x8xf32>
      %92 = math.exp %91 : vector<8x8xf32>
      %c1_48 = arith.constant 1 : index
      %c0_49 = arith.constant 0 : index
      %c0_50 = arith.constant 0 : index
      %93 = vector.load %arg11[%c1_48, %c0_49, %c0_50] : memref<4x8x1xf32, #tpu.memory_space<vmem>>, vector<1x8x1xf32>
      %94 = vector.shape_cast %93 : vector<1x8x1xf32> to vector<8x1xf32>
      %95 = arith.mulf %89, %94 : vector<8x1xf32>
      %cst_51 = arith.constant dense<0.000000e+00> : vector<8xf32>
      %96 = vector.multi_reduction <add>, %92, %cst_51 [1] : vector<8x8xf32> to vector<8xf32>
      %97 = vector.shape_cast %96 : vector<8xf32> to vector<8x1xf32>
      %98 = arith.addf %95, %97 : vector<8x1xf32>
      %c1_52 = arith.constant 1 : index
      %c0_53 = arith.constant 0 : index
      %c0_54 = arith.constant 0 : index
      %99 = vector.load %arg11[%c1_52, %c0_53, %c0_54] : memref<4x8x1xf32, #tpu.memory_space<vmem>>, vector<1x8x1xf32>
      %100 = vector.shape_cast %99 : vector<1x8x1xf32> to vector<8x1xf32>
      %101 = vector.shape_cast %98 : vector<8x1xf32> to vector<1x8x1xf32>
      tpu.vector_store %arg11[%c1_52, %c0_53, %c0_54], %101 {strides = array<i32>} : memref<4x8x1xf32, #tpu.memory_space<vmem>>, vector<1x8x1xf32>,
      %c1_55 = arith.constant 1 : index
      %c0_56 = arith.constant 0 : index
      %c0_57 = arith.constant 0 : index
      %102 = vector.load %arg12[%c1_55, %c0_56, %c0_57] : memref<4x8x64xf32, #tpu.memory_space<vmem>>, vector<1x8x64xf32>
      %103 = vector.shape_cast %102 : vector<1x8x64xf32> to vector<8x64xf32>
      %104 = vector.broadcast %89 : vector<8x1xf32> to vector<8x64xf32>
      %105 = arith.mulf %104, %103 : vector<8x64xf32>
      %106 = arith.truncf %92 : vector<8x8xf32> to vector<8x8xbf16>
      %cst_58 = arith.constant dense<0.000000e+00> : vector<8x64xf32>
      %107 = tpu.matmul %106, %76, %cst_58 {dimension_numbers = #tpu.dot_dimension_numbers<[1], [0], [0], [1], [0, 0, 1, 1], [], []>} : vector<8x8xbf16>, vector<8x64xbf16>, vector<8x64xf32> -> vector<8x64xf32>
      %108 = arith.addf %105, %107 : vector<8x64xf32>
      %c1_59 = arith.constant 1 : index
      %c0_60 = arith.constant 0 : index
      %c0_61 = arith.constant 0 : index
      %109 = vector.load %arg12[%c1_59, %c0_60, %c0_61] : memref<4x8x64xf32, #tpu.memory_space<vmem>>, vector<1x8x64xf32>
      %110 = vector.shape_cast %109 : vector<1x8x64xf32> to vector<8x64xf32>
      %111 = vector.shape_cast %108 : vector<8x64xf32> to vector<1x8x64xf32>
      tpu.vector_store %arg12[%c1_59, %c0_60, %c0_61], %111 {strides = array<i32>} : memref<4x8x64xf32, #tpu.memory_space<vmem>>, vector<1x8x64xf32>,
      %c1_62 = arith.constant 1 : index
      %c0_63 = arith.constant 0 : index
      %c0_64 = arith.constant 0 : index
      %112 = vector.load %arg10[%c1_62, %c0_63, %c0_64] : memref<4x8x1xf32, #tpu.memory_space<vmem>>, vector<1x8x1xf32>
      %113 = vector.shape_cast %112 : vector<1x8x1xf32> to vector<8x1xf32>
      %114 = vector.shape_cast %87 : vector<8x1xf32> to vector<1x8x1xf32>
      tpu.vector_store %arg10[%c1_62, %c0_63, %c0_64], %114 {strides = array<i32>} : memref<4x8x1xf32, #tpu.memory_space<vmem>>, vector<1x8x1xf32>,
      %115 = vector.extract_strided_slice %13 {offsets = [0, 128], sizes = [8, 64], strides = [1, 1]} : vector<8x256xbf16> to vector<8x64xbf16>
      %116 = vector.extract_strided_slice %15 {offsets = [0, 128], sizes = [8, 64], strides = [1, 1]} : vector<8x256xbf16> to vector<8x64xbf16>
      %117 = vector.extract_strided_slice %17 {offsets = [0, 128], sizes = [8, 64], strides = [1, 1]} : vector<8x256xbf16> to vector<8x64xbf16>
      %cst_65 = arith.constant dense<0.000000e+00> : vector<8x8xf32>
      %118 = tpu.matmul %115, %116, %cst_65 {dimension_numbers = #tpu.dot_dimension_numbers<[1], [1], [0], [0], [0, 0, 1, 0], [], []>} : vector<8x64xbf16>, vector<8x64xbf16>, vector<8x8xf32> -> vector<8x8xf32>
      %119 = vector.extract_strided_slice %19 {offsets = [2, 0], sizes = [1, 8], strides = [1, 1]} : vector<4x8xf32> to vector<1x8xf32>
      %120 = vector.broadcast %119 : vector<1x8xf32> to vector<8x8xf32>
      %121 = arith.addf %118, %120 : vector<8x8xf32>
      %cst_66 = arith.constant -3.40282347E+38 : f32
      %122 = vector.broadcast %cst_66 : f32 to vector<8x8xf32>
      %123 = arith.select %32, %122, %121 : vector<8x8xi1>, vector<8x8xf32>
      %c2 = arith.constant 2 : index
      %c0_67 = arith.constant 0 : index
      %c0_68 = arith.constant 0 : index
      %124 = vector.load %arg10[%c2, %c0_67, %c0_68] : memref<4x8x1xf32, #tpu.memory_space<vmem>>, vector<1x8x1xf32>
      %125 = vector.shape_cast %124 : vector<1x8x1xf32> to vector<8x1xf32>
      %cst_69 = arith.constant dense<0xFF800000> : vector<8xf32>
      %126 = vector.multi_reduction <maximumf>, %123, %cst_69 [1] : vector<8x8xf32> to vector<8xf32>
      %127 = vector.shape_cast %126 : vector<8xf32> to vector<8x1xf32>
      %128 = arith.maximumf %125, %127 : vector<8x1xf32>
      %129 = arith.subf %125, %128 : vector<8x1xf32>
      %130 = math.exp %129 : vector<8x1xf32>
      %131 = vector.broadcast %128 : vector<8x1xf32> to vector<8x8xf32>
      %132 = arith.subf %123, %131 : vector<8x8xf32>
      %133 = math.exp %132 : vector<8x8xf32>
      %c2_70 = arith.constant 2 : index
      %c0_71 = arith.constant 0 : index
      %c0_72 = arith.constant 0 : index
      %134 = vector.load %arg11[%c2_70, %c0_71, %c0_72] : memref<4x8x1xf32, #tpu.memory_space<vmem>>, vector<1x8x1xf32>
      %135 = vector.shape_cast %134 : vector<1x8x1xf32> to vector<8x1xf32>
      %136 = arith.mulf %130, %135 : vector<8x1xf32>
      %cst_73 = arith.constant dense<0.000000e+00> : vector<8xf32>
      %137 = vector.multi_reduction <add>, %133, %cst_73 [1] : vector<8x8xf32> to vector<8xf32>
      %138 = vector.shape_cast %137 : vector<8xf32> to vector<8x1xf32>
      %139 = arith.addf %136, %138 : vector<8x1xf32>
      %c2_74 = arith.constant 2 : index
      %c0_75 = arith.constant 0 : index
      %c0_76 = arith.constant 0 : index
      %140 = vector.load %arg11[%c2_74, %c0_75, %c0_76] : memref<4x8x1xf32, #tpu.memory_space<vmem>>, vector<1x8x1xf32>
      %141 = vector.shape_cast %140 : vector<1x8x1xf32> to vector<8x1xf32>
      %142 = vector.shape_cast %139 : vector<8x1xf32> to vector<1x8x1xf32>
      tpu.vector_store %arg11[%c2_74, %c0_75, %c0_76], %142 {strides = array<i32>} : memref<4x8x1xf32, #tpu.memory_space<vmem>>, vector<1x8x1xf32>,
      %c2_77 = arith.constant 2 : index
      %c0_78 = arith.constant 0 : index
      %c0_79 = arith.constant 0 : index
      %143 = vector.load %arg12[%c2_77, %c0_78, %c0_79] : memref<4x8x64xf32, #tpu.memory_space<vmem>>, vector<1x8x64xf32>
      %144 = vector.shape_cast %143 : vector<1x8x64xf32> to vector<8x64xf32>
      %145 = vector.broadcast %130 : vector<8x1xf32> to vector<8x64xf32>
      %146 = arith.mulf %145, %144 : vector<8x64xf32>
      %147 = arith.truncf %133 : vector<8x8xf32> to vector<8x8xbf16>
      %cst_80 = arith.constant dense<0.000000e+00> : vector<8x64xf32>
      %148 = tpu.matmul %147, %117, %cst_80 {dimension_numbers = #tpu.dot_dimension_numbers<[1], [0], [0], [1], [0, 0, 1, 1], [], []>} : vector<8x8xbf16>, vector<8x64xbf16>, vector<8x64xf32> -> vector<8x64xf32>
      %149 = arith.addf %146, %148 : vector<8x64xf32>
      %c2_81 = arith.constant 2 : index
      %c0_82 = arith.constant 0 : index
      %c0_83 = arith.constant 0 : index
      %150 = vector.load %arg12[%c2_81, %c0_82, %c0_83] : memref<4x8x64xf32, #tpu.memory_space<vmem>>, vector<1x8x64xf32>
      %151 = vector.shape_cast %150 : vector<1x8x64xf32> to vector<8x64xf32>
      %152 = vector.shape_cast %149 : vector<8x64xf32> to vector<1x8x64xf32>
      tpu.vector_store %arg12[%c2_81, %c0_82, %c0_83], %152 {strides = array<i32>} : memref<4x8x64xf32, #tpu.memory_space<vmem>>, vector<1x8x64xf32>,
      %c2_84 = arith.constant 2 : index
      %c0_85 = arith.constant 0 : index
      %c0_86 = arith.constant 0 : index
      %153 = vector.load %arg10[%c2_84, %c0_85, %c0_86] : memref<4x8x1xf32, #tpu.memory_space<vmem>>, vector<1x8x1xf32>
      %154 = vector.shape_cast %153 : vector<1x8x1xf32> to vector<8x1xf32>
      %155 = vector.shape_cast %128 : vector<8x1xf32> to vector<1x8x1xf32>
      tpu.vector_store %arg10[%c2_84, %c0_85, %c0_86], %155 {strides = array<i32>} : memref<4x8x1xf32, #tpu.memory_space<vmem>>, vector<1x8x1xf32>,
      %156 = vector.extract_strided_slice %13 {offsets = [0, 192], sizes = [8, 64], strides = [1, 1]} : vector<8x256xbf16> to vector<8x64xbf16>
      %157 = vector.extract_strided_slice %15 {offsets = [0, 192], sizes = [8, 64], strides = [1, 1]} : vector<8x256xbf16> to vector<8x64xbf16>
      %158 = vector.extract_strided_slice %17 {offsets = [0, 192], sizes = [8, 64], strides = [1, 1]} : vector<8x256xbf16> to vector<8x64xbf16>
      %cst_87 = arith.constant dense<0.000000e+00> : vector<8x8xf32>
      %159 = tpu.matmul %156, %157, %cst_87 {dimension_numbers = #tpu.dot_dimension_numbers<[1], [1], [0], [0], [0, 0, 1, 0], [], []>} : vector<8x64xbf16>, vector<8x64xbf16>, vector<8x8xf32> -> vector<8x8xf32>
      %160 = vector.extract_strided_slice %19 {offsets = [3, 0], sizes = [1, 8], strides = [1, 1]} : vector<4x8xf32> to vector<1x8xf32>
      %161 = vector.broadcast %160 : vector<1x8xf32> to vector<8x8xf32>
      %162 = arith.addf %159, %161 : vector<8x8xf32>
      %cst_88 = arith.constant -3.40282347E+38 : f32
      %163 = vector.broadcast %cst_88 : f32 to vector<8x8xf32>
      %164 = arith.select %32, %163, %162 : vector<8x8xi1>, vector<8x8xf32>
      %c3 = arith.constant 3 : index
      %c0_89 = arith.constant 0 : index
      %c0_90 = arith.constant 0 : index
      %165 = vector.load %arg10[%c3, %c0_89, %c0_90] : memref<4x8x1xf32, #tpu.memory_space<vmem>>, vector<1x8x1xf32>
      %166 = vector.shape_cast %165 : vector<1x8x1xf32> to vector<8x1xf32>
      %cst_91 = arith.constant dense<0xFF800000> : vector<8xf32>
      %167 = vector.multi_reduction <maximumf>, %164, %cst_91 [1] : vector<8x8xf32> to vector<8xf32>
      %168 = vector.shape_cast %167 : vector<8xf32> to vector<8x1xf32>
      %169 = arith.maximumf %166, %168 : vector<8x1xf32>
      %170 = arith.subf %166, %169 : vector<8x1xf32>
      %171 = math.exp %170 : vector<8x1xf32>
      %172 = vector.broadcast %169 : vector<8x1xf32> to vector<8x8xf32>
      %173 = arith.subf %164, %172 : vector<8x8xf32>
      %174 = math.exp %173 : vector<8x8xf32>
      %c3_92 = arith.constant 3 : index
      %c0_93 = arith.constant 0 : index
      %c0_94 = arith.constant 0 : index
      %175 = vector.load %arg11[%c3_92, %c0_93, %c0_94] : memref<4x8x1xf32, #tpu.memory_space<vmem>>, vector<1x8x1xf32>
      %176 = vector.shape_cast %175 : vector<1x8x1xf32> to vector<8x1xf32>
      %177 = arith.mulf %171, %176 : vector<8x1xf32>
      %cst_95 = arith.constant dense<0.000000e+00> : vector<8xf32>
      %178 = vector.multi_reduction <add>, %174, %cst_95 [1] : vector<8x8xf32> to vector<8xf32>
      %179 = vector.shape_cast %178 : vector<8xf32> to vector<8x1xf32>
      %180 = arith.addf %177, %179 : vector<8x1xf32>
      %c3_96 = arith.constant 3 : index
      %c0_97 = arith.constant 0 : index
      %c0_98 = arith.constant 0 : index
      %181 = vector.load %arg11[%c3_96, %c0_97, %c0_98] : memref<4x8x1xf32, #tpu.memory_space<vmem>>, vector<1x8x1xf32>
      %182 = vector.shape_cast %181 : vector<1x8x1xf32> to vector<8x1xf32>
      %183 = vector.shape_cast %180 : vector<8x1xf32> to vector<1x8x1xf32>
      tpu.vector_store %arg11[%c3_96, %c0_97, %c0_98], %183 {strides = array<i32>} : memref<4x8x1xf32, #tpu.memory_space<vmem>>, vector<1x8x1xf32>,
      %c3_99 = arith.constant 3 : index
      %c0_100 = arith.constant 0 : index
      %c0_101 = arith.constant 0 : index
      %184 = vector.load %arg12[%c3_99, %c0_100, %c0_101] : memref<4x8x64xf32, #tpu.memory_space<vmem>>, vector<1x8x64xf32>
      %185 = vector.shape_cast %184 : vector<1x8x64xf32> to vector<8x64xf32>
      %186 = vector.broadcast %171 : vector<8x1xf32> to vector<8x64xf32>
      %187 = arith.mulf %186, %185 : vector<8x64xf32>
      %188 = arith.truncf %174 : vector<8x8xf32> to vector<8x8xbf16>
      %cst_102 = arith.constant dense<0.000000e+00> : vector<8x64xf32>
      %189 = tpu.matmul %188, %158, %cst_102 {dimension_numbers = #tpu.dot_dimension_numbers<[1], [0], [0], [1], [0, 0, 1, 1], [], []>} : vector<8x8xbf16>, vector<8x64xbf16>, vector<8x64xf32> -> vector<8x64xf32>
      %190 = arith.addf %187, %189 : vector<8x64xf32>
      %c3_103 = arith.constant 3 : index
      %c0_104 = arith.constant 0 : index
      %c0_105 = arith.constant 0 : index
      %191 = vector.load %arg12[%c3_103, %c0_104, %c0_105] : memref<4x8x64xf32, #tpu.memory_space<vmem>>, vector<1x8x64xf32>
      %192 = vector.shape_cast %191 : vector<1x8x64xf32> to vector<8x64xf32>
      %193 = vector.shape_cast %190 : vector<8x64xf32> to vector<1x8x64xf32>
      tpu.vector_store %arg12[%c3_103, %c0_104, %c0_105], %193 {strides = array<i32>} : memref<4x8x64xf32, #tpu.memory_space<vmem>>, vector<1x8x64xf32>,
      %c3_106 = arith.constant 3 : index
      %c0_107 = arith.constant 0 : index
      %c0_108 = arith.constant 0 : index
      %194 = vector.load %arg10[%c3_106, %c0_107, %c0_108] : memref<4x8x1xf32, #tpu.memory_space<vmem>>, vector<1x8x1xf32>
      %195 = vector.shape_cast %194 : vector<1x8x1xf32> to vector<8x1xf32>
      %196 = vector.shape_cast %169 : vector<8x1xf32> to vector<1x8x1xf32>
      tpu.vector_store %arg10[%c3_106, %c0_107, %c0_108], %196 {strides = array<i32>} : memref<4x8x1xf32, #tpu.memory_space<vmem>>, vector<1x8x1xf32>,
    } else {
    }
    %c0_i32_3 = arith.constant 0 : i32
    %9 = arith.cmpi eq, %arg3, %c0_i32_3 : i32
    %10 = arith.extui %9 : i1 to i32
    %c0_i32_4 = arith.constant 0 : i32
    %11 = arith.cmpi ne, %10, %c0_i32_4 : i32
    scf.if %11 {
      %c0 = arith.constant 0 : index
      %c0_5 = arith.constant 0 : index
      %c0_6 = arith.constant 0 : index
      %12 = vector.load %arg11[%c0, %c0_5, %c0_6] : memref<4x8x1xf32, #tpu.memory_space<vmem>>, vector<1x8x1xf32>
      %13 = vector.shape_cast %12 : vector<1x8x1xf32> to vector<8x1xf32>
      %14 = tpu.reciprocal %13 {approx = true} : vector<8x1xf32> -> vector<8x1xf32>
      %c0_7 = arith.constant 0 : index
      %c0_8 = arith.constant 0 : index
      %c0_9 = arith.constant 0 : index
      %15 = vector.load %arg12[%c0_7, %c0_8, %c0_9] : memref<4x8x64xf32, #tpu.memory_space<vmem>>, vector<1x8x64xf32>
      %16 = vector.shape_cast %15 : vector<1x8x64xf32> to vector<8x64xf32>
      %17 = vector.broadcast %14 : vector<8x1xf32> to vector<8x64xf32>
      %18 = arith.mulf %16, %17 : vector<8x64xf32>
      %19 = arith.truncf %18 : vector<8x64xf32> to vector<8x64xbf16>
      %c1 = arith.constant 1 : index
      %c0_10 = arith.constant 0 : index
      %c0_11 = arith.constant 0 : index
      %20 = vector.load %arg11[%c1, %c0_10, %c0_11] : memref<4x8x1xf32, #tpu.memory_space<vmem>>, vector<1x8x1xf32>
      %21 = vector.shape_cast %20 : vector<1x8x1xf32> to vector<8x1xf32>
      %22 = tpu.reciprocal %21 {approx = true} : vector<8x1xf32> -> vector<8x1xf32>
      %c1_12 = arith.constant 1 : index
      %c0_13 = arith.constant 0 : index
      %c0_14 = arith.constant 0 : index
      %23 = vector.load %arg12[%c1_12, %c0_13, %c0_14] : memref<4x8x64xf32, #tpu.memory_space<vmem>>, vector<1x8x64xf32>
      %24 = vector.shape_cast %23 : vector<1x8x64xf32> to vector<8x64xf32>
      %25 = vector.broadcast %22 : vector<8x1xf32> to vector<8x64xf32>
      %26 = arith.mulf %24, %25 : vector<8x64xf32>
      %27 = arith.truncf %26 : vector<8x64xf32> to vector<8x64xbf16>
      %c2 = arith.constant 2 : index
      %c0_15 = arith.constant 0 : index
      %c0_16 = arith.constant 0 : index
      %28 = vector.load %arg11[%c2, %c0_15, %c0_16] : memref<4x8x1xf32, #tpu.memory_space<vmem>>, vector<1x8x1xf32>
      %29 = vector.shape_cast %28 : vector<1x8x1xf32> to vector<8x1xf32>
      %30 = tpu.reciprocal %29 {approx = true} : vector<8x1xf32> -> vector<8x1xf32>
      %c2_17 = arith.constant 2 : index
      %c0_18 = arith.constant 0 : index
      %c0_19 = arith.constant 0 : index
      %31 = vector.load %arg12[%c2_17, %c0_18, %c0_19] : memref<4x8x64xf32, #tpu.memory_space<vmem>>, vector<1x8x64xf32>
      %32 = vector.shape_cast %31 : vector<1x8x64xf32> to vector<8x64xf32>
      %33 = vector.broadcast %30 : vector<8x1xf32> to vector<8x64xf32>
      %34 = arith.mulf %32, %33 : vector<8x64xf32>
      %35 = arith.truncf %34 : vector<8x64xf32> to vector<8x64xbf16>
      %c3 = arith.constant 3 : index
      %c0_20 = arith.constant 0 : index
      %c0_21 = arith.constant 0 : index
      %36 = vector.load %arg11[%c3, %c0_20, %c0_21] : memref<4x8x1xf32, #tpu.memory_space<vmem>>, vector<1x8x1xf32>
      %37 = vector.shape_cast %36 : vector<1x8x1xf32> to vector<8x1xf32>
      %38 = tpu.reciprocal %37 {approx = true} : vector<8x1xf32> -> vector<8x1xf32>
      %c3_22 = arith.constant 3 : index
      %c0_23 = arith.constant 0 : index
      %c0_24 = arith.constant 0 : index
      %39 = vector.load %arg12[%c3_22, %c0_23, %c0_24] : memref<4x8x64xf32, #tpu.memory_space<vmem>>, vector<1x8x64xf32>
      %40 = vector.shape_cast %39 : vector<1x8x64xf32> to vector<8x64xf32>
      %41 = vector.broadcast %38 : vector<8x1xf32> to vector<8x64xf32>
      %42 = arith.mulf %40, %41 : vector<8x64xf32>
      %43 = arith.truncf %42 : vector<8x64xf32> to vector<8x64xbf16>
      %44 = tpu.concatenate %19, %27, %35, %43 in 1 : vector<8x64xbf16>, vector<8x64xbf16>, vector<8x64xbf16>, vector<8x64xbf16> -> vector<8x256xbf16>
      %c0_25 = arith.constant 0 : index
      %c0_26 = arith.constant 0 : index
      %c0_27 = arith.constant 0 : index
      %45 = vector.load %arg9[%c0_25, %c0_26, %c0_27] : memref<1x8x256xbf16, #tpu.memory_space<vmem>>, vector<1x8x256xbf16>
      %46 = vector.shape_cast %45 : vector<1x8x256xbf16> to vector<8x256xbf16>
      %47 = vector.shape_cast %44 : vector<8x256xbf16> to vector<1x8x256xbf16>
      tpu.vector_store %arg9[%c0_25, %c0_26, %c0_27], %47 {strides = array<i32>} : memref<1x8x256xbf16, #tpu.memory_space<vmem>>, vector<1x8x256xbf16>,
    } else {
    }
    return
  }
  func.func @transform_0(%arg0: i32, %arg1: i32, %arg2: i32, %arg3: i32) -> (i32, i32, i32) {
    %c0_i32 = arith.constant 0 : i32
    return %arg0, %arg2, %arg1 : i32, i32, i32
  }
  func.func @transform_1(%arg0: i32, %arg1: i32, %arg2: i32, %arg3: i32) -> (i32, i32, i32) {
    %c1_i32 = arith.constant 1 : i32
    %0 = arith.addi %c1_i32, %arg1 : i32
    %c0_i32 = arith.constant 0 : i32
    return %arg0, %arg3, %0 : i32, i32, i32
  }
  func.func @transform_2(%arg0: i32, %arg1: i32, %arg2: i32, %arg3: i32) -> (i32, i32, i32) {
    %c2_i32 = arith.constant 2 : i32
    %0 = arith.addi %c2_i32, %arg1 : i32
    %c0_i32 = arith.constant 0 : i32
    return %arg0, %arg3, %0 : i32, i32, i32
  }
  func.func @transform_3(%arg0: i32, %arg1: i32, %arg2: i32, %arg3: i32) -> (i32, i32, i32, i32) {
    %c0_i32 = arith.constant 0 : i32
    %c0_i32_0 = arith.constant 0 : i32
    return %arg0, %arg1, %c0_i32, %arg3 : i32, i32, i32, i32
  }
  func.func @transform_4(%arg0: i32, %arg1: i32, %arg2: i32, %arg3: i32) -> (i32, i32, i32) {
    %c0_i32 = arith.constant 0 : i32
    %c0_i32_0 = arith.constant 0 : i32
    return %arg0, %c0_i32, %arg3 : i32, i32, i32
  }
  func.func @transform_5(%arg0: i32, %arg1: i32, %arg2: i32, %arg3: i32) -> (i32, i32, i32) {
    %c0_i32 = arith.constant 0 : i32
    return %arg0, %arg2, %arg1 : i32, i32, i32
  }
}

module attributes {stable_mosaic.version = 11 : i64} {
  func.func @_linear_kernel(%arg0: i32, %arg1: i32, %arg2: i32, %arg3: memref<16x256xbf16, #tpu.memory_space<vmem>>, %arg4: memref<256x256xbf16, #tpu.memory_space<vmem>>, %arg5: memref<1x256xf32, #tpu.memory_space<vmem>>, %arg6: memref<16x256xbf16, #tpu.memory_space<vmem>>, %arg7: memref<1x256xf32, #tpu.memory_space<vmem>>, %arg8: memref<1x256xf32, #tpu.memory_space<vmem>>, %arg9: memref<16x256xbf16, #tpu.memory_space<vmem>>, %arg10: memref<16x256xbf16, #tpu.memory_space<vmem>>, %arg11: memref<16x256xf32, #tpu.memory_space<vmem>>) attributes {dimension_semantics = [#tpu.dimension_semantics<parallel>, #tpu.dimension_semantics<parallel>, #tpu.dimension_semantics<arbitrary>], iteration_bounds = array<i64: 1, 1, 1>, scalar_prefetch = 0 : i64, scratch_operands = 1 : i64, tpu.core_type = #tpu.core_type<tc>, window_params = [{transform_indices = @transform_0, window_bounds = array<i64: 16, 256>}, {transform_indices = @transform_1, window_bounds = array<i64: 256, 256>}, {transform_indices = @transform_2, window_bounds = array<i64: 1, 256>}, {transform_indices = @transform_3, window_bounds = array<i64: 16, 256>}, {transform_indices = @transform_4, window_bounds = array<i64: 1, 256>}, {transform_indices = @transform_5, window_bounds = array<i64: 1, 256>}, {transform_indices = @transform_6, window_bounds = array<i64: 16, 256>}, {transform_indices = @transform_7, window_bounds = array<i64: 16, 256>}]} {
    %c0_i32 = arith.constant 0 : i32
    %0 = arith.cmpi eq, %arg2, %c0_i32 : i32
    %1 = arith.extui %0 : i1 to i32
    %c0_i32_0 = arith.constant 0 : i32
    %2 = arith.cmpi ne, %1, %c0_i32_0 : i32
    scf.if %2 {
      %cst_10 = arith.constant 0.000000e+00 : f32
      %12 = vector.broadcast %cst_10 : f32 to vector<16x256xf32>
      %c0_11 = arith.constant 0 : index
      %c0_12 = arith.constant 0 : index
      %13 = vector.load %arg11[%c0_11, %c0_12] : memref<16x256xf32, #tpu.memory_space<vmem>>, vector<16x256xf32>
      tpu.vector_store %arg11[%c0_11, %c0_12], %12 {strides = array<i32>} : memref<16x256xf32, #tpu.memory_space<vmem>>, vector<16x256xf32>,
    } else {
    }
    %c0 = arith.constant 0 : index
    %c0_1 = arith.constant 0 : index
    %3 = vector.load %arg11[%c0, %c0_1] : memref<16x256xf32, #tpu.memory_space<vmem>>, vector<16x256xf32>
    %c0_2 = arith.constant 0 : index
    %c0_3 = arith.constant 0 : index
    %4 = vector.load %arg3[%c0_2, %c0_3] : memref<16x256xbf16, #tpu.memory_space<vmem>>, vector<16x256xbf16>
    %c0_4 = arith.constant 0 : index
    %c0_5 = arith.constant 0 : index
    %5 = vector.load %arg4[%c0_4, %c0_5] : memref<256x256xbf16, #tpu.memory_space<vmem>>, vector<256x256xbf16>
    %cst = arith.constant dense<0.000000e+00> : vector<16x256xf32>
    %6 = tpu.matmul %4, %5, %cst {dimension_numbers = #tpu.dot_dimension_numbers<[1], [0], [0], [1], [0, 0, 1, 1], [], []>} : vector<16x256xbf16>, vector<256x256xbf16>, vector<16x256xf32> -> vector<16x256xf32>
    %7 = arith.addf %3, %6 : vector<16x256xf32>
    %c0_6 = arith.constant 0 : index
    %c0_7 = arith.constant 0 : index
    %8 = vector.load %arg11[%c0_6, %c0_7] : memref<16x256xf32, #tpu.memory_space<vmem>>, vector<16x256xf32>
    tpu.vector_store %arg11[%c0_6, %c0_7], %7 {strides = array<i32>} : memref<16x256xf32, #tpu.memory_space<vmem>>, vector<16x256xf32>,
    %c0_i32_8 = arith.constant 0 : i32
    %9 = arith.cmpi eq, %arg2, %c0_i32_8 : i32
    %10 = arith.extui %9 : i1 to i32
    %c0_i32_9 = arith.constant 0 : i32
    %11 = arith.cmpi ne, %10, %c0_i32_9 : i32
    scf.if %11 {
      %c0_10 = arith.constant 0 : index
      %c0_11 = arith.constant 0 : index
      %12 = vector.load %arg11[%c0_10, %c0_11] : memref<16x256xf32, #tpu.memory_space<vmem>>, vector<16x256xf32>
      %c0_12 = arith.constant 0 : index
      %c0_13 = arith.constant 0 : index
      %13 = vector.load %arg5[%c0_12, %c0_13] : memref<1x256xf32, #tpu.memory_space<vmem>>, vector<1x256xf32>
      %14 = vector.broadcast %13 : vector<1x256xf32> to vector<16x256xf32>
      %15 = arith.addf %12, %14 : vector<16x256xf32>
      %c0_14 = arith.constant 0 : index
      %c0_15 = arith.constant 0 : index
      %16 = vector.load %arg6[%c0_14, %c0_15] : memref<16x256xbf16, #tpu.memory_space<vmem>>, vector<16x256xbf16>
      %17 = arith.extf %16 : vector<16x256xbf16> to vector<16x256xf32>
      %18 = arith.addf %15, %17 : vector<16x256xf32>
      %19 = arith.truncf %18 : vector<16x256xf32> to vector<16x256xbf16>
      %c0_16 = arith.constant 0 : index
      %c0_17 = arith.constant 0 : index
      %20 = vector.load %arg9[%c0_16, %c0_17] : memref<16x256xbf16, #tpu.memory_space<vmem>>, vector<16x256xbf16>
      tpu.vector_store %arg9[%c0_16, %c0_17], %19 {strides = array<i32>} : memref<16x256xbf16, #tpu.memory_space<vmem>>, vector<16x256xbf16>,
      %cst_18 = arith.constant dense<0.000000e+00> : vector<16xf32>
      %21 = vector.multi_reduction <add>, %18, %cst_18 [1] : vector<16x256xf32> to vector<16xf32>
      %22 = vector.shape_cast %21 : vector<16xf32> to vector<16x1xf32>
      %cst_19 = arith.constant 3.906250e-03 : f32
      %23 = vector.broadcast %cst_19 : f32 to vector<16x1xf32>
      %24 = arith.mulf %22, %23 : vector<16x1xf32>
      %25 = arith.mulf %18, %18 : vector<16x256xf32>
      %cst_20 = arith.constant dense<0.000000e+00> : vector<16xf32>
      %26 = vector.multi_reduction <add>, %25, %cst_20 [1] : vector<16x256xf32> to vector<16xf32>
      %27 = vector.shape_cast %26 : vector<16xf32> to vector<16x1xf32>
      %cst_21 = arith.constant 3.906250e-03 : f32
      %28 = vector.broadcast %cst_21 : f32 to vector<16x1xf32>
      %29 = arith.mulf %27, %28 : vector<16x1xf32>
      %30 = arith.mulf %24, %24 : vector<16x1xf32>
      %31 = arith.subf %29, %30 : vector<16x1xf32>
      %32 = vector.broadcast %24 : vector<16x1xf32> to vector<16x256xf32>
      %33 = arith.subf %18, %32 : vector<16x256xf32>
      %cst_22 = arith.constant 9.99999974E-6 : f32
      %34 = vector.broadcast %cst_22 : f32 to vector<16x1xf32>
      %35 = arith.addf %31, %34 : vector<16x1xf32>
      %36 = math.rsqrt %35 : vector<16x1xf32>
      %37 = vector.broadcast %36 : vector<16x1xf32> to vector<16x256xf32>
      %38 = arith.mulf %33, %37 : vector<16x256xf32>
      %c0_23 = arith.constant 0 : index
      %c0_24 = arith.constant 0 : index
      %39 = vector.load %arg7[%c0_23, %c0_24] : memref<1x256xf32, #tpu.memory_space<vmem>>, vector<1x256xf32>
      %40 = vector.broadcast %39 : vector<1x256xf32> to vector<16x256xf32>
      %41 = arith.mulf %38, %40 : vector<16x256xf32>
      %c0_25 = arith.constant 0 : index
      %c0_26 = arith.constant 0 : index
      %42 = vector.load %arg8[%c0_25, %c0_26] : memref<1x256xf32, #tpu.memory_space<vmem>>, vector<1x256xf32>
      %43 = vector.broadcast %42 : vector<1x256xf32> to vector<16x256xf32>
      %44 = arith.addf %41, %43 : vector<16x256xf32>
      %45 = arith.truncf %44 : vector<16x256xf32> to vector<16x256xbf16>
      %c0_27 = arith.constant 0 : index
      %c0_28 = arith.constant 0 : index
      %46 = vector.load %arg10[%c0_27, %c0_28] : memref<16x256xbf16, #tpu.memory_space<vmem>>, vector<16x256xbf16>
      tpu.vector_store %arg10[%c0_27, %c0_28], %45 {strides = array<i32>} : memref<16x256xbf16, #tpu.memory_space<vmem>>, vector<16x256xbf16>,
    } else {
    }
    return
  }
  func.func @transform_0(%arg0: i32, %arg1: i32, %arg2: i32) -> (i32, i32) {
    %c0_i32 = arith.constant 0 : i32
    return %arg0, %arg2 : i32, i32
  }
  func.func @transform_1(%arg0: i32, %arg1: i32, %arg2: i32) -> (i32, i32) {
    %c0_i32 = arith.constant 0 : i32
    return %arg2, %arg1 : i32, i32
  }
  func.func @transform_2(%arg0: i32, %arg1: i32, %arg2: i32) -> (i32, i32) {
    %c0_i32 = arith.constant 0 : i32
    %c0_i32_0 = arith.constant 0 : i32
    return %c0_i32, %arg1 : i32, i32
  }
  func.func @transform_3(%arg0: i32, %arg1: i32, %arg2: i32) -> (i32, i32) {
    %c0_i32 = arith.constant 0 : i32
    return %arg0, %arg1 : i32, i32
  }
  func.func @transform_4(%arg0: i32, %arg1: i32, %arg2: i32) -> (i32, i32) {
    %c0_i32 = arith.constant 0 : i32
    %c0_i32_0 = arith.constant 0 : i32
    return %c0_i32, %arg1 : i32, i32
  }
  func.func @transform_5(%arg0: i32, %arg1: i32, %arg2: i32) -> (i32, i32) {
    %c0_i32 = arith.constant 0 : i32
    %c0_i32_0 = arith.constant 0 : i32
    return %c0_i32, %arg1 : i32, i32
  }
  func.func @transform_6(%arg0: i32, %arg1: i32, %arg2: i32) -> (i32, i32) {
    %c0_i32 = arith.constant 0 : i32
    return %arg0, %arg1 : i32, i32
  }
  func.func @transform_7(%arg0: i32, %arg1: i32, %arg2: i32) -> (i32, i32) {
    %c0_i32 = arith.constant 0 : i32
    return %arg0, %arg1 : i32, i32
  }
}

module attributes {stable_mosaic.version = 11 : i64} {
  func.func @_linear_kernel(%arg0: i32, %arg1: i32, %arg2: i32, %arg3: memref<16x256xbf16, #tpu.memory_space<vmem>>, %arg4: memref<256x512xbf16, #tpu.memory_space<vmem>>, %arg5: memref<1x512xf32, #tpu.memory_space<vmem>>, %arg6: memref<16x512xbf16, #tpu.memory_space<vmem>>, %arg7: memref<16x512xf32, #tpu.memory_space<vmem>>) attributes {dimension_semantics = [#tpu.dimension_semantics<parallel>, #tpu.dimension_semantics<parallel>, #tpu.dimension_semantics<arbitrary>], iteration_bounds = array<i64: 1, 2, 1>, scalar_prefetch = 0 : i64, scratch_operands = 1 : i64, tpu.core_type = #tpu.core_type<tc>, window_params = [{transform_indices = @transform_0, window_bounds = array<i64: 16, 256>}, {transform_indices = @transform_1, window_bounds = array<i64: 256, 512>}, {transform_indices = @transform_2, window_bounds = array<i64: 1, 512>}, {transform_indices = @transform_3, window_bounds = array<i64: 16, 512>}]} {
    %c0_i32 = arith.constant 0 : i32
    %0 = arith.cmpi eq, %arg2, %c0_i32 : i32
    %1 = arith.extui %0 : i1 to i32
    %c0_i32_0 = arith.constant 0 : i32
    %2 = arith.cmpi ne, %1, %c0_i32_0 : i32
    scf.if %2 {
      %cst_10 = arith.constant 0.000000e+00 : f32
      %12 = vector.broadcast %cst_10 : f32 to vector<16x512xf32>
      %c0_11 = arith.constant 0 : index
      %c0_12 = arith.constant 0 : index
      %13 = vector.load %arg7[%c0_11, %c0_12] : memref<16x512xf32, #tpu.memory_space<vmem>>, vector<16x512xf32>
      tpu.vector_store %arg7[%c0_11, %c0_12], %12 {strides = array<i32>} : memref<16x512xf32, #tpu.memory_space<vmem>>, vector<16x512xf32>,
    } else {
    }
    %c0 = arith.constant 0 : index
    %c0_1 = arith.constant 0 : index
    %3 = vector.load %arg7[%c0, %c0_1] : memref<16x512xf32, #tpu.memory_space<vmem>>, vector<16x512xf32>
    %c0_2 = arith.constant 0 : index
    %c0_3 = arith.constant 0 : index
    %4 = vector.load %arg3[%c0_2, %c0_3] : memref<16x256xbf16, #tpu.memory_space<vmem>>, vector<16x256xbf16>
    %c0_4 = arith.constant 0 : index
    %c0_5 = arith.constant 0 : index
    %5 = vector.load %arg4[%c0_4, %c0_5] : memref<256x512xbf16, #tpu.memory_space<vmem>>, vector<256x512xbf16>
    %cst = arith.constant dense<0.000000e+00> : vector<16x512xf32>
    %6 = tpu.matmul %4, %5, %cst {dimension_numbers = #tpu.dot_dimension_numbers<[1], [0], [0], [1], [0, 0, 1, 1], [], []>} : vector<16x256xbf16>, vector<256x512xbf16>, vector<16x512xf32> -> vector<16x512xf32>
    %7 = arith.addf %3, %6 : vector<16x512xf32>
    %c0_6 = arith.constant 0 : index
    %c0_7 = arith.constant 0 : index
    %8 = vector.load %arg7[%c0_6, %c0_7] : memref<16x512xf32, #tpu.memory_space<vmem>>, vector<16x512xf32>
    tpu.vector_store %arg7[%c0_6, %c0_7], %7 {strides = array<i32>} : memref<16x512xf32, #tpu.memory_space<vmem>>, vector<16x512xf32>,
    %c0_i32_8 = arith.constant 0 : i32
    %9 = arith.cmpi eq, %arg2, %c0_i32_8 : i32
    %10 = arith.extui %9 : i1 to i32
    %c0_i32_9 = arith.constant 0 : i32
    %11 = arith.cmpi ne, %10, %c0_i32_9 : i32
    scf.if %11 {
      %c0_10 = arith.constant 0 : index
      %c0_11 = arith.constant 0 : index
      %12 = vector.load %arg7[%c0_10, %c0_11] : memref<16x512xf32, #tpu.memory_space<vmem>>, vector<16x512xf32>
      %c0_12 = arith.constant 0 : index
      %c0_13 = arith.constant 0 : index
      %13 = vector.load %arg5[%c0_12, %c0_13] : memref<1x512xf32, #tpu.memory_space<vmem>>, vector<1x512xf32>
      %14 = vector.broadcast %13 : vector<1x512xf32> to vector<16x512xf32>
      %15 = arith.addf %12, %14 : vector<16x512xf32>
      %cst_14 = arith.constant 5.000000e-01 : f32
      %16 = vector.broadcast %cst_14 : f32 to vector<16x512xf32>
      %17 = arith.mulf %16, %15 : vector<16x512xf32>
      %cst_15 = arith.constant 0.797884583 : f32
      %18 = vector.broadcast %cst_15 : f32 to vector<16x512xf32>
      %19 = arith.mulf %18, %15 : vector<16x512xf32>
      %cst_16 = arith.constant 4.471500e-02 : f32
      %20 = vector.broadcast %cst_16 : f32 to vector<16x512xf32>
      %21 = arith.mulf %20, %15 : vector<16x512xf32>
      %22 = arith.mulf %21, %15 : vector<16x512xf32>
      %cst_17 = arith.constant 1.000000e+00 : f32
      %23 = vector.broadcast %cst_17 : f32 to vector<16x512xf32>
      %24 = arith.addf %23, %22 : vector<16x512xf32>
      %25 = arith.mulf %19, %24 : vector<16x512xf32>
      %26 = math.tanh %25 : vector<16x512xf32>
      %cst_18 = arith.constant 1.000000e+00 : f32
      %27 = vector.broadcast %cst_18 : f32 to vector<16x512xf32>
      %28 = arith.addf %27, %26 : vector<16x512xf32>
      %29 = arith.mulf %17, %28 : vector<16x512xf32>
      %30 = arith.truncf %29 : vector<16x512xf32> to vector<16x512xbf16>
      %c0_19 = arith.constant 0 : index
      %c0_20 = arith.constant 0 : index
      %31 = vector.load %arg6[%c0_19, %c0_20] : memref<16x512xbf16, #tpu.memory_space<vmem>>, vector<16x512xbf16>
      tpu.vector_store %arg6[%c0_19, %c0_20], %30 {strides = array<i32>} : memref<16x512xbf16, #tpu.memory_space<vmem>>, vector<16x512xbf16>,
    } else {
    }
    return
  }
  func.func @transform_0(%arg0: i32, %arg1: i32, %arg2: i32) -> (i32, i32) {
    %c0_i32 = arith.constant 0 : i32
    return %arg0, %arg2 : i32, i32
  }
  func.func @transform_1(%arg0: i32, %arg1: i32, %arg2: i32) -> (i32, i32) {
    %c0_i32 = arith.constant 0 : i32
    return %arg2, %arg1 : i32, i32
  }
  func.func @transform_2(%arg0: i32, %arg1: i32, %arg2: i32) -> (i32, i32) {
    %c0_i32 = arith.constant 0 : i32
    %c0_i32_0 = arith.constant 0 : i32
    return %c0_i32, %arg1 : i32, i32
  }
  func.func @transform_3(%arg0: i32, %arg1: i32, %arg2: i32) -> (i32, i32) {
    %c0_i32 = arith.constant 0 : i32
    return %arg0, %arg1 : i32, i32
  }
}

module attributes {stable_mosaic.version = 11 : i64} {
  func.func @_linear_kernel(%arg0: i32, %arg1: i32, %arg2: i32, %arg3: memref<16x512xbf16, #tpu.memory_space<vmem>>, %arg4: memref<512x256xbf16, #tpu.memory_space<vmem>>, %arg5: memref<1x256xf32, #tpu.memory_space<vmem>>, %arg6: memref<16x256xbf16, #tpu.memory_space<vmem>>, %arg7: memref<1x256xf32, #tpu.memory_space<vmem>>, %arg8: memref<1x256xf32, #tpu.memory_space<vmem>>, %arg9: memref<16x256xbf16, #tpu.memory_space<vmem>>, %arg10: memref<16x256xbf16, #tpu.memory_space<vmem>>, %arg11: memref<16x256xf32, #tpu.memory_space<vmem>>) attributes {dimension_semantics = [#tpu.dimension_semantics<parallel>, #tpu.dimension_semantics<parallel>, #tpu.dimension_semantics<arbitrary>], iteration_bounds = array<i64: 1, 1, 2>, scalar_prefetch = 0 : i64, scratch_operands = 1 : i64, tpu.core_type = #tpu.core_type<tc>, window_params = [{transform_indices = @transform_0, window_bounds = array<i64: 16, 512>}, {transform_indices = @transform_1, window_bounds = array<i64: 512, 256>}, {transform_indices = @transform_2, window_bounds = array<i64: 1, 256>}, {transform_indices = @transform_3, window_bounds = array<i64: 16, 256>}, {transform_indices = @transform_4, window_bounds = array<i64: 1, 256>}, {transform_indices = @transform_5, window_bounds = array<i64: 1, 256>}, {transform_indices = @transform_6, window_bounds = array<i64: 16, 256>}, {transform_indices = @transform_7, window_bounds = array<i64: 16, 256>}]} {
    %c0_i32 = arith.constant 0 : i32
    %0 = arith.cmpi eq, %arg2, %c0_i32 : i32
    %1 = arith.extui %0 : i1 to i32
    %c0_i32_0 = arith.constant 0 : i32
    %2 = arith.cmpi ne, %1, %c0_i32_0 : i32
    scf.if %2 {
      %cst_9 = arith.constant 0.000000e+00 : f32
      %12 = vector.broadcast %cst_9 : f32 to vector<16x256xf32>
      %c0_10 = arith.constant 0 : index
      %c0_11 = arith.constant 0 : index
      %13 = vector.load %arg11[%c0_10, %c0_11] : memref<16x256xf32, #tpu.memory_space<vmem>>, vector<16x256xf32>
      tpu.vector_store %arg11[%c0_10, %c0_11], %12 {strides = array<i32>} : memref<16x256xf32, #tpu.memory_space<vmem>>, vector<16x256xf32>,
    } else {
    }
    %c0 = arith.constant 0 : index
    %c0_1 = arith.constant 0 : index
    %3 = vector.load %arg11[%c0, %c0_1] : memref<16x256xf32, #tpu.memory_space<vmem>>, vector<16x256xf32>
    %c0_2 = arith.constant 0 : index
    %c0_3 = arith.constant 0 : index
    %4 = vector.load %arg3[%c0_2, %c0_3] : memref<16x512xbf16, #tpu.memory_space<vmem>>, vector<16x512xbf16>
    %c0_4 = arith.constant 0 : index
    %c0_5 = arith.constant 0 : index
    %5 = vector.load %arg4[%c0_4, %c0_5] : memref<512x256xbf16, #tpu.memory_space<vmem>>, vector<512x256xbf16>
    %cst = arith.constant dense<0.000000e+00> : vector<16x256xf32>
    %6 = tpu.matmul %4, %5, %cst {dimension_numbers = #tpu.dot_dimension_numbers<[1], [0], [0], [1], [0, 0, 1, 1], [], []>} : vector<16x512xbf16>, vector<512x256xbf16>, vector<16x256xf32> -> vector<16x256xf32>
    %7 = arith.addf %3, %6 : vector<16x256xf32>
    %c0_6 = arith.constant 0 : index
    %c0_7 = arith.constant 0 : index
    %8 = vector.load %arg11[%c0_6, %c0_7] : memref<16x256xf32, #tpu.memory_space<vmem>>, vector<16x256xf32>
    tpu.vector_store %arg11[%c0_6, %c0_7], %7 {strides = array<i32>} : memref<16x256xf32, #tpu.memory_space<vmem>>, vector<16x256xf32>,
    %c1_i32 = arith.constant 1 : i32
    %9 = arith.cmpi eq, %arg2, %c1_i32 : i32
    %10 = arith.extui %9 : i1 to i32
    %c0_i32_8 = arith.constant 0 : i32
    %11 = arith.cmpi ne, %10, %c0_i32_8 : i32
    scf.if %11 {
      %c0_9 = arith.constant 0 : index
      %c0_10 = arith.constant 0 : index
      %12 = vector.load %arg11[%c0_9, %c0_10] : memref<16x256xf32, #tpu.memory_space<vmem>>, vector<16x256xf32>
      %c0_11 = arith.constant 0 : index
      %c0_12 = arith.constant 0 : index
      %13 = vector.load %arg5[%c0_11, %c0_12] : memref<1x256xf32, #tpu.memory_space<vmem>>, vector<1x256xf32>
      %14 = vector.broadcast %13 : vector<1x256xf32> to vector<16x256xf32>
      %15 = arith.addf %12, %14 : vector<16x256xf32>
      %c0_13 = arith.constant 0 : index
      %c0_14 = arith.constant 0 : index
      %16 = vector.load %arg6[%c0_13, %c0_14] : memref<16x256xbf16, #tpu.memory_space<vmem>>, vector<16x256xbf16>
      %17 = arith.extf %16 : vector<16x256xbf16> to vector<16x256xf32>
      %18 = arith.addf %15, %17 : vector<16x256xf32>
      %19 = arith.truncf %18 : vector<16x256xf32> to vector<16x256xbf16>
      %c0_15 = arith.constant 0 : index
      %c0_16 = arith.constant 0 : index
      %20 = vector.load %arg9[%c0_15, %c0_16] : memref<16x256xbf16, #tpu.memory_space<vmem>>, vector<16x256xbf16>
      tpu.vector_store %arg9[%c0_15, %c0_16], %19 {strides = array<i32>} : memref<16x256xbf16, #tpu.memory_space<vmem>>, vector<16x256xbf16>,
      %cst_17 = arith.constant dense<0.000000e+00> : vector<16xf32>
      %21 = vector.multi_reduction <add>, %18, %cst_17 [1] : vector<16x256xf32> to vector<16xf32>
      %22 = vector.shape_cast %21 : vector<16xf32> to vector<16x1xf32>
      %cst_18 = arith.constant 3.906250e-03 : f32
      %23 = vector.broadcast %cst_18 : f32 to vector<16x1xf32>
      %24 = arith.mulf %22, %23 : vector<16x1xf32>
      %25 = arith.mulf %18, %18 : vector<16x256xf32>
      %cst_19 = arith.constant dense<0.000000e+00> : vector<16xf32>
      %26 = vector.multi_reduction <add>, %25, %cst_19 [1] : vector<16x256xf32> to vector<16xf32>
      %27 = vector.shape_cast %26 : vector<16xf32> to vector<16x1xf32>
      %cst_20 = arith.constant 3.906250e-03 : f32
      %28 = vector.broadcast %cst_20 : f32 to vector<16x1xf32>
      %29 = arith.mulf %27, %28 : vector<16x1xf32>
      %30 = arith.mulf %24, %24 : vector<16x1xf32>
      %31 = arith.subf %29, %30 : vector<16x1xf32>
      %32 = vector.broadcast %24 : vector<16x1xf32> to vector<16x256xf32>
      %33 = arith.subf %18, %32 : vector<16x256xf32>
      %cst_21 = arith.constant 9.99999974E-6 : f32
      %34 = vector.broadcast %cst_21 : f32 to vector<16x1xf32>
      %35 = arith.addf %31, %34 : vector<16x1xf32>
      %36 = math.rsqrt %35 : vector<16x1xf32>
      %37 = vector.broadcast %36 : vector<16x1xf32> to vector<16x256xf32>
      %38 = arith.mulf %33, %37 : vector<16x256xf32>
      %c0_22 = arith.constant 0 : index
      %c0_23 = arith.constant 0 : index
      %39 = vector.load %arg7[%c0_22, %c0_23] : memref<1x256xf32, #tpu.memory_space<vmem>>, vector<1x256xf32>
      %40 = vector.broadcast %39 : vector<1x256xf32> to vector<16x256xf32>
      %41 = arith.mulf %38, %40 : vector<16x256xf32>
      %c0_24 = arith.constant 0 : index
      %c0_25 = arith.constant 0 : index
      %42 = vector.load %arg8[%c0_24, %c0_25] : memref<1x256xf32, #tpu.memory_space<vmem>>, vector<1x256xf32>
      %43 = vector.broadcast %42 : vector<1x256xf32> to vector<16x256xf32>
      %44 = arith.addf %41, %43 : vector<16x256xf32>
      %45 = arith.truncf %44 : vector<16x256xf32> to vector<16x256xbf16>
      %c0_26 = arith.constant 0 : index
      %c0_27 = arith.constant 0 : index
      %46 = vector.load %arg10[%c0_26, %c0_27] : memref<16x256xbf16, #tpu.memory_space<vmem>>, vector<16x256xbf16>
      tpu.vector_store %arg10[%c0_26, %c0_27], %45 {strides = array<i32>} : memref<16x256xbf16, #tpu.memory_space<vmem>>, vector<16x256xbf16>,
    } else {
    }
    return
  }
  func.func @transform_0(%arg0: i32, %arg1: i32, %arg2: i32) -> (i32, i32) {
    %c0_i32 = arith.constant 0 : i32
    return %arg0, %arg2 : i32, i32
  }
  func.func @transform_1(%arg0: i32, %arg1: i32, %arg2: i32) -> (i32, i32) {
    %c0_i32 = arith.constant 0 : i32
    return %arg2, %arg1 : i32, i32
  }
  func.func @transform_2(%arg0: i32, %arg1: i32, %arg2: i32) -> (i32, i32) {
    %c0_i32 = arith.constant 0 : i32
    %c0_i32_0 = arith.constant 0 : i32
    return %c0_i32, %arg1 : i32, i32
  }
  func.func @transform_3(%arg0: i32, %arg1: i32, %arg2: i32) -> (i32, i32) {
    %c0_i32 = arith.constant 0 : i32
    return %arg0, %arg1 : i32, i32
  }
  func.func @transform_4(%arg0: i32, %arg1: i32, %arg2: i32) -> (i32, i32) {
    %c0_i32 = arith.constant 0 : i32
    %c0_i32_0 = arith.constant 0 : i32
    return %c0_i32, %arg1 : i32, i32
  }
  func.func @transform_5(%arg0: i32, %arg1: i32, %arg2: i32) -> (i32, i32) {
    %c0_i32 = arith.constant 0 : i32
    %c0_i32_0 = arith.constant 0 : i32
    return %c0_i32, %arg1 : i32, i32
  }
  func.func @transform_6(%arg0: i32, %arg1: i32, %arg2: i32) -> (i32, i32) {
    %c0_i32 = arith.constant 0 : i32
    return %arg0, %arg1 : i32, i32
  }
  func.func @transform_7(%arg0: i32, %arg1: i32, %arg2: i32) -> (i32, i32) {
    %c0_i32 = arith.constant 0 : i32
    return %arg0, %arg1 : i32, i32
  }
}

module attributes {stable_mosaic.version = 11 : i64} {
  func.func @_linear_kernel(%arg0: i32, %arg1: i32, %arg2: i32, %arg3: memref<16x1024xbf16, #tpu.memory_space<vmem>>, %arg4: memref<1024x256xbf16, #tpu.memory_space<vmem>>, %arg5: memref<1x256xf32, #tpu.memory_space<vmem>>, %arg6: memref<16x256xbf16, #tpu.memory_space<vmem>>, %arg7: memref<16x256xbf16, #tpu.memory_space<vmem>>, %arg8: memref<16x256xf32, #tpu.memory_space<vmem>>) attributes {dimension_semantics = [#tpu.dimension_semantics<parallel>, #tpu.dimension_semantics<parallel>, #tpu.dimension_semantics<arbitrary>], iteration_bounds = array<i64: 1, 1, 1>, scalar_prefetch = 0 : i64, scratch_operands = 1 : i64, tpu.core_type = #tpu.core_type<tc>, window_params = [{transform_indices = @transform_0, window_bounds = array<i64: 16, 1024>}, {transform_indices = @transform_1, window_bounds = array<i64: 1024, 256>}, {transform_indices = @transform_2, window_bounds = array<i64: 1, 256>}, {transform_indices = @transform_3, window_bounds = array<i64: 16, 256>}, {transform_indices = @transform_4, window_bounds = array<i64: 16, 256>}]} {
    %c0_i32 = arith.constant 0 : i32
    %0 = arith.cmpi eq, %arg2, %c0_i32 : i32
    %1 = arith.extui %0 : i1 to i32
    %c0_i32_0 = arith.constant 0 : i32
    %2 = arith.cmpi ne, %1, %c0_i32_0 : i32
    scf.if %2 {
      %cst_10 = arith.constant 0.000000e+00 : f32
      %12 = vector.broadcast %cst_10 : f32 to vector<16x256xf32>
      %c0_11 = arith.constant 0 : index
      %c0_12 = arith.constant 0 : index
      %13 = vector.load %arg8[%c0_11, %c0_12] : memref<16x256xf32, #tpu.memory_space<vmem>>, vector<16x256xf32>
      tpu.vector_store %arg8[%c0_11, %c0_12], %12 {strides = array<i32>} : memref<16x256xf32, #tpu.memory_space<vmem>>, vector<16x256xf32>,
    } else {
    }
    %c0 = arith.constant 0 : index
    %c0_1 = arith.constant 0 : index
    %3 = vector.load %arg8[%c0, %c0_1] : memref<16x256xf32, #tpu.memory_space<vmem>>, vector<16x256xf32>
    %c0_2 = arith.constant 0 : index
    %c0_3 = arith.constant 0 : index
    %4 = vector.load %arg3[%c0_2, %c0_3] : memref<16x1024xbf16, #tpu.memory_space<vmem>>, vector<16x1024xbf16>
    %c0_4 = arith.constant 0 : index
    %c0_5 = arith.constant 0 : index
    %5 = vector.load %arg4[%c0_4, %c0_5] : memref<1024x256xbf16, #tpu.memory_space<vmem>>, vector<1024x256xbf16>
    %cst = arith.constant dense<0.000000e+00> : vector<16x256xf32>
    %6 = tpu.matmul %4, %5, %cst {dimension_numbers = #tpu.dot_dimension_numbers<[1], [0], [0], [1], [0, 0, 1, 1], [], []>} : vector<16x1024xbf16>, vector<1024x256xbf16>, vector<16x256xf32> -> vector<16x256xf32>
    %7 = arith.addf %3, %6 : vector<16x256xf32>
    %c0_6 = arith.constant 0 : index
    %c0_7 = arith.constant 0 : index
    %8 = vector.load %arg8[%c0_6, %c0_7] : memref<16x256xf32, #tpu.memory_space<vmem>>, vector<16x256xf32>
    tpu.vector_store %arg8[%c0_6, %c0_7], %7 {strides = array<i32>} : memref<16x256xf32, #tpu.memory_space<vmem>>, vector<16x256xf32>,
    %c0_i32_8 = arith.constant 0 : i32
    %9 = arith.cmpi eq, %arg2, %c0_i32_8 : i32
    %10 = arith.extui %9 : i1 to i32
    %c0_i32_9 = arith.constant 0 : i32
    %11 = arith.cmpi ne, %10, %c0_i32_9 : i32
    scf.if %11 {
      %c0_10 = arith.constant 0 : index
      %c0_11 = arith.constant 0 : index
      %12 = vector.load %arg8[%c0_10, %c0_11] : memref<16x256xf32, #tpu.memory_space<vmem>>, vector<16x256xf32>
      %c0_12 = arith.constant 0 : index
      %c0_13 = arith.constant 0 : index
      %13 = vector.load %arg5[%c0_12, %c0_13] : memref<1x256xf32, #tpu.memory_space<vmem>>, vector<1x256xf32>
      %14 = vector.broadcast %13 : vector<1x256xf32> to vector<16x256xf32>
      %15 = arith.addf %12, %14 : vector<16x256xf32>
      %c0_14 = arith.constant 0 : index
      %c0_15 = arith.constant 0 : index
      %16 = vector.load %arg6[%c0_14, %c0_15] : memref<16x256xbf16, #tpu.memory_space<vmem>>, vector<16x256xbf16>
      %17 = arith.extf %16 : vector<16x256xbf16> to vector<16x256xf32>
      %18 = arith.addf %15, %17 : vector<16x256xf32>
      %19 = arith.truncf %18 : vector<16x256xf32> to vector<16x256xbf16>
      %c0_16 = arith.constant 0 : index
      %c0_17 = arith.constant 0 : index
      %20 = vector.load %arg7[%c0_16, %c0_17] : memref<16x256xbf16, #tpu.memory_space<vmem>>, vector<16x256xbf16>
      tpu.vector_store %arg7[%c0_16, %c0_17], %19 {strides = array<i32>} : memref<16x256xbf16, #tpu.memory_space<vmem>>, vector<16x256xbf16>,
    } else {
    }
    return
  }
  func.func @transform_0(%arg0: i32, %arg1: i32, %arg2: i32) -> (i32, i32) {
    %c0_i32 = arith.constant 0 : i32
    return %arg0, %arg2 : i32, i32
  }
  func.func @transform_1(%arg0: i32, %arg1: i32, %arg2: i32) -> (i32, i32) {
    %c0_i32 = arith.constant 0 : i32
    return %arg2, %arg1 : i32, i32
  }
  func.func @transform_2(%arg0: i32, %arg1: i32, %arg2: i32) -> (i32, i32) {
    %c0_i32 = arith.constant 0 : i32
    %c0_i32_0 = arith.constant 0 : i32
    return %c0_i32, %arg1 : i32, i32
  }
  func.func @transform_3(%arg0: i32, %arg1: i32, %arg2: i32) -> (i32, i32) {
    %c0_i32 = arith.constant 0 : i32
    return %arg0, %arg1 : i32, i32
  }
  func.func @transform_4(%arg0: i32, %arg1: i32, %arg2: i32) -> (i32, i32) {
    %c0_i32 = arith.constant 0 : i32
    return %arg0, %arg1 : i32, i32
  }
}

module attributes {stable_mosaic.version = 11 : i64} {
  func.func @_linear_kernel(%arg0: i32, %arg1: i32, %arg2: i32, %arg3: memref<16x256xbf16, #tpu.memory_space<vmem>>, %arg4: memref<256x256xbf16, #tpu.memory_space<vmem>>, %arg5: memref<1x256xf32, #tpu.memory_space<vmem>>, %arg6: memref<16x256xbf16, #tpu.memory_space<vmem>>, %arg7: memref<16x256xf32, #tpu.memory_space<vmem>>) attributes {dimension_semantics = [#tpu.dimension_semantics<parallel>, #tpu.dimension_semantics<parallel>, #tpu.dimension_semantics<arbitrary>], iteration_bounds = array<i64: 1, 3, 1>, scalar_prefetch = 0 : i64, scratch_operands = 1 : i64, tpu.core_type = #tpu.core_type<tc>, window_params = [{transform_indices = @transform_0, window_bounds = array<i64: 16, 256>}, {transform_indices = @transform_1, window_bounds = array<i64: 256, 256>}, {transform_indices = @transform_2, window_bounds = array<i64: 1, 256>}, {transform_indices = @transform_3, window_bounds = array<i64: 16, 256>}]} {
    %c0_i32 = arith.constant 0 : i32
    %0 = arith.cmpi eq, %arg2, %c0_i32 : i32
    %1 = arith.extui %0 : i1 to i32
    %c0_i32_0 = arith.constant 0 : i32
    %2 = arith.cmpi ne, %1, %c0_i32_0 : i32
    scf.if %2 {
      %cst_10 = arith.constant 0.000000e+00 : f32
      %12 = vector.broadcast %cst_10 : f32 to vector<16x256xf32>
      %c0_11 = arith.constant 0 : index
      %c0_12 = arith.constant 0 : index
      %13 = vector.load %arg7[%c0_11, %c0_12] : memref<16x256xf32, #tpu.memory_space<vmem>>, vector<16x256xf32>
      tpu.vector_store %arg7[%c0_11, %c0_12], %12 {strides = array<i32>} : memref<16x256xf32, #tpu.memory_space<vmem>>, vector<16x256xf32>,
    } else {
    }
    %c0 = arith.constant 0 : index
    %c0_1 = arith.constant 0 : index
    %3 = vector.load %arg7[%c0, %c0_1] : memref<16x256xf32, #tpu.memory_space<vmem>>, vector<16x256xf32>
    %c0_2 = arith.constant 0 : index
    %c0_3 = arith.constant 0 : index
    %4 = vector.load %arg3[%c0_2, %c0_3] : memref<16x256xbf16, #tpu.memory_space<vmem>>, vector<16x256xbf16>
    %c0_4 = arith.constant 0 : index
    %c0_5 = arith.constant 0 : index
    %5 = vector.load %arg4[%c0_4, %c0_5] : memref<256x256xbf16, #tpu.memory_space<vmem>>, vector<256x256xbf16>
    %cst = arith.constant dense<0.000000e+00> : vector<16x256xf32>
    %6 = tpu.matmul %4, %5, %cst {dimension_numbers = #tpu.dot_dimension_numbers<[1], [0], [0], [1], [0, 0, 1, 1], [], []>} : vector<16x256xbf16>, vector<256x256xbf16>, vector<16x256xf32> -> vector<16x256xf32>
    %7 = arith.addf %3, %6 : vector<16x256xf32>
    %c0_6 = arith.constant 0 : index
    %c0_7 = arith.constant 0 : index
    %8 = vector.load %arg7[%c0_6, %c0_7] : memref<16x256xf32, #tpu.memory_space<vmem>>, vector<16x256xf32>
    tpu.vector_store %arg7[%c0_6, %c0_7], %7 {strides = array<i32>} : memref<16x256xf32, #tpu.memory_space<vmem>>, vector<16x256xf32>,
    %c0_i32_8 = arith.constant 0 : i32
    %9 = arith.cmpi eq, %arg2, %c0_i32_8 : i32
    %10 = arith.extui %9 : i1 to i32
    %c0_i32_9 = arith.constant 0 : i32
    %11 = arith.cmpi ne, %10, %c0_i32_9 : i32
    scf.if %11 {
      %c0_10 = arith.constant 0 : index
      %c0_11 = arith.constant 0 : index
      %12 = vector.load %arg7[%c0_10, %c0_11] : memref<16x256xf32, #tpu.memory_space<vmem>>, vector<16x256xf32>
      %c0_12 = arith.constant 0 : index
      %c0_13 = arith.constant 0 : index
      %13 = vector.load %arg5[%c0_12, %c0_13] : memref<1x256xf32, #tpu.memory_space<vmem>>, vector<1x256xf32>
      %14 = vector.broadcast %13 : vector<1x256xf32> to vector<16x256xf32>
      %15 = arith.addf %12, %14 : vector<16x256xf32>
      %16 = arith.truncf %15 : vector<16x256xf32> to vector<16x256xbf16>
      %c0_14 = arith.constant 0 : index
      %c0_15 = arith.constant 0 : index
      %17 = vector.load %arg6[%c0_14, %c0_15] : memref<16x256xbf16, #tpu.memory_space<vmem>>, vector<16x256xbf16>
      tpu.vector_store %arg6[%c0_14, %c0_15], %16 {strides = array<i32>} : memref<16x256xbf16, #tpu.memory_space<vmem>>, vector<16x256xbf16>,
    } else {
    }
    return
  }
  func.func @transform_0(%arg0: i32, %arg1: i32, %arg2: i32) -> (i32, i32) {
    %c0_i32 = arith.constant 0 : i32
    return %arg0, %arg2 : i32, i32
  }
  func.func @transform_1(%arg0: i32, %arg1: i32, %arg2: i32) -> (i32, i32) {
    %c0_i32 = arith.constant 0 : i32
    return %arg2, %arg1 : i32, i32
  }
  func.func @transform_2(%arg0: i32, %arg1: i32, %arg2: i32) -> (i32, i32) {
    %c0_i32 = arith.constant 0 : i32
    %c0_i32_0 = arith.constant 0 : i32
    return %c0_i32, %arg1 : i32, i32
  }
  func.func @transform_3(%arg0: i32, %arg1: i32, %arg2: i32) -> (i32, i32) {
    %c0_i32 = arith.constant 0 : i32
    return %arg0, %arg1 : i32, i32
  }
}

module attributes {stable_mosaic.version = 11 : i64} {
  func.func @_layernorm_kernel(%arg0: i32, %arg1: memref<16x256xbf16, #tpu.memory_space<vmem>>, %arg2: memref<1x256xf32, #tpu.memory_space<vmem>>, %arg3: memref<1x256xf32, #tpu.memory_space<vmem>>, %arg4: memref<16x256xf32, #tpu.memory_space<vmem>>) attributes {dimension_semantics = [#tpu.dimension_semantics<parallel>], iteration_bounds = array<i64: 1>, scalar_prefetch = 0 : i64, scratch_operands = 0 : i64, tpu.core_type = #tpu.core_type<tc>, window_params = [{transform_indices = @transform_0, window_bounds = array<i64: 16, 256>}, {pipeline_mode = #tpu.pipeline_mode<synchronous>, transform_indices = @transform_1, window_bounds = array<i64: 1, 256>}, {pipeline_mode = #tpu.pipeline_mode<synchronous>, transform_indices = @transform_2, window_bounds = array<i64: 1, 256>}, {transform_indices = @transform_3, window_bounds = array<i64: 16, 256>}]} {
    %c0 = arith.constant 0 : index
    %c0_0 = arith.constant 0 : index
    %0 = vector.load %arg1[%c0, %c0_0] : memref<16x256xbf16, #tpu.memory_space<vmem>>, vector<16x256xbf16>
    %1 = arith.extf %0 : vector<16x256xbf16> to vector<16x256xf32>
    %cst = arith.constant dense<0.000000e+00> : vector<16xf32>
    %2 = vector.multi_reduction <add>, %1, %cst [1] : vector<16x256xf32> to vector<16xf32>
    %3 = vector.shape_cast %2 : vector<16xf32> to vector<16x1xf32>
    %cst_1 = arith.constant 2.560000e+02 : f32
    %4 = vector.broadcast %cst_1 : f32 to vector<16x1xf32>
    %5 = arith.divf %3, %4 : vector<16x1xf32>
    %6 = arith.mulf %1, %1 : vector<16x256xf32>
    %cst_2 = arith.constant dense<0.000000e+00> : vector<16xf32>
    %7 = vector.multi_reduction <add>, %6, %cst_2 [1] : vector<16x256xf32> to vector<16xf32>
    %8 = vector.shape_cast %7 : vector<16xf32> to vector<16x1xf32>
    %cst_3 = arith.constant 2.560000e+02 : f32
    %9 = vector.broadcast %cst_3 : f32 to vector<16x1xf32>
    %10 = arith.divf %8, %9 : vector<16x1xf32>
    %11 = arith.mulf %5, %5 : vector<16x1xf32>
    %12 = arith.subf %10, %11 : vector<16x1xf32>
    %13 = vector.broadcast %5 : vector<16x1xf32> to vector<16x256xf32>
    %14 = arith.subf %1, %13 : vector<16x256xf32>
    %cst_4 = arith.constant 9.99999974E-6 : f32
    %15 = vector.broadcast %cst_4 : f32 to vector<16x1xf32>
    %16 = arith.addf %12, %15 : vector<16x1xf32>
    %17 = math.rsqrt %16 : vector<16x1xf32>
    %18 = vector.broadcast %17 : vector<16x1xf32> to vector<16x256xf32>
    %19 = arith.mulf %14, %18 : vector<16x256xf32>
    %c0_5 = arith.constant 0 : index
    %c0_6 = arith.constant 0 : index
    %20 = vector.load %arg2[%c0_5, %c0_6] : memref<1x256xf32, #tpu.memory_space<vmem>>, vector<1x256xf32>
    %21 = vector.broadcast %20 : vector<1x256xf32> to vector<16x256xf32>
    %22 = arith.mulf %19, %21 : vector<16x256xf32>
    %c0_7 = arith.constant 0 : index
    %c0_8 = arith.constant 0 : index
    %23 = vector.load %arg3[%c0_7, %c0_8] : memref<1x256xf32, #tpu.memory_space<vmem>>, vector<1x256xf32>
    %24 = vector.broadcast %23 : vector<1x256xf32> to vector<16x256xf32>
    %25 = arith.addf %22, %24 : vector<16x256xf32>
    %c0_9 = arith.constant 0 : index
    %c0_10 = arith.constant 0 : index
    %26 = vector.load %arg4[%c0_9, %c0_10] : memref<16x256xf32, #tpu.memory_space<vmem>>, vector<16x256xf32>
    tpu.vector_store %arg4[%c0_9, %c0_10], %25 {strides = array<i32>} : memref<16x256xf32, #tpu.memory_space<vmem>>, vector<16x256xf32>,
    return
  }
  func.func @transform_0(%arg0: i32) -> (i32, i32) {
    %c0_i32 = arith.constant 0 : i32
    %c0_i32_0 = arith.constant 0 : i32
    return %arg0, %c0_i32 : i32, i32
  }
  func.func @transform_1(%arg0: i32) -> (i32, i32) {
    %c0_i32 = arith.constant 0 : i32
    %c0_i32_0 = arith.constant 0 : i32
    %c0_i32_1 = arith.constant 0 : i32
    return %c0_i32, %c0_i32_0 : i32, i32
  }
  func.func @transform_2(%arg0: i32) -> (i32, i32) {
    %c0_i32 = arith.constant 0 : i32
    %c0_i32_0 = arith.constant 0 : i32
    %c0_i32_1 = arith.constant 0 : i32
    return %c0_i32, %c0_i32_0 : i32, i32
  }
  func.func @transform_3(%arg0: i32) -> (i32, i32) {
    %c0_i32 = arith.constant 0 : i32
    %c0_i32_0 = arith.constant 0 : i32
    return %arg0, %c0_i32 : i32, i32
  }
}

</mosaic_0001>

<bundles_post_ra>
// kernel: bloom_forward.13
= control target key start
LH: loop header
LB: loop body
LE: loop exit
PB: predicated region body
PF: predicated region fallthrough
CT: control target
= control target key end

     0   :  { %v57_v20 = vlaneseq  ;;  %s157_s0 = inlined_call_operand.vmem [shape: f32[16,256], index: 0, kind: input, shape index: {}]   ;;  %s158_s1 = inlined_call_operand.vmem [shape: f32[1,256], index: 1, kind: input, shape index: {}]   ;;  %s159_s2 = inlined_call_operand.vmem [shape: f32[1,256], index: 2, kind: input, shape index: {}]   ;;  %s160_s3 = inlined_call_operand.vmem [shape: bf16[16,256], index: 3, kind: output, shape index: {}]  }
   0x1   :  { %v14_v0 = vld [vmem:[%s157_s0] sm:$0xff]  ;;  %v15_v1 = vld [vmem:[%s157_s0 + $0x8] sm:$0xff]  ;;  %v16_v2 = vld [vmem:[%s157_s0 + $0x10] sm:$0xff] }
   0x2   :  { %v18_v3 = vadd.f32 %v15_v1, %v14_v0  ;;  %v27_v4 = vmul.f32 %v14_v0, %v14_v0  ;;  %v28_v5 = vmul.f32 %v15_v1, %v15_v1  ;;  %v17_v6 = vld [vmem:[%s157_s0 + $0x18] sm:$0xff]  ;;  %v29_v7 = vmul.f32 %v16_v2, %v16_v2  ;;  %v55_v30 = vld [vmem:[%s158_s1] sm:$0x3] }
   0x3   :  { %v30_v8 = vmul.f32 %v17_v6, %v17_v6  ;;  %v21_v10 = vadd.f32 %v17_v6, %v16_v2  ;;  %v58_v25 = vshrl.u32 %v57_v20, 7  ;;  %v71_v31 = vld [vmem:[%s159_s2] sm:$0x3] }
   0x4   :  { %19 = vadd.xlane.f32.xlu0 %v18_v3  ;;  %v31_v9 = vadd.f32 %v28_v5, %v27_v4 }
   0x5   :  { %v34_v11 = vadd.f32 %v30_v8, %v29_v7  ;;  %v59_v28 = vsub.s32 0, %v58_v25  ;;  %v63_v29 = vsub.s32 1, %v58_v25 }
   0x6   :  { %32 = vadd.xlane.f32.xlu1 %v31_v9 }
   0x7   :  { %v60_v34 = vrot.slane %v55_v30, %v59_v28  ;;  %v64_v35 = vrot.slane %v55_v30, %v63_v29  ;;  %v76_v37 = vrot.slane %v71_v31, %v59_v28  ;;  %v80_v38 = vrot.slane %v71_v31, %v63_v29 }
   0x8   :  { %22 = vadd.xlane.f32.xlu0 %v21_v10 }
   0xa   :  { %35 = vadd.xlane.f32.xlu1 %v34_v11 }
  0x91   :  { %v20_v12 = vpop.xlane.xlu0 %19 }
  0x92   :  { %v25_v13 = vmul.f32 0.00390625, %v20_v12 }
  0x93   :  { %v33_v14 = vpop.xlane.xlu1 %32 }
  0x94   :  { %v37_v15 = vmul.f32 0.00390625, %v33_v14  ;;  %v39_v16 = vmul.f32 %v25_v13, %v25_v13  ;;  %v43_v32 = vsub.f32 %v14_v0, %v25_v13  ;;  %v44_v33 = vsub.f32 %v15_v1, %v25_v13 }
  0x95   :  { %v23_v17 = vpop.xlane.xlu0 %22 }
  0x96   :  { %v41_v18 = vsub.f32 %v37_v15, %v39_v16  ;;  %v26_v19 = vmul.f32 0.00390625, %v23_v17 }
  0x97   :  { %v36_v21 = vpop.xlane.xlu1 %35 }
  0x98   :  { %v47_v22 = vadd.f32 1e-05, %v41_v18  ;;  %v38_v23 = vmul.f32 0.00390625, %v36_v21  ;;  %v40_v24 = vmul.f32 %v26_v19, %v26_v19  ;;  %v45_v43 = vsub.f32 %v16_v2, %v26_v19 }
  0x99   :  { %v46_v44 = vsub.f32 %v17_v6, %v26_v19 }
  0x9a   :  { %109 = vrsqrt.f32 %v47_v22  ;;  %v42_v26 = vsub.f32 %v38_v23, %v40_v24 }
  0x9c   :  { %v48_v27 = vadd.f32 1e-05, %v42_v26 }
  0x9e   :  { %111 = vrsqrt.f32 %v48_v27 }
  0xa4   :  { %v110_v36 = vpop.eup %109 }
  0xa5   :  { %v51_v39 = vmul.f32 %v110_v36, %v43_v32  ;;  %v52_v40 = vmul.f32 %v110_v36, %v44_v33 }
  0xa7   :  { %v67_v41 = vmul.f32 %v60_v34, %v51_v39  ;;  %v68_v42 = vmul.f32 %v64_v35, %v52_v40 }
  0xa8   :  { %v112_v45 = vpop.eup %111 }
  0xa9   :  { %v83_v46 = vadd.f32 %v76_v37, %v67_v41  ;;  %v84_v47 = vadd.f32 %v80_v38, %v68_v42  ;;  %v53_v48 = vmul.f32 %v112_v45, %v45_v43  ;;  %v54_v49 = vmul.f32 %v112_v45, %v46_v44 }
  0xab   :  { %v107_v50 = vpack.c.bf16 %v84_v47, %v83_v46  ;;  %v69_v51 = vmul.f32 %v60_v34, %v53_v48  ;;  %v70_v52 = vmul.f32 %v64_v35, %v54_v49 }
  0xad   :  { %99 = vst [vmem:[%s160_s3] sm:$0xff] %v107_v50  ;;  %v85_v53 = vadd.f32 %v76_v37, %v69_v51  ;;  %v86_v54 = vadd.f32 %v80_v38, %v70_v52 }
  0xaf   :  { %v108_v55 = vpack.c.bf16 %v86_v54, %v85_v53 }
  0xb1   :  { %100 = vst [vmem:[%s160_s3 + $0x8] sm:$0xff] %v108_v55 }

// kernel: bloom_forward.14
= control target key start
LH: loop header
LB: loop body
LE: loop exit
PB: predicated region body
PF: predicated region fallthrough
CT: control target
= control target key end

     0   :  { %v59_v22 = vlaneseq  ;;  %s153_s0 = inlined_call_operand.vmem [shape: bf16[16,256], index: 0, kind: input, shape index: {}]   ;;  %s154_s1 = inlined_call_operand.vmem [shape: f32[1,256], index: 1, kind: input, shape index: {}]   ;;  %s155_s2 = inlined_call_operand.vmem [shape: f32[1,256], index: 2, kind: input, shape index: {}]   ;;  %s156_s3 = inlined_call_operand.vmem [shape: bf16[16,256], index: 3, kind: output, shape index: {}]  }
   0x1   :  { %v14_v0 = vld [vmem:[%s153_s0] sm:$0xff]  ;;  %v15_v1 = vld [vmem:[%s153_s0 + $0x8] sm:$0xff] }
   0x2   :  { %v16_v2 = vunpack.c.l.bf16 %v14_v0  ;;  %v17_v3 = vunpack.c.h.bf16 %v14_v0  ;;  %v18_v4 = vunpack.c.l.bf16 %v15_v1  ;;  %v19_v5 = vunpack.c.h.bf16 %v15_v1  ;;  %v57_v32 = vld [vmem:[%s154_s1] sm:$0x3] }
   0x3   :  { %v60_v27 = vshrl.u32 %v59_v22, 7  ;;  %v73_v33 = vld [vmem:[%s155_s2] sm:$0x3] }
   0x4   :  { %v20_v6 = vadd.f32 %v17_v3, %v16_v2  ;;  %v29_v7 = vmul.f32 %v16_v2, %v16_v2  ;;  %v30_v8 = vmul.f32 %v17_v3, %v17_v3  ;;  %v31_v9 = vmul.f32 %v18_v4, %v18_v4 }
   0x5   :  { %v32_v10 = vmul.f32 %v19_v5, %v19_v5  ;;  %v23_v12 = vadd.f32 %v19_v5, %v18_v4  ;;  %v61_v30 = vsub.s32 0, %v60_v27  ;;  %v65_v31 = vsub.s32 1, %v60_v27 }
   0x6   :  { %21 = vadd.xlane.f32.xlu0 %v20_v6  ;;  %v33_v11 = vadd.f32 %v30_v8, %v29_v7 }
   0x7   :  { %v36_v13 = vadd.f32 %v32_v10, %v31_v9  ;;  %v62_v36 = vrot.slane %v57_v32, %v61_v30  ;;  %v66_v37 = vrot.slane %v57_v32, %v65_v31  ;;  %v78_v39 = vrot.slane %v73_v33, %v61_v30 }
   0x8   :  { %34 = vadd.xlane.f32.xlu1 %v33_v11  ;;  %v82_v40 = vrot.slane %v73_v33, %v65_v31 }
   0xa   :  { %24 = vadd.xlane.f32.xlu0 %v23_v12 }
   0xc   :  { %37 = vadd.xlane.f32.xlu1 %v36_v13 }
  0x93   :  { %v22_v14 = vpop.xlane.xlu0 %21 }
  0x94   :  { %v27_v15 = vmul.f32 0.00390625, %v22_v14 }
  0x95   :  { %v35_v16 = vpop.xlane.xlu1 %34 }
  0x96   :  { %v39_v17 = vmul.f32 0.00390625, %v35_v16  ;;  %v41_v18 = vmul.f32 %v27_v15, %v27_v15  ;;  %v45_v34 = vsub.f32 %v16_v2, %v27_v15  ;;  %v46_v35 = vsub.f32 %v17_v3, %v27_v15 }
  0x97   :  { %v25_v19 = vpop.xlane.xlu0 %24 }
  0x98   :  { %v43_v20 = vsub.f32 %v39_v17, %v41_v18  ;;  %v28_v21 = vmul.f32 0.00390625, %v25_v19 }
  0x99   :  { %v38_v23 = vpop.xlane.xlu1 %37 }
  0x9a   :  { %v49_v24 = vadd.f32 1e-05, %v43_v20  ;;  %v40_v25 = vmul.f32 0.00390625, %v38_v23  ;;  %v42_v26 = vmul.f32 %v28_v21, %v28_v21  ;;  %v47_v45 = vsub.f32 %v18_v4, %v28_v21 }
  0x9b   :  { %v48_v46 = vsub.f32 %v19_v5, %v28_v21 }
  0x9c   :  { %111 = vrsqrt.f32 %v49_v24  ;;  %v44_v28 = vsub.f32 %v40_v25, %v42_v26 }
  0x9e   :  { %v50_v29 = vadd.f32 1e-05, %v44_v28 }
  0xa0   :  { %113 = vrsqrt.f32 %v50_v29 }
  0xa6   :  { %v112_v38 = vpop.eup %111 }
  0xa7   :  { %v53_v41 = vmul.f32 %v112_v38, %v45_v34  ;;  %v54_v42 = vmul.f32 %v112_v38, %v46_v35 }
  0xa9   :  { %v69_v43 = vmul.f32 %v62_v36, %v53_v41  ;;  %v70_v44 = vmul.f32 %v66_v37, %v54_v42 }
  0xaa   :  { %v114_v47 = vpop.eup %113 }
  0xab   :  { %v85_v48 = vadd.f32 %v78_v39, %v69_v43  ;;  %v86_v49 = vadd.f32 %v82_v40, %v70_v44  ;;  %v55_v50 = vmul.f32 %v114_v47, %v47_v45  ;;  %v56_v51 = vmul.f32 %v114_v47, %v48_v46 }
  0xad   :  { %v109_v52 = vpack.c.bf16 %v86_v49, %v85_v48  ;;  %v71_v53 = vmul.f32 %v62_v36, %v55_v50  ;;  %v72_v54 = vmul.f32 %v66_v37, %v56_v51 }
  0xaf   :  { %101 = vst [vmem:[%s156_s3] sm:$0xff] %v109_v52  ;;  %v87_v55 = vadd.f32 %v78_v39, %v71_v53  ;;  %v88_v56 = vadd.f32 %v82_v40, %v72_v54 }
  0xb1   :  { %v110_v57 = vpack.c.bf16 %v88_v56, %v87_v55 }
  0xb3   :  { %102 = vst [vmem:[%s156_s3 + $0x8] sm:$0xff] %v110_v57 }

// kernel: bloom_forward.15
= control target key start
LH: loop header
LB: loop body
LE: loop exit
PB: predicated region body
PF: predicated region fallthrough
CT: control target
= control target key end

     0   :  { %8 = vsyncpa [#allocation4], 0  ;;  %s1189_s0 = inlined_call_operand.vmem [shape: bf16[16,256], index: 0, kind: input, shape index: {}]   ;;  %s1190_s1 = inlined_call_operand.hbm [shape: bf16[256,768], index: 1, kind: input, shape index: {}]   ;;  %s1191_s2 = inlined_call_operand.vmem [shape: f32[1,768], index: 2, kind: input, shape index: {}]   ;;  %s1192_s3 = inlined_call_operand.vmem [shape: bf16[16,768], index: 3, kind: output, shape index: {}]  }
   0x1   :  { %10 = vsyncpa [#allocation4 + $0x1], 0  ;;  %s1009_s12 = smov 0   ;;  %s1011_s13 = smov 0  }
   0x2   :  { %s1013_s14 = smov 0   ;;  %s1015_s15 = smov 0  }
   0x3   :  { %s1017_s16 = smov 0   ;;  %s1019_s17 = smov 0  }
   0x4 LB: > { %s737_s18 = sadd.s32 4294967295, %s983_s17   ;;  %s31_s19 = sadd.s32 1, %s979_s16  ;;  %s983_s17 = sphi %s1019_s17, %s16_s17   ;;  %s979_s16 = sphi %s1017_s16, %s1203_s16   ;;  %s975_s15 = sphi %s1015_s15, %s1202_s15   ;;  %s971_s14 = sphi %s1013_s14, %s1201_s14   ;;  %s967_s13 = sphi %s1011_s13, %s1200_s13   ;;  %s963_s12 = sphi %s1009_s12, %s1199_s12  }
   0x5   : > { %p33_p0 = scmp.ge.s32.totalorder %s31_s19, 3  ;;  %s72_s20 = sadd.s32 1, %s971_s14 }
   0x6   : > { %p79_p1 = scmp.ne.s32.totalorder %s971_s14, %s967_s13  ;;  %p80_p2 = scmp.eq.s32.totalorder %s983_s17, 0 }
   0x7   : > { %s1205_s19 = smov (%p33_p0, %s31_s19), 0  ;;  %p85_p4 = scmp.ne.s32.totalorder %s967_s13, %s963_s12 }
   0x8   : > { %p1045_p3 = por %p80_p2, %p79_p1  ;;  %s68_s22 = ssub.s32 %s979_s16, %s1205_s19 }
   0x9   : > { %p86_p5 = scmp.eq.s32.totalorder %s737_s18, 0  ;;  %p70_p6 = scmp.eq.s32.totalorder %s68_s22, 0 }
   0xa   : > { %p137_p7 = scmp.eq.s32.totalorder %s737_s18, 2  ;;  %p800_p10 = scmp.lt.s32.totalorder %s983_s17, 3 }
   0xb   : > { %p1052_p8 = por %p86_p5, %p85_p4  ;;  %s178_s26 = sand.u32 1, %s971_s14  }
   0xc   : > { %s1057_s24 = scalar_select %p70_p6, %s971_s14, %s72_s20  }
   0xd   : > { %p1059_p9 = por %p137_p7, %p79_p1  ;;  %s790_s27 = sshll.u32 %s979_s16, 7 }
   0xe   : > { %s742_s28 = sshll.u32 %s178_s26, 8  ;;  %s1069_s4 = scalar_lea.hbm %s1190_s1, %s790_s27 }
   0xf   : > { %s1195_s25 = scalar_select %p1059_p9, 1, 0 }
  0x10   : > { %s182_s5 = scalar_lea.vmem [#allocation3], %s742_s28  ;;  %p1073_p11 = pnand %p800_p10, %p1045_p3 }
  0x11   : > { %s192_s6 = sshll.u32 %s182_s5, 4  ;;  %s1080_s8 = scalar_lea.sflag [#allocation4], %s178_s26  ;;  %s1077_s6 = int_to_ptr.vmem [resolvable:$true] %s192_s6 }
  0x12   : > { %s903_s9 = scalar_lea.hbm %s1069_s4, 4096  ;;  %p905_p0 = pneg %p1073_p11 }
  0x13   : > { %p904_p13 = scmp.ne.s32.totalorder %s1069_s4, %s903_s9  ;;  %s908_s12 = scalar_lea.hbm %s1190_s1, 12288 }
  0x14   : > { %p909_p3 = scmp.lt.u32.totalorder %s1069_s4, %s1190_s1  ;;  %p910_p4 = scmp.lt.u32.totalorder %s908_s12, %s903_s9 }
  0x15   : > { %p906_p1 = pnand %p905_p0, %p904_p13  ;;  %p912_p6 = scmp.lt.u32.totalorder %s903_s9, %s1069_s4 }
  0x16   : > { %p911_p5 = por %p910_p4, %p909_p3 }
  0x17   : > { %p907_p2 = pneg %p906_p1 }
  0x18   : > { %p913_p7 = por %p912_p6, %p911_p5 }
  0x1a   : > { %p914_p10 = pnand %p913_p7, %p907_p2 }
  0x1c   : > { %917 = shalt.err (!%p914_p10)
}
  0x1d   : > { %s918_s21 = scalar_lea.vmem %s1077_s6, 4096  ;;  %s985_s22 = smov [#allocation3]  }
  0x1e   : > { %p919_p13 = scmp.ne.s32.totalorder %s1077_s6, %s918_s21  ;;  %s923_s26 = sshll.u32 %s985_s22, 4  ;;  %s924_s26 = int_to_ptr.vmem [resolvable:$false] %s923_s26 }
  0x1f   : > { %s925_s27 = scalar_lea.vmem %s924_s26, 8192  ;;  %p926_p9 = scmp.lt.s32.totalorder %s1077_s6, %s924_s26 }
  0x20   : > { %p921_p1 = pnand %p919_p13, %p905_p0  ;;  %p927_p3 = scmp.lt.s32.totalorder %s925_s27, %s918_s21 }
  0x22   : > { %p922_p12 = pneg %p921_p1  ;;  %p928_p4 = por %p927_p3, %p926_p9 }
  0x24   : > { %p929_p5 = pnand %p928_p4, %p922_p12 }
  0x26   : > { %932 = shalt.err (!%p929_p5)
}
  0x27   : > { %s986_s28 = smov 384   ;;  %s987_s29 = smov 128  }
  0x28   : > { %s988_s30 = smov 8   ;;  %p208_p0 = scmp.lt.s32.totalorder %s983_s17, 4 }
  0x29   : > { %799 = dma.hbm_to_vmem [thread:$0]  (!%p1073_p11), %s1069_s4, 4096, %s1077_s6, %s1080_s8, %s986_s28, %s987_s29, %s988_s30  }
  0x2a   : > { %p1197_p2 = scmp.ge.s32.totalorder %s983_s17, 1 }
  0x2c   : > { %p209_p6 = pnand %p1197_p2, %p208_p0 }
  0x2d   : > { %s1112_s5 = sand.u32 (!%p209_p6), 1, %s967_s13  }
  0x2e   : > { %212 = sbr.rel (%p209_p6) target bundleno = 347 (0x15b), region = 32  ;;  %s746_s9 = sshll.u32 (!%p209_p6), %s1112_s5, 8 }
  0x2f   : > { %s215_s10 = scalar_lea.sflag (!%p209_p6), [#allocation4], %s1112_s5  ;;  %s1116_s11 = scalar_lea.vmem (!%p209_p6), [#allocation3], %s746_s9 }
  0x35   : > { %958 = dma.done.wait (%p1052_p8), %s215_s10, 4096  }
  0x36   : > { %960 = vsyncadd (%p1052_p8), %s215_s10, 4294963200  ;;  %v852_v0 = vld [vmem:[%s1116_s11 + $0x4] ss:$8 sps:$4 sm:$0xff]   ;;  %v854_v1 = vld [vmem:[%s1116_s11] ss:$8 sps:$4 sm:$0xff]   ;;  %s748_s8 = sshll.u32 %s975_s15, 1  ;;  %v551_v34 = vlaneseq }
  0x37   : > { %491 = vmatprep.subr.bf16.mxu0 %v852_v0  ;;  %v855_v2 = vld [vmem:[%s1116_s11 + $0x14] ss:$8 sps:$4 sm:$0xff]   ;;  %v857_v3 = vld [vmem:[%s1116_s11 + $0x10] ss:$8 sps:$4 sm:$0xff]   ;;  %v858_v4 = vld [vmem:[%s1116_s11 + $0x24] ss:$8 sps:$4 sm:$0xff]  }
  0x38   : > { %492 = vmatpush1.bf16.msra.mxu0 %v854_v1  ;;  %v860_v5 = vld [vmem:[%s1116_s11 + $0x20] ss:$8 sps:$4 sm:$0xff]   ;;  %v861_v6 = vld [vmem:[%s1116_s11 + $0x34] ss:$8 sps:$4 sm:$0xff]   ;;  %v863_v7 = vld [vmem:[%s1116_s11 + $0x30] ss:$8 sps:$4 sm:$0xff]  }
  0x39   : > { %493 = vmatprep.subr.bf16.mxu0 %v855_v2  ;;  %v864_v8 = vld [vmem:[%s1116_s11 + $0x44] ss:$8 sps:$4 sm:$0xff]   ;;  %v866_v9 = vld [vmem:[%s1116_s11 + $0x40] ss:$8 sps:$4 sm:$0xff]   ;;  %v867_v10 = vld [vmem:[%s1116_s11 + $0x54] ss:$8 sps:$4 sm:$0xff]  }
  0x3a   : > { %v869_v11 = vld [vmem:[%s1116_s11 + $0x50] ss:$8 sps:$4 sm:$0xff]   ;;  %v870_v12 = vld [vmem:[%s1116_s11 + $0x64] ss:$8 sps:$4 sm:$0xff]   ;;  %v872_v14 = vld [vmem:[%s1116_s11 + $0x60] ss:$8 sps:$4 sm:$0xff]  }
  0x3b   : > { %v902_v13 = vld [vmem:[%s1189_s0 + $0x4] ss:$8 sps:$4 sm:$0xff]   ;;  %v873_v15 = vld [vmem:[%s1116_s11 + $0x74] ss:$8 sps:$4 sm:$0xff]   ;;  %v875_v16 = vld [vmem:[%s1116_s11 + $0x70] ss:$8 sps:$4 sm:$0xff]  }
  0x3c   : > { %494 = vmatpush1.bf16.msra.mxu0 %v857_v3  ;;  %523 = vmatprep.mubr.bf16.mxu0 %v902_v13  ;;  %v876_v17 = vld [vmem:[%s1116_s11 + $0x84] ss:$8 sps:$4 sm:$0xff]   ;;  %v878_v18 = vld [vmem:[%s1116_s11 + $0x80] ss:$8 sps:$4 sm:$0xff]   ;;  %v879_v19 = vld [vmem:[%s1116_s11 + $0x94] ss:$8 sps:$4 sm:$0xff]  }
  0x3d   : > { %495 = vmatprep.subr.bf16.mxu0 %v858_v4  ;;  %v881_v20 = vld [vmem:[%s1116_s11 + $0x90] ss:$8 sps:$4 sm:$0xff]   ;;  %v882_v21 = vld [vmem:[%s1116_s11 + $0xa4] ss:$8 sps:$4 sm:$0xff]   ;;  %v884_v22 = vld [vmem:[%s1116_s11 + $0xa0] ss:$8 sps:$4 sm:$0xff]  }
  0x3e   : > { %v885_v23 = vld [vmem:[%s1116_s11 + $0xb4] ss:$8 sps:$4 sm:$0xff]   ;;  %v887_v24 = vld [vmem:[%s1116_s11 + $0xb0] ss:$8 sps:$4 sm:$0xff]   ;;  %v888_v25 = vld [vmem:[%s1116_s11 + $0xc4] ss:$8 sps:$4 sm:$0xff]  }
  0x3f   : > { %v890_v26 = vld [vmem:[%s1116_s11 + $0xc0] ss:$8 sps:$4 sm:$0xff]   ;;  %v891_v27 = vld [vmem:[%s1116_s11 + $0xd4] ss:$8 sps:$4 sm:$0xff]   ;;  %v893_v28 = vld [vmem:[%s1116_s11 + $0xd0] ss:$8 sps:$4 sm:$0xff]  }
  0x40   : > { %496 = vmatpush1.bf16.msra.mxu0 %v860_v5  ;;  %v894_v29 = vld [vmem:[%s1116_s11 + $0xe4] ss:$8 sps:$4 sm:$0xff]   ;;  %v896_v30 = vld [vmem:[%s1116_s11 + $0xe0] ss:$8 sps:$4 sm:$0xff]   ;;  %v897_v31 = vld [vmem:[%s1116_s11 + $0xf4] ss:$8 sps:$4 sm:$0xff]  }
  0x41   : > { %497 = vmatprep.subr.bf16.mxu0 %v861_v6  ;;  %v899_v32 = vld [vmem:[%s1116_s11 + $0xf0] ss:$8 sps:$4 sm:$0xff]   ;;  %v900_v33 = vld [vmem:[%s1189_s0] ss:$8 sps:$4 sm:$0xff]   ;;  %p269_p8 = scmp.lt.s32.totalorder %s748_s8, 5  ;;  %v552_v35 = vshrl.u32 %v551_v34, 7 }
  0x42   : > { %s747_s21 = sshll.u32 %s1112_s5, 4  ;;  %p1198_p9 = scmp.ne.s32.totalorder %s1195_s25, 0 }
  0x43   : > { %s1207_s8 = smov (!%p269_p8, %s748_s8), 5  ;;  %v553_v36 = vsub.s32 0, %v552_v35  ;;  %v557_v38 = vsub.s32 1, %v552_v35  ;;  %s253_s22 = scalar_lea.vmem [#allocation5], %s747_s21 }
  0x44   : > { %498 = vmatpush1.bf16.msra.mxu0 %v863_v7  ;;  %s271_s20 = scalar_lea.vmem %s1191_s2, %s1207_s8  ;;  %s793_s26 = sshll.u32 (%p1198_p9), %s975_s15, 3 }
  0x45   : > { %499 = vmatprep.subr.bf16.mxu0 %v864_v8  ;;  %v549_v37 = vld [vmem:[%s271_s20] sm:$0x3]  ;;  %s591_s29 = scalar_lea.vmem (%p1198_p9), %s1192_s3, %s793_s26 }
  0x46   : > { %v554_v39 = vrot.slane %v549_v37, %v553_v36  ;;  %v558_v40 = vrot.slane %v549_v37, %v557_v38 }
  0x48   : > { %500 = vmatpush1.bf16.msra.mxu0 %v866_v9 }
  0x49   : > { %501 = vmatprep.subr.bf16.mxu0 %v867_v10 }
  0x4c   : > { %502 = vmatpush1.bf16.msra.mxu0 %v869_v11 }
  0x4d   : > { %503 = vmatprep.subr.bf16.mxu0 %v870_v12 }
  0x50   : > { %504 = vmatpush1.bf16.msra.mxu0 %v872_v14 }
  0x51   : > { %505 = vmatprep.subr.bf16.mxu0 %v873_v15 }
  0x54   : > { %506 = vmatpush1.bf16.msra.mxu0 %v875_v16 }
  0x55   : > { %507 = vmatprep.subr.bf16.mxu0 %v876_v17 }
  0x58   : > { %508 = vmatpush1.bf16.msra.mxu0 %v878_v18 }
  0x59   : > { %509 = vmatprep.subr.bf16.mxu0 %v879_v19 }
  0x5c   : > { %510 = vmatpush1.bf16.msra.mxu0 %v881_v20 }
  0x5d   : > { %511 = vmatprep.subr.bf16.mxu0 %v882_v21 }
  0x60   : > { %512 = vmatpush1.bf16.msra.mxu0 %v884_v22 }
  0x61   : > { %513 = vmatprep.subr.bf16.mxu0 %v885_v23 }
  0x64   : > { %514 = vmatpush1.bf16.msra.mxu0 %v887_v24 }
  0x65   : > { %515 = vmatprep.subr.bf16.mxu0 %v888_v25 }
  0x68   : > { %516 = vmatpush1.bf16.msra.mxu0 %v890_v26 }
  0x69   : > { %517 = vmatprep.subr.bf16.mxu0 %v891_v27 }
  0x6c   : > { %518 = vmatpush1.bf16.msra.mxu0 %v893_v28 }
  0x6d   : > { %519 = vmatprep.subr.bf16.mxu0 %v894_v29 }
  0x70   : > { %520 = vmatpush1.bf16.msra.mxu0 %v896_v30 }
  0x71   : > { %521 = vmatprep.subr.bf16.mxu0 %v897_v31 }
  0x74   : > { %522 = vmatpush1.bf16.msra.mxu0 %v899_v32 }
  0x77   : > { %524 = vmatmul.mubr.bf16.vlgmr.msra.gmra.mrb[0].mxu0 %v900_v33 }
 0x14a   : > { %v525_v41 = vpop.f32.mrb[0].mxu0 }
 0x14b   : > { %v561_v42 = vadd.f32 %v554_v39, %v525_v41  ;;  %v527_v43 = vpop.f32.mrb[1].mxu0 }
 0x14c   : > { %v562_v44 = vadd.f32 %v558_v40, %v527_v43  ;;  %v529_v45 = vpop.f32.mrb[2].mxu0  ;;  %585 = sbr.rel (!%p1198_p9) target bundleno = 347 (0x15b), region = 48 }
 0x14d   : > { %v563_v46 = vadd.f32 %v554_v39, %v529_v45  ;;  %v531_v47 = vpop.f32.mrb[3].mxu0 }
 0x14e   : > { %v791_v48 = vpack.c.bf16 %v562_v44, %v561_v42  ;;  %v564_v49 = vadd.f32 %v558_v40, %v531_v47 }
 0x150   : > { %577 = vst [vmem:[%s253_s22] sm:$0xff] %v791_v48  ;;  %v792_v50 = vpack.c.bf16 %v564_v49, %v563_v46 }
 0x152   : > { %578 = vst [vmem:[%s253_s22 + $0x8] sm:$0xff] %v792_v50 }
 0x157   : > { %v621_v51 = vld [vmem:[%s253_s22] sm:$0xff] }
 0x158   : > { %622 = vst [vmem:[%s591_s29] sm:$0xff] %v621_v51 }
 0x159   : > { %v623_v52 = vld [vmem:[%s253_s22 + $0x8] sm:$0xff] }
 0x15a   : > { %624 = vst [vmem:[%s591_s29 + $0x18] sm:$0xff] %v623_v52 }
 0x15b PF: > { %s16_s17 = sadd.s32 1, %s983_s17   ;;  %s1199_s12 = smov %s967_s13 }
 0x15c   : > { %p13_p11 = scmp.ge.s32.totalorder %s16_s17, 5   ;;  %s1200_s13 = smov %s971_s14 }
 0x15d   : > { %s1201_s14 = smov %s1057_s24  ;;  %s1202_s15 = smov %s979_s16 }
 0x15e   : > { %s1203_s16 = smov %s1205_s19  ;;  %15 = sbr.rel (!%p13_p11) target bundleno = 4 (0x4), region = 124 }
 0x165   :  { %640 = vsyncpa [#allocation4], 1 }
 0x166   :  { %642 = vsyncpa [#allocation4 + $0x1], 1 }

// kernel: bloom_forward.17
= control target key start
LH: loop header
LB: loop body
LE: loop exit
PB: predicated region body
PF: predicated region fallthrough
CT: control target
= control target key end

     0   :  { %v301_v34 = vlaneseq  ;;  %s705_s1 = inlined_call_operand.vmem [shape: bf16[256,256], index: 1, kind: input, shape index: {}]   ;;  %s706_s0 = inlined_call_operand.vmem [shape: bf16[16,256], index: 0, kind: input, shape index: {}]   ;;  %s707_s2 = inlined_call_operand.vmem [shape: f32[1,256], index: 2, kind: input, shape index: {}]   ;;  %s708_s3 = inlined_call_operand.vmem [shape: bf16[16,256], index: 3, kind: input, shape index: {}]   ;;  %s709_s6 = inlined_call_operand.vmem [shape: bf16[16,256], index: 6, kind: output, shape index: {0}]   ;;  %s710_s4 = inlined_call_operand.vmem [shape: f32[1,256], index: 4, kind: input, shape index: {}]   ;;  %s711_s5 = inlined_call_operand.vmem [shape: f32[1,256], index: 5, kind: input, shape index: {}]   ;;  %s712_s7 = inlined_call_operand.vmem [shape: bf16[16,256], index: 7, kind: output, shape index: {1}]  }
   0x1   :  { %v471_v0 = vld [vmem:[%s705_s1 + $0x4] ss:$8 sps:$4 sm:$0xff]   ;;  %v473_v1 = vld [vmem:[%s705_s1] ss:$8 sps:$4 sm:$0xff]   ;;  %v474_v2 = vld [vmem:[%s705_s1 + $0x14] ss:$8 sps:$4 sm:$0xff]  }
   0x2   :  { %241 = vmatprep.subr.bf16.mxu0 %v471_v0  ;;  %v476_v3 = vld [vmem:[%s705_s1 + $0x10] ss:$8 sps:$4 sm:$0xff]   ;;  %v477_v4 = vld [vmem:[%s705_s1 + $0x24] ss:$8 sps:$4 sm:$0xff]   ;;  %v479_v5 = vld [vmem:[%s705_s1 + $0x20] ss:$8 sps:$4 sm:$0xff]  }
   0x3   :  { %242 = vmatpush1.bf16.msra.mxu0 %v473_v1  ;;  %v480_v6 = vld [vmem:[%s705_s1 + $0x34] ss:$8 sps:$4 sm:$0xff]   ;;  %v482_v7 = vld [vmem:[%s705_s1 + $0x30] ss:$8 sps:$4 sm:$0xff]   ;;  %v483_v8 = vld [vmem:[%s705_s1 + $0x44] ss:$8 sps:$4 sm:$0xff]  }
   0x4   :  { %243 = vmatprep.subr.bf16.mxu0 %v474_v2  ;;  %v485_v9 = vld [vmem:[%s705_s1 + $0x40] ss:$8 sps:$4 sm:$0xff]   ;;  %v486_v10 = vld [vmem:[%s705_s1 + $0x54] ss:$8 sps:$4 sm:$0xff]   ;;  %v488_v11 = vld [vmem:[%s705_s1 + $0x50] ss:$8 sps:$4 sm:$0xff]  }
   0x5   :  { %v489_v12 = vld [vmem:[%s705_s1 + $0x64] ss:$8 sps:$4 sm:$0xff]   ;;  %v491_v14 = vld [vmem:[%s705_s1 + $0x60] ss:$8 sps:$4 sm:$0xff]   ;;  %v492_v15 = vld [vmem:[%s705_s1 + $0x74] ss:$8 sps:$4 sm:$0xff]  }
   0x6   :  { %v521_v13 = vld [vmem:[%s706_s0 + $0x4] ss:$8 sps:$4 sm:$0xff]   ;;  %v494_v16 = vld [vmem:[%s705_s1 + $0x70] ss:$8 sps:$4 sm:$0xff]   ;;  %v497_v18 = vld [vmem:[%s705_s1 + $0x80] ss:$8 sps:$4 sm:$0xff]  }
   0x7   :  { %244 = vmatpush1.bf16.msra.mxu0 %v476_v3  ;;  %273 = vmatprep.mubr.bf16.mxu0 %v521_v13  ;;  %v495_v17 = vld [vmem:[%s705_s1 + $0x84] ss:$8 sps:$4 sm:$0xff]   ;;  %v498_v19 = vld [vmem:[%s705_s1 + $0x94] ss:$8 sps:$4 sm:$0xff]   ;;  %v500_v20 = vld [vmem:[%s705_s1 + $0x90] ss:$8 sps:$4 sm:$0xff]  }
   0x8   :  { %245 = vmatprep.subr.bf16.mxu0 %v477_v4  ;;  %v501_v21 = vld [vmem:[%s705_s1 + $0xa4] ss:$8 sps:$4 sm:$0xff]   ;;  %v503_v22 = vld [vmem:[%s705_s1 + $0xa0] ss:$8 sps:$4 sm:$0xff]   ;;  %v504_v23 = vld [vmem:[%s705_s1 + $0xb4] ss:$8 sps:$4 sm:$0xff]  }
   0x9   :  { %v506_v24 = vld [vmem:[%s705_s1 + $0xb0] ss:$8 sps:$4 sm:$0xff]   ;;  %v507_v25 = vld [vmem:[%s705_s1 + $0xc4] ss:$8 sps:$4 sm:$0xff]   ;;  %v509_v26 = vld [vmem:[%s705_s1 + $0xc0] ss:$8 sps:$4 sm:$0xff]  }
   0xa   :  { %v510_v27 = vld [vmem:[%s705_s1 + $0xd4] ss:$8 sps:$4 sm:$0xff]   ;;  %v512_v28 = vld [vmem:[%s705_s1 + $0xd0] ss:$8 sps:$4 sm:$0xff]   ;;  %v513_v29 = vld [vmem:[%s705_s1 + $0xe4] ss:$8 sps:$4 sm:$0xff]  }
   0xb   :  { %246 = vmatpush1.bf16.msra.mxu0 %v479_v5  ;;  %v515_v30 = vld [vmem:[%s705_s1 + $0xe0] ss:$8 sps:$4 sm:$0xff]   ;;  %v516_v31 = vld [vmem:[%s705_s1 + $0xf4] ss:$8 sps:$4 sm:$0xff]   ;;  %v518_v32 = vld [vmem:[%s705_s1 + $0xf0] ss:$8 sps:$4 sm:$0xff]  }
   0xc   :  { %247 = vmatprep.subr.bf16.mxu0 %v480_v6  ;;  %v519_v33 = vld [vmem:[%s706_s0] ss:$8 sps:$4 sm:$0xff]   ;;  %v302_v35 = vshrl.u32 %v301_v34, 7 }
   0xd   :  { %v299_v37 = vld [vmem:[%s707_s2] sm:$0x3]  ;;  %v316_v42 = vld [vmem:[%s708_s3 + $0x8] sm:$0xff] }
   0xe   :  { %v668_v36 = vsub.s32 0, %v302_v35  ;;  %v673_v38 = vsub.s32 1, %v302_v35  ;;  %v315_v39 = vld [vmem:[%s708_s3] sm:$0xff]  ;;  %v319_v48 = vunpack.c.l.bf16 %v316_v42  ;;  %v320_v51 = vunpack.c.h.bf16 %v316_v42 }
   0xf   :  { %248 = vmatpush1.bf16.msra.mxu0 %v482_v7  ;;  %v317_v43 = vunpack.c.l.bf16 %v315_v39  ;;  %v318_v45 = vunpack.c.h.bf16 %v315_v39 }
  0x10   :  { %249 = vmatprep.subr.bf16.mxu0 %v483_v8  ;;  %v304_v40 = vrot.slane %v299_v37, %v668_v36  ;;  %v308_v41 = vrot.slane %v299_v37, %v673_v38 }
  0x13   :  { %250 = vmatpush1.bf16.msra.mxu0 %v485_v9 }
  0x14   :  { %251 = vmatprep.subr.bf16.mxu0 %v486_v10 }
  0x17   :  { %252 = vmatpush1.bf16.msra.mxu0 %v488_v11 }
  0x18   :  { %253 = vmatprep.subr.bf16.mxu0 %v489_v12 }
  0x1b   :  { %254 = vmatpush1.bf16.msra.mxu0 %v491_v14 }
  0x1c   :  { %255 = vmatprep.subr.bf16.mxu0 %v492_v15 }
  0x1f   :  { %256 = vmatpush1.bf16.msra.mxu0 %v494_v16 }
  0x20   :  { %257 = vmatprep.subr.bf16.mxu0 %v495_v17 }
  0x23   :  { %258 = vmatpush1.bf16.msra.mxu0 %v497_v18 }
  0x24   :  { %259 = vmatprep.subr.bf16.mxu0 %v498_v19  ;;  %v375_v19 = vld [vmem:[%s710_s4] sm:$0x3] }
  0x27   :  { %260 = vmatpush1.bf16.msra.mxu0 %v500_v20  ;;  %v391_v20 = vld [vmem:[%s711_s5] sm:$0x3] }
  0x28   :  { %261 = vmatprep.subr.bf16.mxu0 %v501_v21  ;;  %v380_v21 = vrot.slane %v375_v19, %v668_v36 }
  0x2b   :  { %262 = vmatpush1.bf16.msra.mxu0 %v503_v22  ;;  %v384_v22 = vrot.slane %v375_v19, %v673_v38 }
  0x2c   :  { %263 = vmatprep.subr.bf16.mxu0 %v504_v23 }
  0x2f   :  { %264 = vmatpush1.bf16.msra.mxu0 %v506_v24 }
  0x30   :  { %265 = vmatprep.subr.bf16.mxu0 %v507_v25 }
  0x33   :  { %266 = vmatpush1.bf16.msra.mxu0 %v509_v26  ;;  %v396_v26 = vrot.slane %v391_v20, %v668_v36 }
  0x34   :  { %267 = vmatprep.subr.bf16.mxu0 %v510_v27  ;;  %v400_v27 = vrot.slane %v391_v20, %v673_v38 }
  0x37   :  { %268 = vmatpush1.bf16.msra.mxu0 %v512_v28 }
  0x38   :  { %269 = vmatprep.subr.bf16.mxu0 %v513_v29 }
  0x3b   :  { %270 = vmatpush1.bf16.msra.mxu0 %v515_v30 }
  0x3c   :  { %271 = vmatprep.subr.bf16.mxu0 %v516_v31 }
  0x3f   :  { %272 = vmatpush1.bf16.msra.mxu0 %v518_v32 }
  0x42   :  { %274 = vmatmul.mubr.bf16.vlgmr.msra.gmra.mrb[0].mxu0 %v519_v33 }
 0x115   :  { %v275_v44 = vpop.f32.mrb[0].mxu0 }
 0x116   :  { %v311_v46 = vadd.f32 %v304_v40, %v275_v44  ;;  %v277_v47 = vpop.f32.mrb[1].mxu0 }
 0x117   :  { %v312_v49 = vadd.f32 %v308_v41, %v277_v47  ;;  %v279_v50 = vpop.f32.mrb[2].mxu0 }
 0x118   :  { %v321_v52 = vadd.f32 %v317_v43, %v311_v46  ;;  %v313_v53 = vadd.f32 %v304_v40, %v279_v50  ;;  %v281_v54 = vpop.f32.mrb[3].mxu0 }
 0x119   :  { %v322_v55 = vadd.f32 %v318_v45, %v312_v49  ;;  %v314_v56 = vadd.f32 %v308_v41, %v281_v54 }
 0x11a   :  { %v323_v57 = vadd.f32 %v319_v48, %v313_v53  ;;  %v347_v58 = vmul.f32 %v321_v52, %v321_v52 }
 0x11b   :  { %v467_v59 = vpack.c.bf16 %v322_v55, %v321_v52  ;;  %v324_v60 = vadd.f32 %v320_v51, %v314_v56  ;;  %v339_v61 = vadd.f32 %v322_v55, %v321_v52  ;;  %v348_v62 = vmul.f32 %v322_v55, %v322_v55 }
 0x11c   :  { %v349_v1 = vmul.f32 %v323_v57, %v323_v57 }
 0x11d   :  { %337 = vst [vmem:[%s709_s6] sm:$0xff] %v467_v59  ;;  %v468_v63 = vpack.c.bf16 %v324_v60, %v323_v57  ;;  %340 = vadd.xlane.f32.xlu0 %v339_v61  ;;  %v351_v0 = vadd.f32 %v348_v62, %v347_v58  ;;  %v350_v2 = vmul.f32 %v324_v60, %v324_v60 }
 0x11e   :  { %v342_v3 = vadd.f32 %v324_v60, %v323_v57 }
 0x11f   :  { %338 = vst [vmem:[%s709_s6 + $0x8] sm:$0xff] %v468_v63  ;;  %352 = vadd.xlane.f32.xlu1 %v351_v0  ;;  %v354_v4 = vadd.f32 %v350_v2, %v349_v1 }
 0x121   :  { %343 = vadd.xlane.f32.xlu0 %v342_v3 }
 0x123   :  { %355 = vadd.xlane.f32.xlu1 %v354_v4 }
 0x1aa   :  { %v341_v5 = vpop.xlane.xlu0 %340 }
 0x1ab   :  { %v345_v6 = vmul.f32 0.00390625, %v341_v5 }
 0x1ac   :  { %v353_v7 = vpop.xlane.xlu1 %352 }
 0x1ad   :  { %v357_v8 = vmul.f32 0.00390625, %v353_v7  ;;  %v359_v9 = vmul.f32 %v345_v6, %v345_v6  ;;  %v363_v23 = vsub.f32 %v321_v52, %v345_v6  ;;  %v364_v24 = vsub.f32 %v322_v55, %v345_v6 }
 0x1ae   :  { %v344_v10 = vpop.xlane.xlu0 %343 }
 0x1af   :  { %v361_v11 = vsub.f32 %v357_v8, %v359_v9  ;;  %v346_v12 = vmul.f32 0.00390625, %v344_v10 }
 0x1b0   :  { %v356_v13 = vpop.xlane.xlu1 %355 }
 0x1b1   :  { %v367_v14 = vadd.f32 1e-05, %v361_v11  ;;  %v358_v15 = vmul.f32 0.00390625, %v356_v13  ;;  %v360_v16 = vmul.f32 %v346_v12, %v346_v12  ;;  %v365_v32 = vsub.f32 %v323_v57, %v346_v12 }
 0x1b2   :  { %v366_v33 = vsub.f32 %v324_v60, %v346_v12 }
 0x1b3   :  { %522 = vrsqrt.f32 %v367_v14  ;;  %v362_v17 = vsub.f32 %v358_v15, %v360_v16 }
 0x1b5   :  { %v368_v18 = vadd.f32 1e-05, %v362_v17 }
 0x1b7   :  { %524 = vrsqrt.f32 %v368_v18 }
 0x1bd   :  { %v523_v25 = vpop.eup %522 }
 0x1be   :  { %v371_v28 = vmul.f32 %v523_v25, %v363_v23  ;;  %v372_v29 = vmul.f32 %v523_v25, %v364_v24 }
 0x1c0   :  { %v387_v30 = vmul.f32 %v380_v21, %v371_v28  ;;  %v388_v31 = vmul.f32 %v384_v22, %v372_v29 }
 0x1c1   :  { %v525_v34 = vpop.eup %524 }
 0x1c2   :  { %v403_v35 = vadd.f32 %v396_v26, %v387_v30  ;;  %v404_v37 = vadd.f32 %v400_v27, %v388_v31  ;;  %v373_v39 = vmul.f32 %v525_v34, %v365_v32  ;;  %v374_v40 = vmul.f32 %v525_v34, %v366_v33 }
 0x1c4   :  { %v469_v41 = vpack.c.bf16 %v404_v37, %v403_v35  ;;  %v389_v42 = vmul.f32 %v380_v21, %v373_v39  ;;  %v390_v43 = vmul.f32 %v384_v22, %v374_v40 }
 0x1c6   :  { %419 = vst [vmem:[%s712_s7] sm:$0xff] %v469_v41  ;;  %v405_v36 = vadd.f32 %v396_v26, %v389_v42  ;;  %v406_v38 = vadd.f32 %v400_v27, %v390_v43 }
 0x1c8   :  { %v470_v44 = vpack.c.bf16 %v406_v38, %v405_v36 }
 0x1ca   :  { %420 = vst [vmem:[%s712_s7 + $0x8] sm:$0xff] %v470_v44 }

// kernel: bloom_forward.16
= control target key start
LH: loop header
LB: loop body
LE: loop exit
PB: predicated region body
PF: predicated region fallthrough
CT: control target
= control target key end

     0   :  { %s1568_s18 = smov 0   ;;  %s1570_s19 = smov 0   ;;  %s1766_s0 = inlined_call_operand.vmem [shape: bf16[2,8,768], index: 0, kind: input, shape index: {}, may-alias: {0,1,2}]   ;;  %s1767_s1 = inlined_call_operand.vmem [shape: bf16[2,8,768], index: 1, kind: input, shape index: {}, may-alias: {0,1,2}]   ;;  %s1768_s2 = inlined_call_operand.vmem [shape: bf16[2,8,768], index: 2, kind: input, shape index: {}, may-alias: {0,1,2}]   ;;  %s1769_s3 = inlined_call_operand.vmem [shape: f32[2,1,4,8], index: 3, kind: input, shape index: {}]   ;;  %s1770_s4 = inlined_call_operand.vmem [shape: f32[2,1,8], index: 4, kind: input, shape index: {}]   ;;  %s1771_s5 = inlined_call_operand.vmem [shape: bf16[2,8,256], index: 5, kind: output, shape index: {}]  }
   0x1   :  { %s1572_s20 = smov 0  }
   0x2 LB: > { %s41_s21 = sadd.s32 1, %s1527_s19  ;;  %p1358_p0 = scmp.ge.s32.totalorder %s1531_s20, 1  ;;  %s1531_s20 = sphi %s1572_s20, %s15_s20   ;;  %s1527_s19 = sphi %s1570_s19, %s1775_s19   ;;  %s1523_s18 = sphi %s1568_s18, %s1774_s18  }
   0x3   : > { %p43_p1 = scmp.ge.s32.totalorder %s41_s21, 2  ;;  %p316_p2 = scmp.lt.s32.totalorder %s1531_s20, 3 }
   0x5   : > { %s1777_s21 = smov (%p43_p1, %s41_s21), 0  ;;  %p317_p3 = pnand %p1358_p0, %p316_p2 }
   0x6   : > { %p405_p4 = scmp.lt.s32.totalorder (!%p317_p3), %s1523_s18, 1  ;;  %vm494_vm0 = vcmask (!%p317_p3), 523264   ;;  %v1533_v0 = vmov (!%p317_p3), 0.0   ;;  %vm1534_vm1 = vmmov (!%p317_p3), 0   ;;  %v1535_v4 = vmov (!%p317_p3), 0   ;;  %s1537_s12 = smov (!%p317_p3), 64  }
   0x7   : > { %320 = sbr.rel (%p317_p3) target bundleno = 1532 (0x5fc), region = 40  ;;  %1403 = vmatprep.subr.bf16.mxu0 (!%p317_p3), %v1533_v0  ;;  %495 = vst.msk [vmem:[#allocation4] sm:$0xff] (!%p317_p3), %vm494_vm0, %v1533_v0  ;;  %496 = vst.msk [vmem:[#allocation4 + $0x8] sm:$0xff] (!%p317_p3), %vm494_vm0, %v1533_v0  ;;  %1405 = vmatprep.mubr.msk.bf16.mxu0 (!%p317_p3), %vm1534_vm1, %v1533_v0  ;;  %vm485_vm2 = vcmask (!%p317_p3), 7168   ;;  %v1536_v5 = vmov (!%p317_p3), -inf   ;;  %v511_v6 = vlaneseq (!%p317_p3)  ;;  %vm581_vm7 = vcmask (!%p317_p3), 64512  }
   0x8   : > { %497 = vst.msk [vmem:[#allocation4 + $0x10] sm:$0xff] (!%p317_p3), %vm494_vm0, %v1533_v0  ;;  %498 = vst.msk [vmem:[#allocation4 + $0x18] sm:$0xff] (!%p317_p3), %vm494_vm0, %v1533_v0  ;;  %1409 = vmatprep.subr.bf16.mxu1 (!%p317_p3), %v1533_v0  ;;  %1411 = vmatprep.mubr.msk.bf16.mxu1 (!%p317_p3), %vm1534_vm1, %v1533_v0  ;;  %vm616_vm8 = vcmask (!%p317_p3), 1043456  }
   0x9   : > { %1483 = vset.pattern.permute.xlu0 (!%p317_p3), %v1535_v4  ;;  %1484 = vset.pattern.permute.xlu1 (!%p317_p3), %v1535_v4  ;;  %486 = vst.msk [vmem:[#allocation2] sm:$0xff] (!%p317_p3), %vm485_vm2, %v1536_v5  ;;  %487 = vst.msk [vmem:[#allocation2 + $0x8] sm:$0xff] (!%p317_p3), %vm485_vm2, %v1536_v5  ;;  %v1634_v8 = vshrl.u32 (!%p317_p3), %v511_v6, 7  ;;  %v516_v11 = vand.u32 (!%p317_p3), 127, %v511_v6 }
   0xa   : > { %488 = vst.msk [vmem:[#allocation2 + $0x10] sm:$0xff] (!%p317_p3), %vm485_vm2, %v1536_v5  ;;  %489 = vst.msk [vmem:[#allocation2 + $0x18] sm:$0xff] (!%p317_p3), %vm485_vm2, %v1536_v5 }
   0xb   : > { %490 = vst.msk [vmem:[#allocation3] sm:$0xff] (!%p317_p3), %vm485_vm2, %v1533_v0  ;;  %491 = vst.msk [vmem:[#allocation3 + $0x8] sm:$0xff] (!%p317_p3), %vm485_vm2, %v1533_v0  ;;  %v524_v9 = vsub.s32 (!%p317_p3), 0, %v1634_v8  ;;  %vm519_vm4 = vcmp.gt.s32.totalorder (!%p317_p3), %v516_v11, %v1634_v8  ;;  %v665_v47 = vsub.s32 (!%p317_p3), 1, %v1634_v8  ;;  %v814_v54 = vsub.s32 (!%p317_p3), 2, %v1634_v8 }
   0xc   : > { %492 = vst.msk [vmem:[#allocation3 + $0x10] sm:$0xff] (!%p317_p3), %vm485_vm2, %v1533_v0  ;;  %493 = vst.msk [vmem:[#allocation3 + $0x18] sm:$0xff] (!%p317_p3), %vm485_vm2, %v1533_v0  ;;  %v954_v63 = vsub.s32 (!%p317_p3), 3, %v1634_v8 }
   0xe   : > { %s1779_s18 = smov (!%p405_p4, %s1523_s18), 1 }
   0xf   : > { %s1603_s22 = smul.u32 24, %s1779_s18  ;;  %s465_s7 = scalar_lea.vmem %s1770_s4, %s1779_s18 }
  0x10   : > { %v510_v7 = vld [vmem:[%s465_s7] sm:$0x1]  ;;  %s1362_s8 = sshll.u32 %s1779_s18, 2  ;;  %s1386_s17 = sshll.u32 %s1779_s18, 3 }
  0x11   : > { %s1383_s23 = sadd.s32 8, %s1603_s22  ;;  %s416_s29 = scalar_lea.vmem %s1766_s0, %s1603_s22  ;;  %vm520_vm3 = vcmp.gt.f32.partialorder %v510_v7, 0.5  ;;  %v1656_v27 = vld [vmem:[#allocation2] sm:$0xff] }
  0x12   : > { %s431_s26 = scalar_lea.vmem %s1767_s1, %s1383_s23  ;;  %v506_v3 = vld [vmem:[%s416_s29] sm:$0xff]  ;;  %v521_v10 = vsel %vm520_vm3, 1, %v1535_v4  ;;  %s459_s11 = scalar_lea.vmem %s1769_s3, %s1362_s8 }
  0x13   : > { %v507_v1 = vld [vmem:[%s431_s26] sm:$0xff]  ;;  %v525_v12 = vrot.slane %v521_v10, %v524_v9  ;;  %v1367_v24 = vcombine.low %v506_v3, %v506_v3  ;;  %v1372_v26 = vcombine.high %v506_v3, %v506_v3  ;;  %s1385_s13 = sadd.s32 16, %s1603_s22  ;;  %s478_s24 = scalar_lea.vmem %s1771_s5, %s1386_s17 }
  0x14   : > { %v537_v2 = vsel %vm494_vm0, %v507_v1, 0  ;;  %v1641_v13 = vld [vmem:[%s459_s11] sm:$0xf]  ;;  %v1368_v23 = vcombine.low %v507_v1, %v507_v1  ;;  %v1373_v25 = vcombine.high %v507_v1, %v507_v1  ;;  %s447_s16 = scalar_lea.vmem %s1768_s2, %s1385_s13 }
  0x15   : > { %1404 = vmatpush3.bf16.xpose.msra.mxu0 %v537_v2  ;;  %v531_v14 = vrot.slane %v1641_v13, %v524_v9  ;;  %vm526_vm5 = vcmp.eq.s32.totalorder %v525_v12, 1  ;;  %v1670_v31 = vld [vmem:[%s447_s16] sm:$0xff]  ;;  %v666_v50 = vrot.slane %v1641_v13, %v665_v47  ;;  %v815_v59 = vrot.slane %v1641_v13, %v814_v54 }
  0x16   : > { %1421 = vmatprep.subr.bf16.mxu0 %v1533_v0  ;;  %vm1645_vm6 = vmor %vm519_vm4, %vm526_vm5  ;;  %675 = vrot.lane.b32.xlu1 %v1368_v23, %s1537_s12  ;;  %v618_v32 = vsel %vm616_vm8, %v1670_v31, 0  ;;  %v824_v41 = vsel %vm494_vm0, %v1373_v25, 0  ;;  %v955_v5 = vrot.slane %v1641_v13, %v954_v63 }
  0x17   : > { %1410 = vmatpush3.bf16.msra.mxu1 %v618_v32  ;;  %v1375_v32 = vcombine.high %v1670_v31, %v1670_v31 }
  0x18   : > { %1415 = vmatprep.subr.bf16.mxu1 %v1533_v0 }
  0x1a   : > { %670 = vrot.lane.b32.xlu1 %v1367_v24, %s1537_s12 }
  0x1c   : > { %1406 = vmatmul.mubr.msk.bf16.vlgmr.msra.gmra.mrb[0].mxu0 %vm494_vm0, %v506_v3 }
  0x1d   : > { %1423 = vmatprep.mubr.msk.bf16.mxu0 %vm1534_vm1, %v1533_v0 }
  0x1e   : > { %958 = vrot.lane.b32.xlu1 %v1373_v25, %s1537_s12 }
  0x22   : > { %956 = vrot.lane.b32.xlu1 %v1372_v26, %s1537_s12 }
  0x88   : > { %v676_v36 = vpop.permute.xlu1 %675 }
  0x89   : > { %v681_v38 = vsel %vm494_vm0, %v676_v36, 0 }
  0x8c   : > { %v671_v40 = vpop.permute.xlu1 %670 }
  0x90   : > { %v959_v42 = vpop.permute.xlu1 %958 }
  0x91   : > { %v964_v43 = vsel %vm494_vm0, %v959_v42, 0 }
  0x94   : > { %v957_v44 = vpop.permute.xlu1 %956 }
  0xef   : > { %v573_v15 = vpop.f32.mrb[0].mxu0 }
  0xf0   : > { %v574_v17 = vadd.f32 %v573_v15, %v531_v14  ;;  %v1407_v18 = vpop.f32.mrb[1].mxu0  ;;  %v1370_v14 = vcombine.low %v1670_v31, %v1670_v31  ;;  %v725_v15 = vld [vmem:[#allocation2 + $0x8] sm:$0xff]  ;;  %v907_v31 = vsel %vm616_vm8, %v1375_v32, 0 }
  0xf1   : > { %v576_v19 = vpop.f32.mrb[2].mxu0 }
  0xf2   : > { %v1408_v20 = vpop.f32.mrb[3].mxu0  ;;  %v579_v21 = vsel %vm1645_vm6, -3.4028235e+38, %v574_v17  ;;  %v868_v19 = vld [vmem:[#allocation2 + $0x10] sm:$0xff] }
  0xf3   : > { %v582_v22 = vsel %vm581_vm7, %v579_v21, -inf }
  0xf4   : > { %583 = vmax.xlane.f32.xlu0 %v582_v22  ;;  %v1008_v22 = vld [vmem:[#allocation2 + $0x18] sm:$0xff] }
 0x181   : > { %v584_v28 = vpop.xlane.xlu0 %583 }
 0x182   : > { %v1659_v29 = vmax.f32 %v1656_v27, %v584_v28 }
 0x184   : > { %v586_v30 = vsub.f32 %v1656_v27, %v1659_v29  ;;  %662 = vst.msk [vmem:[#allocation2] sm:$0xff] %vm485_vm2, %v1659_v29  ;;  %591 = vperm.xlu0 %1483, %v1659_v29  }
 0x203   : > { %v592_v33 = vpop.permute.xlu0 %591 }
 0x204   : > { %v594_v34 = vsub.f32 %v579_v21, %v592_v33 }
 0x206   : > { %v595_v35 = vmul.f32 1.442695, %v594_v34 }
 0x208   : > { %1485 = vpow2.f32 %v595_v35 }
 0x212   : > { %v1675_v37 = vpop.eup %1485 }
 0x213   : > { %v612_v39 = vpack.c.bf16 %v1675_v37, %v1675_v37  ;;  %v599_v33 = vsel %vm581_vm7, %v1675_v37, 0.0 }
 0x215   : > { %1412 = vmatmul.mubr.msk.bf16.vlgmr.msra.gmra.mrb[0].mxu1 %vm581_vm7, %v612_v39 }
 0x216   : > { %1416 = vmatpush3.bf16.xpose.msra.mxu1 %v681_v38  ;;  %1417 = vmatprep.mubr.msk.bf16.mxu1 %vm1534_vm1, %v1533_v0 }
 0x217   : > { %1427 = vmatprep.subr.bf16.mxu1 %v1533_v0 }
 0x21d   : > { %1418 = vmatmul.mubr.msk.bf16.vlgmr.msra.gmra.mrb[4].mxu1 %vm494_vm0, %v671_v40 }
 0x21e   : > { %1428 = vmatpush3.bf16.xpose.msra.mxu1 %v824_v41  ;;  %1429 = vmatprep.mubr.msk.bf16.mxu1 %vm1534_vm1, %v1533_v0 }
 0x21f   : > { %1439 = vmatprep.subr.bf16.mxu1 %v1533_v0 }
 0x225   : > { %1430 = vmatmul.mubr.msk.bf16.vlgmr.msra.gmra.mrb[8].mxu1 %vm494_vm0, %v1372_v26 }
 0x226   : > { %1440 = vmatpush3.bf16.xpose.msra.mxu1 %v964_v43  ;;  %1441 = vmatprep.mubr.msk.bf16.mxu1 %vm1534_vm1, %v1533_v0 }
 0x22d   : > { %1442 = vmatmul.mubr.msk.bf16.vlgmr.msra.gmra.mrb[12].mxu1 %vm494_vm0, %v957_v44 }
 0x2e8   : > { %v1694_v45 = vpop.f32.mrb[0].mxu1 }
 0x2e9   : > { %v1413_v46 = vpop.f32.mrb[1].mxu1 }
 0x2ea   : > { %v657_v48 = vpop.f32.mrb[2].mxu1 }
 0x2eb   : > { %v1414_v49 = vpop.f32.mrb[3].mxu1 }
 0x2f0   : > { %v717_v51 = vpop.f32.mrb[4].mxu1 }
 0x2f1   : > { %v718_v52 = vadd.f32 %v717_v51, %v666_v50  ;;  %v1419_v53 = vpop.f32.mrb[5].mxu1 }
 0x2f2   : > { %v720_v55 = vpop.f32.mrb[6].mxu1 }
 0x2f3   : > { %v1420_v56 = vpop.f32.mrb[7].mxu1  ;;  %v723_v57 = vsel %vm1645_vm6, -3.4028235e+38, %v718_v52 }
 0x2f4   : > { %v726_v58 = vsel %vm581_vm7, %v723_v57, -inf }
 0x2f5   : > { %727 = vmax.xlane.f32.xlu1 %v726_v58 }
 0x2f8   : > { %v860_v60 = vpop.f32.mrb[8].mxu1 }
 0x2f9   : > { %v861_v61 = vadd.f32 %v860_v60, %v815_v59  ;;  %v1431_v62 = vpop.f32.mrb[9].mxu1 }
 0x2fa   : > { %v863_v1 = vpop.f32.mrb[10].mxu1 }
 0x2fb   : > { %v1432_v2 = vpop.f32.mrb[11].mxu1  ;;  %v866_v3 = vsel %vm1645_vm6, -3.4028235e+38, %v861_v61  ;;  %v597_v61 = vld [vmem:[#allocation3] sm:$0xff] }
 0x2fc   : > { %v869_v4 = vsel %vm581_vm7, %v866_v3, -inf }
 0x2fd   : > { %870 = vmax.xlane.f32.xlu0 %v869_v4 }
 0x300   : > { %v1000_v6 = vpop.f32.mrb[12].mxu1 }
 0x301   : > { %v1001_v7 = vadd.f32 %v1000_v6, %v955_v5  ;;  %v1443_v9 = vpop.f32.mrb[13].mxu1 }
 0x302   : > { %v1003_v10 = vpop.f32.mrb[14].mxu1 }
 0x303   : > { %v1444_v11 = vpop.f32.mrb[15].mxu1  ;;  %v1006_v12 = vsel %vm1645_vm6, -3.4028235e+38, %v1001_v7  ;;  %v1025_v7 = vld [vmem:[#allocation3 + $0x18] sm:$0xff] }
 0x304   : > { %v1009_v8 = vsel %vm581_vm7, %v1006_v12, -inf }
 0x305   : > { %1010 = vmax.xlane.f32.xlu1 %v1009_v8 }
 0x313   : > { %761 = vrot.lane.b32.xlu0 %v1370_v14, %s1537_s12 }
 0x382   : > { %v728_v17 = vpop.xlane.xlu1 %727 }
 0x383   : > { %v729_v18 = vmax.f32 %v725_v15, %v728_v17 }
 0x385   : > { %v730_v13 = vsub.f32 %v725_v15, %v729_v18  ;;  %811 = vst.msk [vmem:[#allocation2 + $0x8] sm:$0xff] %vm485_vm2, %v729_v18  ;;  %735 = vperm.xlu1 %1484, %v729_v18   ;;  %v885_v18 = vld [vmem:[#allocation3 + $0x10] sm:$0xff] }
 0x387   : > { %v731_v49 = vmul.f32 1.442695, %v730_v13  ;;  %v750_v13 = vld [vmem:[#allocation4 + $0x8] sm:$0xff] }
 0x38a   : > { %v871_v20 = vpop.xlane.xlu0 %870 }
 0x38b   : > { %v872_v21 = vmax.f32 %v868_v19, %v871_v20 }
 0x38d   : > { %v873_v16 = vsub.f32 %v868_v19, %v872_v21  ;;  %951 = vst.msk [vmem:[#allocation2 + $0x10] sm:$0xff] %vm485_vm2, %v872_v21  ;;  %878 = vperm.xlu1 %1484, %v872_v21  }
 0x38e   : > { %v762_v23 = vpop.permute.xlu0 %761 }
 0x38f   : > { %v767_v25 = vsel %vm616_vm8, %v762_v23, 0  ;;  %v874_v52 = vmul.f32 1.442695, %v873_v16 }
 0x390   : > { %1422 = vmatpush3.bf16.msra.mxu0 %v767_v25 }
 0x391   : > { %1433 = vmatprep.subr.bf16.mxu0 %v1533_v0 }
 0x392   : > { %v1011_v24 = vpop.xlane.xlu1 %1010 }
 0x393   : > { %v1012_v26 = vmax.f32 %v1008_v22, %v1011_v24 }
 0x395   : > { %v1013_v28 = vsub.f32 %v1008_v22, %v1012_v26  ;;  %1091 = vst.msk [vmem:[#allocation2 + $0x18] sm:$0xff] %vm485_vm2, %v1012_v26  ;;  %1018 = vperm.xlu1 %1484, %v1012_v26  }
 0x397   : > { %v1014_v54 = vmul.f32 1.442695, %v1013_v28 }
 0x399   : > { %1041 = vrot.lane.b32.xlu1 %v1375_v32, %s1537_s12  ;;  %v893_v32 = vld [vmem:[#allocation4 + $0x10] sm:$0xff] }
 0x3bd   : > { %600 = vadd.xlane.f32.xlu1 %v599_v33 }
 0x404   : > { %v736_v34 = vpop.permute.xlu1 %735 }
 0x405   : > { %v738_v35 = vsub.f32 %v723_v57, %v736_v34  ;;  %v587_v57 = vmul.f32 1.442695, %v586_v30  ;;  %v742_v30 = vld [vmem:[#allocation3 + $0x8] sm:$0xff] }
 0x407   : > { %v739_v36 = vmul.f32 1.442695, %v738_v35 }
 0x409   : > { %1487 = vpow2.f32 %v739_v36 }
 0x40c   : > { %v879_v38 = vpop.permute.xlu1 %878 }
 0x40d   : > { %v881_v39 = vsub.f32 %v866_v3, %v879_v38 }
 0x40f   : > { %v882_v40 = vmul.f32 1.442695, %v881_v39 }
 0x411   : > { %1489 = vpow2.f32 %v882_v40 }
 0x413   : > { %v1488_v41 = vpop.eup %1487 }
 0x414   : > { %v1019_v42 = vpop.permute.xlu1 %1018  ;;  %v744_v43 = vsel %vm581_vm7, %v1488_v41, 0.0  ;;  %v757_v44 = vpack.c.bf16 %v1488_v41, %v1488_v41 }
 0x415   : > { %v1021_v46 = vsub.f32 %v1006_v12, %v1019_v42  ;;  %745 = vadd.xlane.f32.xlu0 %v744_v43  ;;  %v605_v12 = vld [vmem:[#allocation4] sm:$0xff]  ;;  %v1033_v42 = vld [vmem:[#allocation4 + $0x18] sm:$0xff] }
 0x416   : > { %1424 = vmatmul.mubr.msk.bf16.vlgmr.msra.gmra.mrb[4].mxu0 %vm581_vm7, %v757_v44 }
 0x417   : > { %v1022_v37 = vmul.f32 1.442695, %v1021_v46  ;;  %1434 = vmatpush3.bf16.msra.mxu0 %v907_v31  ;;  %1435 = vmatprep.mubr.msk.bf16.mxu0 %vm1534_vm1, %v1533_v0 }
 0x418   : > { %1445 = vmatprep.subr.bf16.mxu0 %v1533_v0  ;;  %v1042_v47 = vpop.permute.xlu1 %1041 }
 0x419   : > { %1491 = vpow2.f32 %v1022_v37  ;;  %v1047_v51 = vsel %vm616_vm8, %v1042_v47, 0 }
 0x41a   : > { %1493 = vpow2.f32 %v731_v49 }
 0x41b   : > { %v1490_v48 = vpop.eup %1489  ;;  %1495 = vpow2.f32 %v874_v52 }
 0x41c   : > { %v900_v50 = vpack.c.bf16 %v1490_v48, %v1490_v48  ;;  %1497 = vpow2.f32 %v1014_v54  ;;  %v887_v27 = vsel %vm581_vm7, %v1490_v48, 0.0 }
 0x41d   : > { %1499 = vpow2.f32 %v587_v57 }
 0x41e   : > { %1436 = vmatmul.mubr.msk.bf16.vlgmr.msra.gmra.mrb[8].mxu0 %vm581_vm7, %v900_v50 }
 0x41f   : > { %1446 = vmatpush3.bf16.msra.mxu0 %v1047_v51  ;;  %1447 = vmatprep.mubr.msk.bf16.mxu0 %vm1534_vm1, %v1533_v0 }
 0x423   : > { %v1492_v53 = vpop.eup %1491 }
 0x424   : > { %v1027_v55 = vsel %vm581_vm7, %v1492_v53, 0.0  ;;  %v1040_v56 = vpack.c.bf16 %v1492_v53, %v1492_v53  ;;  %v1494_v58 = vpop.eup %1493 }
 0x425   : > { %1028 = vadd.xlane.f32.xlu1 %v1027_v55  ;;  %v1496_v0 = vpop.eup %1495  ;;  %v743_v3 = vmul.f32 %v1494_v58, %v742_v30 }
 0x426   : > { %1448 = vmatmul.mubr.msk.bf16.vlgmr.msra.gmra.mrb[12].mxu0 %vm581_vm7, %v1040_v56  ;;  %v1498_v59 = vpop.eup %1497  ;;  %v886_v20 = vmul.f32 %v1496_v0, %v885_v18 }
 0x427   : > { %v1500_v60 = vpop.eup %1499  ;;  %v1026_v9 = vmul.f32 %v1498_v59, %v1025_v7 }
 0x428   : > { %v598_v62 = vmul.f32 %v1500_v60, %v597_v61 }
 0x42b   : > { %753 = vperm.xlu0 %1483, %v1494_v58  }
 0x42f   : > { %896 = vperm.xlu0 %1483, %v1496_v0  }
 0x433   : > { %1036 = vperm.xlu0 %1483, %v1498_v59  }
 0x436   : > { %608 = vperm.xlu1 %1484, %v1500_v60  }
 0x44a   : > { %v601_v63 = vpop.xlane.xlu1 %600 }
 0x44b   : > { %v602_v1 = vadd.f32 %v601_v63, %v598_v62 }
 0x44d   : > { %604 = vst.msk [vmem:[#allocation3] sm:$0xff] %vm485_vm2, %v602_v1 }
 0x454   : > { %v1095_v2 = vld [vmem:[#allocation3] sm:$0xff] }
 0x455   : > { %1501 = vrcp.f32 %v1095_v2 }
 0x45a   : > { %888 = vadd.xlane.f32.xlu1 %v887_v27 }
 0x45f   : > { %v1502_v29 = vpop.eup %1501 }
 0x460   : > { %1100 = vperm.xlu0 %1483, %v1502_v29  }
 0x4a2   : > { %v746_v4 = vpop.xlane.xlu0 %745 }
 0x4a3   : > { %v747_v5 = vadd.f32 %v746_v4, %v743_v3 }
 0x4a5   : > { %748 = vst.msk [vmem:[#allocation3 + $0x8] sm:$0xff] %vm485_vm2, %v747_v5 }
 0x4aa   : > { %v754_v19 = vpop.permute.xlu0 %753 }
 0x4ab   : > { %v756_v16 = vmul.f32 %v754_v19, %v750_v13 }
 0x4ac   : > { %v1106_v6 = vld [vmem:[#allocation3 + $0x8] sm:$0xff] }
 0x4ad   : > { %1503 = vrcp.f32 %v1106_v6 }
 0x4b2   : > { %v1029_v10 = vpop.xlane.xlu1 %1028 }
 0x4b3   : > { %v1030_v11 = vadd.f32 %v1029_v10, %v1026_v9 }
 0x4b5   : > { %1031 = vst.msk [vmem:[#allocation3 + $0x18] sm:$0xff] %vm485_vm2, %v1030_v11 }
 0x4b6   : > { %v609_v8 = vpop.permute.xlu1 %608 }
 0x4b7   : > { %v1504_v14 = vpop.eup %1503  ;;  %v611_v15 = vmul.f32 %v609_v8, %v605_v12 }
 0x4b8   : > { %1112 = vperm.xlu0 %1483, %v1504_v14  }
 0x4b9   : > { %v660_v17 = vadd.f32 %v1694_v45, %v611_v15  ;;  %v897_v45 = vpop.permute.xlu0 %896 }
 0x4ba   : > { %v899_v33 = vmul.f32 %v897_v45, %v893_v32 }
 0x4bb   : > { %661 = vst.msk [vmem:[#allocation4] sm:$0xff] %vm494_vm0, %v660_v17 }
 0x4bc   : > { %v1130_v40 = vld [vmem:[#allocation3 + $0x18] sm:$0xff] }
 0x4bd   : > { %v1037_v43 = vpop.permute.xlu0 %1036 }
 0x4be   : > { %v1039_v44 = vmul.f32 %v1037_v43, %v1033_v42 }
 0x4c2   : > { %v1097_v60 = vld [vmem:[#allocation4] sm:$0xff] }
 0x4df   : > { %v1101_v51 = vpop.permute.xlu0 %1100 }
 0x4e0   : > { %v1103_v62 = vmul.f32 %v1101_v51, %v1097_v60 }
 0x4e2   : > { %v1104_v2 = vpack.c.bf16 %v1103_v62, %v1103_v62 }
 0x4e7   : > { %v889_v21 = vpop.xlane.xlu1 %888 }
 0x4e8   : > { %v890_v22 = vadd.f32 %v889_v21, %v886_v20 }
 0x4e9   : > { %v803_v23 = vpop.f32.mrb[4].mxu0 }
 0x4ea   : > { %891 = vst.msk [vmem:[#allocation3 + $0x10] sm:$0xff] %vm485_vm2, %v890_v22  ;;  %v809_v24 = vadd.f32 %v803_v23, %v756_v16  ;;  %v1425_v25 = vpop.f32.mrb[5].mxu0 }
 0x4eb   : > { %v806_v26 = vpop.f32.mrb[6].mxu0 }
 0x4ec   : > { %810 = vst.msk [vmem:[#allocation4 + $0x8] sm:$0xff] %vm494_vm0, %v809_v24  ;;  %v1426_v28 = vpop.f32.mrb[7].mxu0 }
 0x4f1   : > { %v943_v34 = vpop.f32.mrb[8].mxu0  ;;  %v1118_v35 = vld [vmem:[#allocation3 + $0x10] sm:$0xff] }
 0x4f2   : > { %v949_v36 = vadd.f32 %v943_v34, %v899_v33  ;;  %v1437_v38 = vpop.f32.mrb[9].mxu0  ;;  %1505 = vrcp.f32 %v1118_v35 }
 0x4f3   : > { %v946_v39 = vpop.f32.mrb[10].mxu0  ;;  %1507 = vrcp.f32 %v1130_v40  ;;  %v1109_v53 = vld [vmem:[#allocation4 + $0x8] sm:$0xff] }
 0x4f4   : > { %950 = vst.msk [vmem:[#allocation4 + $0x10] sm:$0xff] %vm494_vm0, %v949_v36  ;;  %v1438_v41 = vpop.f32.mrb[11].mxu0 }
 0x4f9   : > { %v1083_v31 = vpop.f32.mrb[12].mxu0 }
 0x4fa   : > { %v1089_v46 = vadd.f32 %v1083_v31, %v1039_v44  ;;  %v1449_v37 = vpop.f32.mrb[13].mxu0 }
 0x4fb   : > { %v1086_v47 = vpop.f32.mrb[14].mxu0  ;;  %v1121_v61 = vld [vmem:[#allocation4 + $0x10] sm:$0xff] }
 0x4fc   : > { %v1506_v48 = vpop.eup %1505  ;;  %1090 = vst.msk [vmem:[#allocation4 + $0x18] sm:$0xff] %vm494_vm0, %v1089_v46  ;;  %v1450_v49 = vpop.f32.mrb[15].mxu0 }
 0x4fd   : > { %1124 = vperm.xlu0 %1483, %v1506_v48   ;;  %v1508_v50 = vpop.eup %1507 }
 0x501   : > { %1136 = vperm.xlu0 %1483, %v1508_v50  }
 0x503   : > { %v1133_v58 = vld [vmem:[#allocation4 + $0x18] sm:$0xff] }
 0x537   : > { %v1113_v52 = vpop.permute.xlu0 %1112 }
 0x538   : > { %v1115_v54 = vmul.f32 %v1113_v52, %v1109_v53 }
 0x53a   : > { %v1116_v55 = vpack.c.bf16 %v1115_v54, %v1115_v54 }
 0x53c   : > { %1142 = vrot.lane.b32.xlu0 %v1116_v55, %s1537_s12 }
 0x57c   : > { %v1125_v56 = vpop.permute.xlu0 %1124 }
 0x57d   : > { %v1127_v63 = vmul.f32 %v1125_v56, %v1121_v61 }
 0x57f   : > { %v1128_v27 = vpack.c.bf16 %v1127_v63, %v1127_v63 }
 0x580   : > { %v1137_v57 = vpop.permute.xlu0 %1136 }
 0x581   : > { %v1139_v0 = vmul.f32 %v1137_v57, %v1133_v58 }
 0x583   : > { %v1140_v59 = vpack.c.bf16 %v1139_v0, %v1139_v0 }
 0x585   : > { %1145 = vrot.lane.b32.xlu1 %v1140_v59, %s1537_s12 }
 0x5ae   : > { %v1143_v1 = vpop.permute.xlu0 %1142 }
 0x5af   : > { %v1150_v30 = vsel %vm494_vm0, %v1104_v2, %v1143_v1 }
 0x5f7   : > { %v1146_v29 = vpop.permute.xlu1 %1145 }
 0x5f8   : > { %v1153_v3 = vsel %vm494_vm0, %v1128_v27, %v1146_v29 }
 0x5f9   : > { %v1379_v4 = vcombine.low %v1150_v30, %v1153_v3 }
 0x5fb   : > { %1160 = vst [vmem:[%s478_s24] sm:$0xff] %v1379_v4 }
 0x5fc PF: > { %s15_s20 = sadd.s32 1, %s1531_s20   ;;  %s1774_s18 = smov %s1527_s19 }
 0x5fd   : > { %p12_p5 = scmp.ge.s32.totalorder %s15_s20, 4   ;;  %s1775_s19 = smov %s1777_s21 }
 0x5ff   :  { %14 = sbr.rel (!%p12_p5) target bundleno = 2 (0x2), region = 109 }

// kernel: bloom_forward.18
= control target key start
LH: loop header
LB: loop body
LE: loop exit
PB: predicated region body
PF: predicated region fallthrough
CT: control target
= control target key end

     0   :  { %s1508_s12 = smov 0   ;;  %s1510_s13 = smov 0   ;;  %s1834_s0 = inlined_call_operand.vmem [shape: bf16[16,256], index: 0, kind: input, shape index: {}]   ;;  %s1835_s1 = inlined_call_operand.vmem [shape: bf16[256,1024], index: 1, kind: input, shape index: {}]   ;;  %s1836_s2 = inlined_call_operand.vmem [shape: f32[1,1024], index: 2, kind: input, shape index: {}]   ;;  %s1837_s3 = inlined_call_operand.vmem [shape: bf16[16,1024], index: 3, kind: output, shape index: {}]  }
   0x1   :  { %s1512_s14 = smov 0   ;;  %s1514_s15 = smov 0  }
   0x2   :  { %s1516_s16 = smov 0  }
   0x3 LB: > { %s28_s17 = sadd.s32 1, %s1482_s15  ;;  %s1200_s18 = sadd.s32 4294967295, %s1486_s16   ;;  %s1486_s16 = sphi %s1516_s16, %s13_s16   ;;  %s1482_s15 = sphi %s1514_s15, %s1842_s15   ;;  %s1478_s14 = sphi %s1512_s14, %s1841_s14   ;;  %s1474_s13 = sphi %s1510_s13, %s1840_s13   ;;  %s1470_s12 = sphi %s1508_s12, %s1839_s12  }
   0x4   : > { %p30_p0 = scmp.ge.s32.totalorder %s28_s17, 2  ;;  %p76_p1 = scmp.ne.s32.totalorder %s1474_s13, %s1470_s12 }
   0x5   : > { %p77_p2 = scmp.eq.s32.totalorder %s1486_s16, 0  ;;  %p134_p4 = scmp.eq.s32.totalorder %s1200_s18, 1 }
   0x6   : > { %s1844_s17 = smov (%p30_p0, %s28_s17), 0  ;;  %s69_s20 = sadd.s32 1, %s1474_s13 }
   0x7   : > { %p78_p3 = por %p77_p2, %p76_p1  ;;  %s65_s19 = ssub.s32 %s1482_s15, %s1844_s17 }
   0x8   : > { %p67_p5 = scmp.eq.s32.totalorder %s65_s19, 0  ;;  %p1543_p6 = por %p134_p4, %p76_p1 }
   0x9   : > { %p1204_p7 = scmp.ge.s32.totalorder %s1486_s16, 2 }
   0xa   : > { %s1548_s22 = scalar_select %p67_p5, %s1474_s13, %s69_s20  }
   0xb   : > { %171 = sbr.rel (%p1204_p7) target bundleno = 54 (0x36), region = 20 }
  0x12   : > { %174 = sbr.rel (!%p78_p3) target bundleno = 54 (0x36), region = 24  ;;  %s176_s23 = sand.u32 (%p78_p3), 1, %s1474_s13  }
  0x13   : > { %s1287_s24 = sshll.u32 (%p78_p3), %s1482_s15, 4  ;;  %s1205_s25 = sshll.u32 (%p78_p3), %s176_s23, 9 }
  0x14   : > { %s1556_s28 = scalar_lea.vmem (%p78_p3), %s1835_s1, %s1287_s24  ;;  %s1561_s29 = scalar_lea.vmem (%p78_p3), [#allocation3], %s1205_s25 }
  0x15   : > { %v197_v0 = vld [vmem:[%s1556_s28] sm:$0xff] (%p78_p3)  ;;  %v199_v1 = vld [vmem:[%s1556_s28 + $0x8] sm:$0xff] (%p78_p3) }
  0x16   : > { %v201_v2 = vld [vmem:[%s1556_s28 + $0x20] sm:$0xff] (%p78_p3)  ;;  %198 = vst [vmem:[%s1561_s29] sm:$0xff] (%p78_p3), %v197_v0  ;;  %200 = vst [vmem:[%s1561_s29 + $0x8] sm:$0xff] (%p78_p3), %v199_v1  ;;  %v203_v3 = vld [vmem:[%s1556_s28 + $0x28] sm:$0xff] (%p78_p3) }
  0x17   : > { %202 = vst [vmem:[%s1561_s29 + $0x10] sm:$0xff] (%p78_p3), %v201_v2  ;;  %v205_v4 = vld [vmem:[%s1556_s28 + $0x40] sm:$0xff] (%p78_p3)  ;;  %v207_v5 = vld [vmem:[%s1556_s28 + $0x48] sm:$0xff] (%p78_p3)  ;;  %204 = vst [vmem:[%s1561_s29 + $0x18] sm:$0xff] (%p78_p3), %v203_v3 }
  0x18   : > { %206 = vst [vmem:[%s1561_s29 + $0x20] sm:$0xff] (%p78_p3), %v205_v4  ;;  %208 = vst [vmem:[%s1561_s29 + $0x28] sm:$0xff] (%p78_p3), %v207_v5  ;;  %v209_v6 = vld [vmem:[%s1556_s28 + $0x60] sm:$0xff] (%p78_p3)  ;;  %v211_v7 = vld [vmem:[%s1556_s28 + $0x68] sm:$0xff] (%p78_p3) }
  0x19   : > { %v213_v8 = vld [vmem:[%s1556_s28 + $0x80] sm:$0xff]  ;;  %210 = vst [vmem:[%s1561_s29 + $0x30] sm:$0xff] %v209_v6  ;;  %212 = vst [vmem:[%s1561_s29 + $0x38] sm:$0xff] %v211_v7  ;;  %v215_v9 = vld [vmem:[%s1556_s28 + $0x88] sm:$0xff] }
  0x1a   : > { %214 = vst [vmem:[%s1561_s29 + $0x40] sm:$0xff] %v213_v8  ;;  %v217_v10 = vld [vmem:[%s1556_s28 + $0xa0] sm:$0xff]  ;;  %v219_v11 = vld [vmem:[%s1556_s28 + $0xa8] sm:$0xff]  ;;  %216 = vst [vmem:[%s1561_s29 + $0x48] sm:$0xff] %v215_v9 }
  0x1b   : > { %218 = vst [vmem:[%s1561_s29 + $0x50] sm:$0xff] %v217_v10  ;;  %220 = vst [vmem:[%s1561_s29 + $0x58] sm:$0xff] %v219_v11  ;;  %v221_v12 = vld [vmem:[%s1556_s28 + $0xc0] sm:$0xff]  ;;  %v223_v13 = vld [vmem:[%s1556_s28 + $0xc8] sm:$0xff] }
  0x1c   : > { %v225_v14 = vld [vmem:[%s1556_s28 + $0xe0] sm:$0xff]  ;;  %222 = vst [vmem:[%s1561_s29 + $0x60] sm:$0xff] %v221_v12  ;;  %224 = vst [vmem:[%s1561_s29 + $0x68] sm:$0xff] %v223_v13  ;;  %v227_v15 = vld [vmem:[%s1556_s28 + $0xe8] sm:$0xff] }
  0x1d   : > { %226 = vst [vmem:[%s1561_s29 + $0x70] sm:$0xff] %v225_v14  ;;  %v229_v16 = vld [vmem:[%s1556_s28 + $0x100] sm:$0xff]  ;;  %v231_v17 = vld [vmem:[%s1556_s28 + $0x108] sm:$0xff]  ;;  %228 = vst [vmem:[%s1561_s29 + $0x78] sm:$0xff] %v227_v15 }
  0x1e   : > { %230 = vst [vmem:[%s1561_s29 + $0x80] sm:$0xff] %v229_v16  ;;  %232 = vst [vmem:[%s1561_s29 + $0x88] sm:$0xff] %v231_v17  ;;  %v233_v18 = vld [vmem:[%s1556_s28 + $0x120] sm:$0xff]  ;;  %v235_v19 = vld [vmem:[%s1556_s28 + $0x128] sm:$0xff] }
  0x1f   : > { %v237_v20 = vld [vmem:[%s1556_s28 + $0x140] sm:$0xff]  ;;  %234 = vst [vmem:[%s1561_s29 + $0x90] sm:$0xff] %v233_v18  ;;  %236 = vst [vmem:[%s1561_s29 + $0x98] sm:$0xff] %v235_v19  ;;  %v239_v21 = vld [vmem:[%s1556_s28 + $0x148] sm:$0xff] }
  0x20   : > { %238 = vst [vmem:[%s1561_s29 + $0xa0] sm:$0xff] %v237_v20  ;;  %v241_v22 = vld [vmem:[%s1556_s28 + $0x160] sm:$0xff]  ;;  %v243_v23 = vld [vmem:[%s1556_s28 + $0x168] sm:$0xff]  ;;  %240 = vst [vmem:[%s1561_s29 + $0xa8] sm:$0xff] %v239_v21 }
  0x21   : > { %242 = vst [vmem:[%s1561_s29 + $0xb0] sm:$0xff] %v241_v22  ;;  %244 = vst [vmem:[%s1561_s29 + $0xb8] sm:$0xff] %v243_v23  ;;  %v245_v24 = vld [vmem:[%s1556_s28 + $0x180] sm:$0xff]  ;;  %v247_v25 = vld [vmem:[%s1556_s28 + $0x188] sm:$0xff] }
  0x22   : > { %v249_v26 = vld [vmem:[%s1556_s28 + $0x1a0] sm:$0xff]  ;;  %246 = vst [vmem:[%s1561_s29 + $0xc0] sm:$0xff] %v245_v24  ;;  %248 = vst [vmem:[%s1561_s29 + $0xc8] sm:$0xff] %v247_v25  ;;  %v251_v27 = vld [vmem:[%s1556_s28 + $0x1a8] sm:$0xff] }
  0x23   : > { %250 = vst [vmem:[%s1561_s29 + $0xd0] sm:$0xff] %v249_v26  ;;  %v253_v28 = vld [vmem:[%s1556_s28 + $0x1c0] sm:$0xff]  ;;  %v255_v29 = vld [vmem:[%s1556_s28 + $0x1c8] sm:$0xff]  ;;  %252 = vst [vmem:[%s1561_s29 + $0xd8] sm:$0xff] %v251_v27 }
  0x24   : > { %254 = vst [vmem:[%s1561_s29 + $0xe0] sm:$0xff] %v253_v28  ;;  %256 = vst [vmem:[%s1561_s29 + $0xe8] sm:$0xff] %v255_v29  ;;  %v257_v30 = vld [vmem:[%s1556_s28 + $0x1e0] sm:$0xff]  ;;  %v259_v31 = vld [vmem:[%s1556_s28 + $0x1e8] sm:$0xff] }
  0x25   : > { %v261_v32 = vld [vmem:[%s1556_s28 + $0x200] sm:$0xff]  ;;  %258 = vst [vmem:[%s1561_s29 + $0xf0] sm:$0xff] %v257_v30  ;;  %260 = vst [vmem:[%s1561_s29 + $0xf8] sm:$0xff] %v259_v31  ;;  %v263_v33 = vld [vmem:[%s1556_s28 + $0x208] sm:$0xff] }
  0x26   : > { %262 = vst [vmem:[%s1561_s29 + $0x100] sm:$0xff] %v261_v32  ;;  %v265_v34 = vld [vmem:[%s1556_s28 + $0x220] sm:$0xff]  ;;  %v267_v35 = vld [vmem:[%s1556_s28 + $0x228] sm:$0xff]  ;;  %264 = vst [vmem:[%s1561_s29 + $0x108] sm:$0xff] %v263_v33 }
  0x27   : > { %266 = vst [vmem:[%s1561_s29 + $0x110] sm:$0xff] %v265_v34  ;;  %268 = vst [vmem:[%s1561_s29 + $0x118] sm:$0xff] %v267_v35  ;;  %v269_v36 = vld [vmem:[%s1556_s28 + $0x240] sm:$0xff]  ;;  %v271_v37 = vld [vmem:[%s1556_s28 + $0x248] sm:$0xff] }
  0x28   : > { %v273_v38 = vld [vmem:[%s1556_s28 + $0x260] sm:$0xff]  ;;  %270 = vst [vmem:[%s1561_s29 + $0x120] sm:$0xff] %v269_v36  ;;  %272 = vst [vmem:[%s1561_s29 + $0x128] sm:$0xff] %v271_v37  ;;  %v275_v39 = vld [vmem:[%s1556_s28 + $0x268] sm:$0xff] }
  0x29   : > { %274 = vst [vmem:[%s1561_s29 + $0x130] sm:$0xff] %v273_v38  ;;  %v277_v40 = vld [vmem:[%s1556_s28 + $0x280] sm:$0xff]  ;;  %v279_v41 = vld [vmem:[%s1556_s28 + $0x288] sm:$0xff]  ;;  %276 = vst [vmem:[%s1561_s29 + $0x138] sm:$0xff] %v275_v39 }
  0x2a   : > { %278 = vst [vmem:[%s1561_s29 + $0x140] sm:$0xff] %v277_v40  ;;  %280 = vst [vmem:[%s1561_s29 + $0x148] sm:$0xff] %v279_v41  ;;  %v281_v42 = vld [vmem:[%s1556_s28 + $0x2a0] sm:$0xff]  ;;  %v283_v43 = vld [vmem:[%s1556_s28 + $0x2a8] sm:$0xff] }
  0x2b   : > { %v285_v44 = vld [vmem:[%s1556_s28 + $0x2c0] sm:$0xff]  ;;  %282 = vst [vmem:[%s1561_s29 + $0x150] sm:$0xff] %v281_v42  ;;  %284 = vst [vmem:[%s1561_s29 + $0x158] sm:$0xff] %v283_v43  ;;  %v287_v45 = vld [vmem:[%s1556_s28 + $0x2c8] sm:$0xff] }
  0x2c   : > { %286 = vst [vmem:[%s1561_s29 + $0x160] sm:$0xff] %v285_v44  ;;  %v289_v46 = vld [vmem:[%s1556_s28 + $0x2e0] sm:$0xff]  ;;  %v291_v47 = vld [vmem:[%s1556_s28 + $0x2e8] sm:$0xff]  ;;  %288 = vst [vmem:[%s1561_s29 + $0x168] sm:$0xff] %v287_v45 }
  0x2d   : > { %290 = vst [vmem:[%s1561_s29 + $0x170] sm:$0xff] %v289_v46  ;;  %292 = vst [vmem:[%s1561_s29 + $0x178] sm:$0xff] %v291_v47  ;;  %v293_v48 = vld [vmem:[%s1556_s28 + $0x300] sm:$0xff]  ;;  %v295_v49 = vld [vmem:[%s1556_s28 + $0x308] sm:$0xff] }
  0x2e   : > { %v297_v50 = vld [vmem:[%s1556_s28 + $0x320] sm:$0xff]  ;;  %294 = vst [vmem:[%s1561_s29 + $0x180] sm:$0xff] %v293_v48  ;;  %296 = vst [vmem:[%s1561_s29 + $0x188] sm:$0xff] %v295_v49  ;;  %v299_v51 = vld [vmem:[%s1556_s28 + $0x328] sm:$0xff] }
  0x2f   : > { %298 = vst [vmem:[%s1561_s29 + $0x190] sm:$0xff] %v297_v50  ;;  %v301_v52 = vld [vmem:[%s1556_s28 + $0x340] sm:$0xff]  ;;  %v303_v53 = vld [vmem:[%s1556_s28 + $0x348] sm:$0xff]  ;;  %300 = vst [vmem:[%s1561_s29 + $0x198] sm:$0xff] %v299_v51 }
  0x30   : > { %302 = vst [vmem:[%s1561_s29 + $0x1a0] sm:$0xff] %v301_v52  ;;  %304 = vst [vmem:[%s1561_s29 + $0x1a8] sm:$0xff] %v303_v53  ;;  %v305_v54 = vld [vmem:[%s1556_s28 + $0x360] sm:$0xff]  ;;  %v307_v55 = vld [vmem:[%s1556_s28 + $0x368] sm:$0xff] }
  0x31   : > { %v309_v56 = vld [vmem:[%s1556_s28 + $0x380] sm:$0xff]  ;;  %306 = vst [vmem:[%s1561_s29 + $0x1b0] sm:$0xff] %v305_v54  ;;  %308 = vst [vmem:[%s1561_s29 + $0x1b8] sm:$0xff] %v307_v55  ;;  %v311_v57 = vld [vmem:[%s1556_s28 + $0x388] sm:$0xff] }
  0x32   : > { %310 = vst [vmem:[%s1561_s29 + $0x1c0] sm:$0xff] %v309_v56  ;;  %v313_v58 = vld [vmem:[%s1556_s28 + $0x3a0] sm:$0xff]  ;;  %v315_v59 = vld [vmem:[%s1556_s28 + $0x3a8] sm:$0xff]  ;;  %312 = vst [vmem:[%s1561_s29 + $0x1c8] sm:$0xff] %v311_v57 }
  0x33   : > { %314 = vst [vmem:[%s1561_s29 + $0x1d0] sm:$0xff] %v313_v58  ;;  %316 = vst [vmem:[%s1561_s29 + $0x1d8] sm:$0xff] %v315_v59  ;;  %v317_v60 = vld [vmem:[%s1556_s28 + $0x3c0] sm:$0xff]  ;;  %v319_v61 = vld [vmem:[%s1556_s28 + $0x3c8] sm:$0xff] }
  0x34   : > { %v321_v62 = vld [vmem:[%s1556_s28 + $0x3e0] sm:$0xff]  ;;  %318 = vst [vmem:[%s1561_s29 + $0x1e0] sm:$0xff] %v317_v60  ;;  %320 = vst [vmem:[%s1561_s29 + $0x1e8] sm:$0xff] %v319_v61  ;;  %v323_v63 = vld [vmem:[%s1556_s28 + $0x3e8] sm:$0xff] }
  0x35   : > { %322 = vst [vmem:[%s1561_s29 + $0x1f0] sm:$0xff] %v321_v62  ;;  %324 = vst [vmem:[%s1561_s29 + $0x1f8] sm:$0xff] %v323_v63 }
  0x36 PF: > { %p1208_p8 = scmp.ge.s32.totalorder %s1486_s16, 1  ;;  %p337_p9 = scmp.lt.s32.totalorder %s1486_s16, 3 }
  0x38   : > { %p338_p10 = pnand %p1208_p8, %p337_p9 }
  0x39   : > { %s344_s30 = sand.u32 (!%p338_p10), 1, %s1470_s12   ;;  %v1431_v0 = vld [vmem:[%s1834_s0 + $0x4] ss:$8 sps:$4 sm:$0xff] (!%p338_p10)   ;;  %s1211_s10 = sshll.u32 (!%p338_p10), %s1478_s14, 2 }
  0x3a   : > { %341 = sbr.rel (%p338_p10) target bundleno = 381 (0x17d), region = 51  ;;  %s1209_s4 = sshll.u32 (!%p338_p10), %s344_s30, 9  ;;  %849 = vmatprep.mubr.bf16.mxu0 (!%p338_p10), %v1431_v0  ;;  %892 = vmatprep.mubr.bf16.mxu1 (!%p338_p10), %v1431_v0 }
  0x3b   : > { %s1696_s7 = scalar_lea.vmem (!%p338_p10), [#allocation3], %s1209_s4  ;;  %p395_p11 = scmp.lt.s32.totalorder (!%p338_p10), %s1211_s10, 7 }
  0x3c   : > { %v1333_v1 = vld [vmem:[%s1696_s7 + $0x4] ss:$16 sps:$4 sm:$0xff] (!%p338_p10)   ;;  %v1335_v2 = vld [vmem:[%s1696_s7 + $0xc] ss:$16 sps:$4 sm:$0xff] (!%p338_p10)   ;;  %v1337_v3 = vld [vmem:[%s1696_s7] ss:$16 sps:$4 sm:$0xff] (!%p338_p10)  }
  0x3d   : > { %817 = vmatprep.subr.bf16.mxu0 (!%p338_p10), %v1333_v1  ;;  %v1338_v4 = vld [vmem:[%s1696_s7 + $0x8] ss:$16 sps:$4 sm:$0xff] (!%p338_p10)   ;;  %860 = vmatprep.subr.bf16.mxu1 (!%p338_p10), %v1335_v2  ;;  %v1339_v5 = vld [vmem:[%s1696_s7 + $0x24] ss:$16 sps:$4 sm:$0xff] (!%p338_p10)   ;;  %v1341_v6 = vld [vmem:[%s1696_s7 + $0x2c] ss:$16 sps:$4 sm:$0xff] (!%p338_p10)   ;;  %v932_v2 = vlaneseq (!%p338_p10) }
  0x3e   : > { %818 = vmatpush1.bf16.msra.mxu0 (!%p338_p10), %v1337_v3  ;;  %861 = vmatpush1.bf16.msra.mxu1 (!%p338_p10), %v1338_v4  ;;  %v1343_v7 = vld [vmem:[%s1696_s7 + $0x20] ss:$16 sps:$4 sm:$0xff] (!%p338_p10)   ;;  %v1344_v8 = vld [vmem:[%s1696_s7 + $0x28] ss:$16 sps:$4 sm:$0xff] (!%p338_p10)   ;;  %v1345_v9 = vld [vmem:[%s1696_s7 + $0x44] ss:$16 sps:$4 sm:$0xff] (!%p338_p10)  }
  0x3f   : > { %819 = vmatprep.subr.bf16.mxu0 (!%p338_p10), %v1339_v5  ;;  %862 = vmatprep.subr.bf16.mxu1 (!%p338_p10), %v1341_v6  ;;  %v1347_v10 = vld [vmem:[%s1696_s7 + $0x4c] ss:$16 sps:$4 sm:$0xff] (!%p338_p10)   ;;  %v1349_v11 = vld [vmem:[%s1696_s7 + $0x40] ss:$16 sps:$4 sm:$0xff] (!%p338_p10)   ;;  %v1350_v12 = vld [vmem:[%s1696_s7 + $0x48] ss:$16 sps:$4 sm:$0xff] (!%p338_p10)  }
  0x40   : > { %v1351_v13 = vld [vmem:[%s1696_s7 + $0x64] ss:$16 sps:$4 sm:$0xff] (!%p338_p10)   ;;  %v1353_v14 = vld [vmem:[%s1696_s7 + $0x6c] ss:$16 sps:$4 sm:$0xff] (!%p338_p10)   ;;  %v1355_v15 = vld [vmem:[%s1696_s7 + $0x60] ss:$16 sps:$4 sm:$0xff] (!%p338_p10)  }
  0x41   : > { %v1356_v16 = vld [vmem:[%s1696_s7 + $0x68] ss:$16 sps:$4 sm:$0xff]   ;;  %v1357_v17 = vld [vmem:[%s1696_s7 + $0x84] ss:$16 sps:$4 sm:$0xff]   ;;  %v1359_v18 = vld [vmem:[%s1696_s7 + $0x8c] ss:$16 sps:$4 sm:$0xff]  }
  0x42   : > { %820 = vmatpush1.bf16.msra.mxu0 %v1343_v7  ;;  %863 = vmatpush1.bf16.msra.mxu1 %v1344_v8  ;;  %v1361_v19 = vld [vmem:[%s1696_s7 + $0x80] ss:$16 sps:$4 sm:$0xff]   ;;  %v1362_v20 = vld [vmem:[%s1696_s7 + $0x88] ss:$16 sps:$4 sm:$0xff]   ;;  %v1363_v21 = vld [vmem:[%s1696_s7 + $0xa4] ss:$16 sps:$4 sm:$0xff]  }
  0x43   : > { %821 = vmatprep.subr.bf16.mxu0 %v1345_v9  ;;  %864 = vmatprep.subr.bf16.mxu1 %v1347_v10  ;;  %v1365_v22 = vld [vmem:[%s1696_s7 + $0xac] ss:$16 sps:$4 sm:$0xff]   ;;  %v1367_v23 = vld [vmem:[%s1696_s7 + $0xa0] ss:$16 sps:$4 sm:$0xff]   ;;  %v1368_v24 = vld [vmem:[%s1696_s7 + $0xa8] ss:$16 sps:$4 sm:$0xff]  }
  0x44   : > { %v1369_v25 = vld [vmem:[%s1696_s7 + $0xc4] ss:$16 sps:$4 sm:$0xff]   ;;  %v1371_v26 = vld [vmem:[%s1696_s7 + $0xcc] ss:$16 sps:$4 sm:$0xff]   ;;  %v1373_v27 = vld [vmem:[%s1696_s7 + $0xc0] ss:$16 sps:$4 sm:$0xff]  }
  0x45   : > { %v1374_v28 = vld [vmem:[%s1696_s7 + $0xc8] ss:$16 sps:$4 sm:$0xff]   ;;  %v1375_v29 = vld [vmem:[%s1696_s7 + $0xe4] ss:$16 sps:$4 sm:$0xff]   ;;  %v1377_v30 = vld [vmem:[%s1696_s7 + $0xec] ss:$16 sps:$4 sm:$0xff]  }
  0x46   : > { %822 = vmatpush1.bf16.msra.mxu0 %v1349_v11  ;;  %865 = vmatpush1.bf16.msra.mxu1 %v1350_v12  ;;  %v1379_v31 = vld [vmem:[%s1696_s7 + $0xe0] ss:$16 sps:$4 sm:$0xff]   ;;  %v1380_v32 = vld [vmem:[%s1696_s7 + $0xe8] ss:$16 sps:$4 sm:$0xff]   ;;  %v1381_v33 = vld [vmem:[%s1696_s7 + $0x104] ss:$16 sps:$4 sm:$0xff]  }
  0x47   : > { %823 = vmatprep.subr.bf16.mxu0 %v1351_v13  ;;  %866 = vmatprep.subr.bf16.mxu1 %v1353_v14  ;;  %v1383_v34 = vld [vmem:[%s1696_s7 + $0x10c] ss:$16 sps:$4 sm:$0xff]   ;;  %v1385_v35 = vld [vmem:[%s1696_s7 + $0x100] ss:$16 sps:$4 sm:$0xff]   ;;  %v1386_v36 = vld [vmem:[%s1696_s7 + $0x108] ss:$16 sps:$4 sm:$0xff]  }
  0x48   : > { %v1387_v37 = vld [vmem:[%s1696_s7 + $0x124] ss:$16 sps:$4 sm:$0xff]   ;;  %v1389_v38 = vld [vmem:[%s1696_s7 + $0x12c] ss:$16 sps:$4 sm:$0xff]   ;;  %v1391_v39 = vld [vmem:[%s1696_s7 + $0x120] ss:$16 sps:$4 sm:$0xff]  }
  0x49   : > { %v1392_v40 = vld [vmem:[%s1696_s7 + $0x128] ss:$16 sps:$4 sm:$0xff]   ;;  %v1393_v41 = vld [vmem:[%s1696_s7 + $0x144] ss:$16 sps:$4 sm:$0xff]   ;;  %v1395_v42 = vld [vmem:[%s1696_s7 + $0x14c] ss:$16 sps:$4 sm:$0xff]  }
  0x4a   : > { %824 = vmatpush1.bf16.msra.mxu0 %v1355_v15  ;;  %867 = vmatpush1.bf16.msra.mxu1 %v1356_v16  ;;  %v1397_v43 = vld [vmem:[%s1696_s7 + $0x140] ss:$16 sps:$4 sm:$0xff]   ;;  %v1398_v44 = vld [vmem:[%s1696_s7 + $0x148] ss:$16 sps:$4 sm:$0xff]   ;;  %v1399_v45 = vld [vmem:[%s1696_s7 + $0x164] ss:$16 sps:$4 sm:$0xff]  }
  0x4b   : > { %825 = vmatprep.subr.bf16.mxu0 %v1357_v17  ;;  %868 = vmatprep.subr.bf16.mxu1 %v1359_v18  ;;  %v1401_v46 = vld [vmem:[%s1696_s7 + $0x16c] ss:$16 sps:$4 sm:$0xff]   ;;  %v1403_v47 = vld [vmem:[%s1696_s7 + $0x160] ss:$16 sps:$4 sm:$0xff]   ;;  %v1404_v48 = vld [vmem:[%s1696_s7 + $0x168] ss:$16 sps:$4 sm:$0xff]  }
  0x4c   : > { %v1405_v49 = vld [vmem:[%s1696_s7 + $0x184] ss:$16 sps:$4 sm:$0xff]   ;;  %v1407_v50 = vld [vmem:[%s1696_s7 + $0x18c] ss:$16 sps:$4 sm:$0xff]   ;;  %v1409_v51 = vld [vmem:[%s1696_s7 + $0x180] ss:$16 sps:$4 sm:$0xff]  }
  0x4d   : > { %v1410_v52 = vld [vmem:[%s1696_s7 + $0x188] ss:$16 sps:$4 sm:$0xff]   ;;  %v1411_v53 = vld [vmem:[%s1696_s7 + $0x1a4] ss:$16 sps:$4 sm:$0xff]   ;;  %v1413_v54 = vld [vmem:[%s1696_s7 + $0x1ac] ss:$16 sps:$4 sm:$0xff]  }
  0x4e   : > { %826 = vmatpush1.bf16.msra.mxu0 %v1361_v19  ;;  %869 = vmatpush1.bf16.msra.mxu1 %v1362_v20  ;;  %v1415_v55 = vld [vmem:[%s1696_s7 + $0x1a0] ss:$16 sps:$4 sm:$0xff]   ;;  %v1416_v56 = vld [vmem:[%s1696_s7 + $0x1a8] ss:$16 sps:$4 sm:$0xff]   ;;  %v1417_v57 = vld [vmem:[%s1696_s7 + $0x1c4] ss:$16 sps:$4 sm:$0xff]  }
  0x4f   : > { %827 = vmatprep.subr.bf16.mxu0 %v1363_v21  ;;  %870 = vmatprep.subr.bf16.mxu1 %v1365_v22  ;;  %v1419_v58 = vld [vmem:[%s1696_s7 + $0x1cc] ss:$16 sps:$4 sm:$0xff]   ;;  %v1421_v59 = vld [vmem:[%s1696_s7 + $0x1c0] ss:$16 sps:$4 sm:$0xff]   ;;  %v1422_v60 = vld [vmem:[%s1696_s7 + $0x1c8] ss:$16 sps:$4 sm:$0xff]  }
  0x50   : > { %v1423_v61 = vld [vmem:[%s1696_s7 + $0x1e4] ss:$16 sps:$4 sm:$0xff]   ;;  %v1425_v62 = vld [vmem:[%s1696_s7 + $0x1ec] ss:$16 sps:$4 sm:$0xff]   ;;  %v1427_v63 = vld [vmem:[%s1696_s7 + $0x1e0] ss:$16 sps:$4 sm:$0xff]  }
  0x51   : > { %v1428_v0 = vld [vmem:[%s1696_s7 + $0x1e8] ss:$16 sps:$4 sm:$0xff]   ;;  %s1846_s10 = smov (!%p395_p11, %s1211_s10), 7  ;;  %v933_v3 = vshrl.u32 %v932_v2, 7  ;;  %s1210_s20 = sshll.u32 %s344_s30, 5 }
  0x52   : > { %828 = vmatpush1.bf16.msra.mxu0 %v1367_v23  ;;  %871 = vmatpush1.bf16.msra.mxu1 %v1368_v24  ;;  %v1429_v1 = vld [vmem:[%s1834_s0] ss:$8 sps:$4 sm:$0xff]   ;;  %s397_s19 = scalar_lea.vmem %s1836_s2, %s1846_s10  ;;  %s379_s23 = scalar_lea.vmem [#allocation4], %s1210_s20 }
  0x53   : > { %829 = vmatprep.subr.bf16.mxu0 %v1369_v25  ;;  %872 = vmatprep.subr.bf16.mxu1 %v1371_v26  ;;  %v934_v4 = vsub.s32 0, %v933_v3  ;;  %v942_v5 = vsub.s32 2, %v933_v3  ;;  %v930_v6 = vld [vmem:[%s397_s19] sm:$0xf]  ;;  %v938_v7 = vsub.s32 1, %v933_v3  ;;  %v946_v8 = vsub.s32 3, %v933_v3 }
  0x54   : > { %s1292_s12 = sshll.u32 (%p1543_p6), %s1478_s14, 4 }
  0x55   : > { %v935_v9 = vrot.slane %v930_v6, %v934_v4  ;;  %v943_v10 = vrot.slane %v930_v6, %v942_v5  ;;  %v939_v11 = vrot.slane %v930_v6, %v938_v7  ;;  %v947_v12 = vrot.slane %v930_v6, %v946_v8  ;;  %s1072_s26 = scalar_lea.vmem (%p1543_p6), %s1837_s3, %s1292_s12 }
  0x56   : > { %830 = vmatpush1.bf16.msra.mxu0 %v1373_v27  ;;  %873 = vmatpush1.bf16.msra.mxu1 %v1374_v28 }
  0x57   : > { %831 = vmatprep.subr.bf16.mxu0 %v1375_v29  ;;  %874 = vmatprep.subr.bf16.mxu1 %v1377_v30 }
  0x5a   : > { %832 = vmatpush1.bf16.msra.mxu0 %v1379_v31  ;;  %875 = vmatpush1.bf16.msra.mxu1 %v1380_v32 }
  0x5b   : > { %833 = vmatprep.subr.bf16.mxu0 %v1381_v33  ;;  %876 = vmatprep.subr.bf16.mxu1 %v1383_v34 }
  0x5e   : > { %834 = vmatpush1.bf16.msra.mxu0 %v1385_v35  ;;  %877 = vmatpush1.bf16.msra.mxu1 %v1386_v36 }
  0x5f   : > { %835 = vmatprep.subr.bf16.mxu0 %v1387_v37  ;;  %878 = vmatprep.subr.bf16.mxu1 %v1389_v38 }
  0x62   : > { %836 = vmatpush1.bf16.msra.mxu0 %v1391_v39  ;;  %879 = vmatpush1.bf16.msra.mxu1 %v1392_v40 }
  0x63   : > { %837 = vmatprep.subr.bf16.mxu0 %v1393_v41  ;;  %880 = vmatprep.subr.bf16.mxu1 %v1395_v42 }
  0x66   : > { %838 = vmatpush1.bf16.msra.mxu0 %v1397_v43  ;;  %881 = vmatpush1.bf16.msra.mxu1 %v1398_v44 }
  0x67   : > { %839 = vmatprep.subr.bf16.mxu0 %v1399_v45  ;;  %882 = vmatprep.subr.bf16.mxu1 %v1401_v46 }
  0x6a   : > { %840 = vmatpush1.bf16.msra.mxu0 %v1403_v47  ;;  %883 = vmatpush1.bf16.msra.mxu1 %v1404_v48 }
  0x6b   : > { %841 = vmatprep.subr.bf16.mxu0 %v1405_v49  ;;  %884 = vmatprep.subr.bf16.mxu1 %v1407_v50 }
  0x6e   : > { %842 = vmatpush1.bf16.msra.mxu0 %v1409_v51  ;;  %885 = vmatpush1.bf16.msra.mxu1 %v1410_v52 }
  0x6f   : > { %843 = vmatprep.subr.bf16.mxu0 %v1411_v53  ;;  %886 = vmatprep.subr.bf16.mxu1 %v1413_v54 }
  0x72   : > { %844 = vmatpush1.bf16.msra.mxu0 %v1415_v55  ;;  %887 = vmatpush1.bf16.msra.mxu1 %v1416_v56 }
  0x73   : > { %845 = vmatprep.subr.bf16.mxu0 %v1417_v57  ;;  %888 = vmatprep.subr.bf16.mxu1 %v1419_v58 }
  0x76   : > { %846 = vmatpush1.bf16.msra.mxu0 %v1421_v59  ;;  %889 = vmatpush1.bf16.msra.mxu1 %v1422_v60 }
  0x77   : > { %847 = vmatprep.subr.bf16.mxu0 %v1423_v61  ;;  %890 = vmatprep.subr.bf16.mxu1 %v1425_v62 }
  0x7a   : > { %848 = vmatpush1.bf16.msra.mxu0 %v1427_v63  ;;  %891 = vmatpush1.bf16.msra.mxu1 %v1428_v0 }
  0x7d   : > { %850 = vmatmul.mubr.bf16.vlgmr.msra.gmra.mrb[0].mxu0 %v1429_v1  ;;  %893 = vmatmul.mubr.bf16.vlgmr.msra.gmra.mrb[0].mxu1 %v1429_v1 }
 0x150   : > { %v851_v13 = vpop.f32.mrb[0].mxu0  ;;  %v894_v14 = vpop.f32.mrb[0].mxu1 }
 0x151   : > { %v952_v15 = vadd.f32 %v935_v9, %v851_v13  ;;  %v1769_v16 = vadd.f32 %v943_v10, %v894_v14  ;;  %v853_v17 = vpop.f32.mrb[1].mxu0  ;;  %v896_v18 = vpop.f32.mrb[1].mxu1 }
 0x152   : > { %v1771_v19 = vadd.f32 %v939_v11, %v853_v17  ;;  %v1773_v20 = vadd.f32 %v947_v12, %v896_v18  ;;  %v855_v21 = vpop.f32.mrb[2].mxu0  ;;  %v898_v22 = vpop.f32.mrb[2].mxu1 }
 0x153   : > { %v976_v23 = vmul.f32 0.044715, %v952_v15  ;;  %v978_v24 = vmul.f32 0.044715, %v1769_v16  ;;  %v1779_v29 = vadd.f32 %v935_v9, %v855_v21  ;;  %v1781_v30 = vadd.f32 %v943_v10, %v898_v22  ;;  %v857_v31 = vpop.f32.mrb[3].mxu0  ;;  %v900_v32 = vpop.f32.mrb[3].mxu1 }
 0x154   : > { %v977_v26 = vmul.f32 0.044715, %v1771_v19  ;;  %v979_v28 = vmul.f32 0.044715, %v1773_v20  ;;  %v968_v33 = vmul.f32 0.7978846, %v952_v15  ;;  %v1789_v44 = vadd.f32 %v939_v11, %v857_v31 }
 0x155   : > { %v984_v25 = vmul.f32 %v976_v23, %v952_v15  ;;  %v986_v27 = vmul.f32 %v978_v24, %v1769_v16  ;;  %v970_v35 = vmul.f32 0.7978846, %v1769_v16  ;;  %v969_v38 = vmul.f32 0.7978846, %v1771_v19 }
 0x156   : > { %v985_v36 = vmul.f32 %v977_v26, %v1771_v19  ;;  %v971_v39 = vmul.f32 0.7978846, %v1773_v20  ;;  %v987_v40 = vmul.f32 %v979_v28, %v1773_v20  ;;  %v980_v43 = vmul.f32 0.044715, %v1779_v29 }
 0x157   : > { %v992_v34 = vadd.f32 1.0, %v984_v25  ;;  %v994_v37 = vadd.f32 1.0, %v986_v27  ;;  %v982_v47 = vmul.f32 0.044715, %v1781_v30  ;;  %v1792_v48 = vadd.f32 %v947_v12, %v900_v32 }
 0x158   : > { %v993_v42 = vadd.f32 1.0, %v985_v36  ;;  %v995_v46 = vadd.f32 1.0, %v987_v40  ;;  %v988_v50 = vmul.f32 %v980_v43, %v1779_v29  ;;  %v972_v53 = vmul.f32 0.7978846, %v1779_v29 }
 0x159   : > { %v1000_v41 = vmul.f32 %v992_v34, %v968_v33  ;;  %v1002_v45 = vmul.f32 %v994_v37, %v970_v35  ;;  %v990_v52 = vmul.f32 %v982_v47, %v1781_v30  ;;  %v981_v55 = vmul.f32 0.044715, %v1789_v44 }
 0x15a   : > { %v1001_v49 = vmul.f32 %v993_v42, %v969_v38  ;;  %v1003_v51 = vmul.f32 %v995_v46, %v971_v39  ;;  %v996_v54 = vadd.f32 1.0, %v988_v50  ;;  %v974_v56 = vmul.f32 0.7978846, %v1781_v30 }
 0x15b   : > { %1432 = vtanh.f32 %v1000_v41  ;;  %v998_v57 = vadd.f32 1.0, %v990_v52  ;;  %v983_v58 = vmul.f32 0.044715, %v1792_v48  ;;  %v989_v60 = vmul.f32 %v981_v55, %v1789_v44 }
 0x15c   : > { %1434 = vtanh.f32 %v1002_v45  ;;  %v1004_v59 = vmul.f32 %v996_v54, %v972_v53  ;;  %v973_v63 = vmul.f32 0.7978846, %v1789_v44  ;;  %v975_v1 = vmul.f32 0.7978846, %v1792_v48 }
 0x15d   : > { %1436 = vtanh.f32 %v1001_v49  ;;  %v1006_v61 = vmul.f32 %v998_v57, %v974_v56  ;;  %v991_v62 = vmul.f32 %v983_v58, %v1792_v48  ;;  %v997_v0 = vadd.f32 1.0, %v989_v60 }
 0x15e   : > { %1438 = vtanh.f32 %v1003_v51  ;;  %v960_v7 = vmul.f32 0.5, %v952_v15  ;;  %v962_v10 = vmul.f32 0.5, %v1769_v16  ;;  %v961_v14 = vmul.f32 0.5, %v1771_v19 }
 0x15f   : > { %1440 = vtanh.f32 %v1004_v59  ;;  %v999_v2 = vadd.f32 1.0, %v991_v62  ;;  %v1005_v3 = vmul.f32 %v997_v0, %v973_v63  ;;  %v963_v21 = vmul.f32 0.5, %v1773_v20 }
 0x160   : > { %1442 = vtanh.f32 %v1006_v61  ;;  %v964_v31 = vmul.f32 0.5, %v1779_v29  ;;  %v966_v19 = vmul.f32 0.5, %v1781_v30  ;;  %v965_v20 = vmul.f32 0.5, %v1789_v44 }
 0x161   : > { %v1007_v4 = vmul.f32 %v999_v2, %v975_v1  ;;  %1444 = vtanh.f32 %v1005_v3  ;;  %v967_v37 = vmul.f32 0.5, %v1792_v48 }
 0x163   : > { %1446 = vtanh.f32 %v1007_v4 }
 0x165   : > { %v1433_v5 = vpop.eup %1432 }
 0x166   : > { %v1435_v6 = vpop.eup %1434  ;;  %v1016_v8 = vadd.f32 1.0, %v1433_v5 }
 0x167   : > { %v1437_v9 = vpop.eup %1436  ;;  %v1018_v11 = vadd.f32 1.0, %v1435_v6 }
 0x168   : > { %v1439_v12 = vpop.eup %1438  ;;  %v1024_v13 = vmul.f32 %v1016_v8, %v960_v7  ;;  %v1017_v17 = vadd.f32 1.0, %v1437_v9 }
 0x169   : > { %v1026_v18 = vmul.f32 %v1018_v11, %v962_v10  ;;  %v1019_v22 = vadd.f32 1.0, %v1439_v12  ;;  %v1441_v24 = vpop.eup %1440 }
 0x16a   : > { %v1025_v23 = vmul.f32 %v1017_v17, %v961_v14  ;;  %v1443_v25 = vpop.eup %1442  ;;  %v1020_v27 = vadd.f32 1.0, %v1441_v24 }
 0x16b   : > { %v1027_v15 = vmul.f32 %v1019_v22, %v963_v21  ;;  %v1022_v16 = vadd.f32 1.0, %v1443_v25  ;;  %v1445_v32 = vpop.eup %1444 }
 0x16c   : > { %v1288_v26 = vpack.c.bf16 %v1025_v23, %v1024_v13  ;;  %v1028_v34 = vmul.f32 %v1020_v27, %v964_v31  ;;  %v1021_v35 = vadd.f32 1.0, %v1445_v32 }
 0x16d   : > { %v1289_v28 = vpack.c.bf16 %v1027_v15, %v1026_v18  ;;  %v1447_v33 = vpop.eup %1446  ;;  %v1030_v36 = vmul.f32 %v1022_v16, %v966_v19 }
 0x16e   : > { %1056 = vst [vmem:[%s379_s23] sm:$0xff] %v1288_v26  ;;  %v1023_v38 = vadd.f32 1.0, %v1447_v33  ;;  %v1029_v39 = vmul.f32 %v1021_v35, %v965_v20  ;;  %1066 = sbr.rel (!%p1543_p6) target bundleno = 381 (0x17d), region = 67 }
 0x16f   : > { %1057 = vst [vmem:[%s379_s23 + $0x8] sm:$0xff] %v1289_v28 }
 0x170   : > { %v1031_v40 = vmul.f32 %v1023_v38, %v967_v37  ;;  %v1290_v41 = vpack.c.bf16 %v1029_v39, %v1028_v34 }
 0x172   : > { %v1291_v42 = vpack.c.bf16 %v1031_v40, %v1030_v36  ;;  %1058 = vst [vmem:[%s379_s23 + $0x10] sm:$0xff] %v1290_v41 }
 0x174   : > { %1059 = vst [vmem:[%s379_s23 + $0x18] sm:$0xff] %v1291_v42 }
 0x175   : > { %v1085_v29 = vld [vmem:[%s379_s23] sm:$0xff] }
 0x176   : > { %v1087_v30 = vld [vmem:[%s379_s23 + $0x8] sm:$0xff]  ;;  %1086 = vst [vmem:[%s1072_s26] sm:$0xff] %v1085_v29 }
 0x177   : > { %1088 = vst [vmem:[%s1072_s26 + $0x8] sm:$0xff] %v1087_v30 }
 0x179   : > { %v1089_v43 = vld [vmem:[%s379_s23 + $0x10] sm:$0xff] }
 0x17a   : > { %1090 = vst [vmem:[%s1072_s26 + $0x20] sm:$0xff] %v1089_v43 }
 0x17b   : > { %v1091_v44 = vld [vmem:[%s379_s23 + $0x18] sm:$0xff] }
 0x17c   : > { %1092 = vst [vmem:[%s1072_s26 + $0x28] sm:$0xff] %v1091_v44 }
 0x17d PF: > { %s13_s16 = sadd.s32 1, %s1486_s16   ;;  %s1839_s12 = smov %s1474_s13 }
 0x17e   : > { %p10_p12 = scmp.ge.s32.totalorder %s13_s16, 4   ;;  %s1840_s13 = smov %s1548_s22 }
 0x17f   : > { %s1841_s14 = smov %s1482_s15  ;;  %s1842_s15 = smov %s1844_s17 }
 0x180   :  { %12 = sbr.rel (!%p10_p12) target bundleno = 3 (0x3), region = 127 }

// kernel: bloom_forward.19
= control target key start
LH: loop header
LB: loop body
LE: loop exit
PB: predicated region body
PF: predicated region fallthrough
CT: control target
= control target key end

     0   :  { %s1706_s24 = smov 0   ;;  %s1708_s25 = smov 0   ;;  %s1872_s0 = inlined_call_operand.vmem [shape: bf16[16,1024], index: 0, kind: input, shape index: {}]   ;;  %s1873_s1 = inlined_call_operand.vmem [shape: bf16[1024,256], index: 1, kind: input, shape index: {}]   ;;  %s1874_s2 = inlined_call_operand.vmem [shape: f32[1,256], index: 2, kind: input, shape index: {}]   ;;  %s1875_s3 = inlined_call_operand.vmem [shape: bf16[16,256], index: 3, kind: input, shape index: {}]   ;;  %s1876_s4 = inlined_call_operand.vmem [shape: f32[1,256], index: 4, kind: input, shape index: {}]   ;;  %s1877_s5 = inlined_call_operand.vmem [shape: f32[1,256], index: 5, kind: input, shape index: {}]   ;;  %s1878_s6 = inlined_call_operand.vmem [shape: bf16[16,256], index: 6, kind: output, shape index: {0}]   ;;  %s1879_s7 = inlined_call_operand.vmem [shape: bf16[16,256], index: 7, kind: output, shape index: {1}]  }
   0x1   :  { %s1710_s26 = smov 0   ;;  %s1712_s27 = smov 0  }
   0x2   :  { %s1714_s28 = smov 0  }
   0x3 LB: > { %s30_s29 = sadd.s32 1, %s1659_s27  ;;  %p53_p1 = scmp.ne.s32.totalorder %s1651_s25, %s1647_s24  ;;  %s1663_s28 = sphi %s1714_s28, %s18_s28   ;;  %s1659_s27 = sphi %s1712_s27, %s1883_s27   ;;  %s1655_s26 = sphi %s1710_s26, %s1882_s26   ;;  %s1651_s25 = sphi %s1708_s25, %s1881_s25   ;;  %s1647_s24 = sphi %s1706_s24, %s1880_s24  }
   0x4   : > { %p31_p0 = scmp.ge.s32.totalorder %s30_s29, 2  ;;  %p54_p2 = scmp.eq.s32.totalorder %s1663_s28, 0 }
   0x5   : > { %s46_s8 = sadd.s32 1, %s1651_s25  ;;  %p1379_p5 = scmp.ge.s32.totalorder %s1663_s28, 2 }
   0x6   : > { %s1885_s29 = smov (%p31_p0, %s30_s29), 0  ;;  %p55_p3 = por %p54_p2, %p53_p1 }
   0x7   : > { %s42_s30 = ssub.s32 %s1659_s27, %s1885_s29  ;;  %308 = sbr.rel (%p1379_p5) target bundleno = 21 (0x15), region = 32 }
   0x8   : > { %p44_p4 = scmp.eq.s32.totalorder %s42_s30, 0 }
   0xa   : > { %s1741_s9 = scalar_select %p44_p4, %s1651_s25, %s46_s8  }
   0xe   : > { %311 = sbr.rel (!%p55_p3) target bundleno = 21 (0x15), region = 36  ;;  %s313_s10 = sand.u32 (%p55_p3), 1, %s1651_s25  }
   0xf   : > { %s1468_s11 = sshll.u32 (%p55_p3), %s1659_s27, 4  ;;  %s1380_s12 = sshll.u32 (%p55_p3), %s313_s10, 5 }
  0x10   : > { %s321_s15 = scalar_lea.vmem (%p55_p3), %s1872_s0, %s1468_s11  ;;  %s315_s16 = scalar_lea.vmem (%p55_p3), [#allocation3], %s1380_s12 }
  0x11   : > { %v334_v0 = vld [vmem:[%s321_s15] sm:$0xff] (%p55_p3)  ;;  %v336_v1 = vld [vmem:[%s321_s15 + $0x8] sm:$0xff] (%p55_p3) }
  0x12   : > { %v338_v2 = vld [vmem:[%s321_s15 + $0x20] sm:$0xff] (%p55_p3)  ;;  %335 = vst [vmem:[%s315_s16] sm:$0xff] (%p55_p3), %v334_v0  ;;  %337 = vst [vmem:[%s315_s16 + $0x8] sm:$0xff] (%p55_p3), %v336_v1  ;;  %v340_v3 = vld [vmem:[%s321_s15 + $0x28] sm:$0xff] (%p55_p3) }
  0x13   : > { %339 = vst [vmem:[%s315_s16 + $0x10] sm:$0xff] (%p55_p3), %v338_v2  ;;  %341 = vst [vmem:[%s315_s16 + $0x18] sm:$0xff] (%p55_p3), %v340_v3 }
  0x15 PF: > { %p1383_p6 = scmp.ge.s32.totalorder %s1663_s28, 1  ;;  %p361_p7 = scmp.lt.s32.totalorder %s1663_s28, 3 }
  0x17   : > { %p362_p8 = pnand %p1383_p6, %p361_p7 }
  0x18   : > { %s368_s17 = sand.u32 (!%p362_p8), 1, %s1647_s24   ;;  %s1385_s18 = sshll.u32 (!%p362_p8), %s1655_s26, 6 }
  0x19   : > { %365 = sbr.rel (%p362_p8) target bundleno = 510 (0x1fe), region = 63  ;;  %s1384_s19 = sshll.u32 (!%p362_p8), %s368_s17, 5 }
  0x1a   : > { %p450_p9 = scmp.lt.s32.totalorder (!%p362_p8), %s1385_s18, 127  ;;  %s1758_s30 = scalar_lea.vmem (!%p362_p8), [#allocation3], %s1384_s19 }
  0x1b   : > { %p1388_p10 = scmp.ne.s32.totalorder (!%p362_p8), %s1655_s26, 0 }
  0x20   : > { %s1887_s18 = smov (!%p450_p9, %s1385_s18), 127  ;;  %514 = sbr.rel (%p1388_p10) target bundleno = 39 (0x27), region = 71 }
  0x21   : > { %s1469_s20 = sshll.u32 %s1887_s18, 3  ;;  %v1665_v4 = vmov (!%p1388_p10), 0.0  }
  0x22   : > { %s1756_s23 = scalar_lea.vmem %s1873_s1, %s1469_s20  ;;  %515 = vst [vmem:[#allocation2] sm:$0xff] (!%p1388_p10), %v1665_v4  ;;  %516 = vst [vmem:[#allocation2 + $0x8] sm:$0xff] (!%p1388_p10), %v1665_v4 }
  0x23   : > { %517 = vst [vmem:[#allocation2 + $0x10] sm:$0xff] (!%p1388_p10), %v1665_v4  ;;  %518 = vst [vmem:[#allocation2 + $0x18] sm:$0xff] (!%p1388_p10), %v1665_v4 }
  0x27 PF: > { %v1519_v5 = vld [vmem:[%s1756_s23 + $0x4] ss:$8 sps:$4 sm:$0xff]   ;;  %v1523_v7 = vld [vmem:[%s1756_s23] ss:$8 sps:$4 sm:$0xff]   ;;  %v1525_v9 = vld [vmem:[%s1756_s23 + $0x14] ss:$8 sps:$4 sm:$0xff]  }
  0x28   : > { %v1521_v6 = vld [vmem:[%s1756_s23 + $0x104] ss:$8 sps:$4 sm:$0xff]   ;;  %931 = vmatprep.subr.bf16.mxu1 %v1519_v5  ;;  %v1524_v8 = vld [vmem:[%s1756_s23 + $0x100] ss:$8 sps:$4 sm:$0xff]   ;;  %v1527_v10 = vld [vmem:[%s1756_s23 + $0x114] ss:$8 sps:$4 sm:$0xff]  }
  0x29   : > { %974 = vmatprep.subr.bf16.mxu0 %v1521_v6  ;;  %932 = vmatpush1.bf16.msra.mxu1 %v1523_v7  ;;  %v1529_v11 = vld [vmem:[%s1756_s23 + $0x10] ss:$8 sps:$4 sm:$0xff]   ;;  %v1531_v13 = vld [vmem:[%s1756_s23 + $0x24] ss:$8 sps:$4 sm:$0xff]   ;;  %v1535_v15 = vld [vmem:[%s1756_s23 + $0x20] ss:$8 sps:$4 sm:$0xff]  }
  0x2a   : > { %975 = vmatpush1.bf16.msra.mxu0 %v1524_v8  ;;  %933 = vmatprep.subr.bf16.mxu1 %v1525_v9  ;;  %v1530_v12 = vld [vmem:[%s1756_s23 + $0x110] ss:$8 sps:$4 sm:$0xff]   ;;  %v1533_v14 = vld [vmem:[%s1756_s23 + $0x124] ss:$8 sps:$4 sm:$0xff]   ;;  %v1536_v16 = vld [vmem:[%s1756_s23 + $0x120] ss:$8 sps:$4 sm:$0xff]  }
  0x2b   : > { %976 = vmatprep.subr.bf16.mxu0 %v1527_v10  ;;  %v1537_v17 = vld [vmem:[%s1756_s23 + $0x34] ss:$8 sps:$4 sm:$0xff]   ;;  %v1541_v19 = vld [vmem:[%s1756_s23 + $0x30] ss:$8 sps:$4 sm:$0xff]   ;;  %v1543_v21 = vld [vmem:[%s1756_s23 + $0x44] ss:$8 sps:$4 sm:$0xff]  }
  0x2c   : > { %v1539_v18 = vld [vmem:[%s1756_s23 + $0x134] ss:$8 sps:$4 sm:$0xff]   ;;  %v1542_v20 = vld [vmem:[%s1756_s23 + $0x130] ss:$8 sps:$4 sm:$0xff]   ;;  %v1545_v22 = vld [vmem:[%s1756_s23 + $0x144] ss:$8 sps:$4 sm:$0xff]  }
  0x2d   : > { %934 = vmatpush1.bf16.msra.mxu1 %v1529_v11  ;;  %v1547_v23 = vld [vmem:[%s1756_s23 + $0x40] ss:$8 sps:$4 sm:$0xff]   ;;  %v1549_v25 = vld [vmem:[%s1756_s23 + $0x54] ss:$8 sps:$4 sm:$0xff]   ;;  %v1553_v27 = vld [vmem:[%s1756_s23 + $0x50] ss:$8 sps:$4 sm:$0xff]  }
  0x2e   : > { %977 = vmatpush1.bf16.msra.mxu0 %v1530_v12  ;;  %935 = vmatprep.subr.bf16.mxu1 %v1531_v13  ;;  %v1548_v24 = vld [vmem:[%s1756_s23 + $0x140] ss:$8 sps:$4 sm:$0xff]   ;;  %v1551_v26 = vld [vmem:[%s1756_s23 + $0x154] ss:$8 sps:$4 sm:$0xff]   ;;  %v1554_v28 = vld [vmem:[%s1756_s23 + $0x150] ss:$8 sps:$4 sm:$0xff]  }
  0x2f   : > { %978 = vmatprep.subr.bf16.mxu0 %v1533_v14  ;;  %v1555_v29 = vld [vmem:[%s1756_s23 + $0x64] ss:$8 sps:$4 sm:$0xff]   ;;  %v1559_v31 = vld [vmem:[%s1756_s23 + $0x60] ss:$8 sps:$4 sm:$0xff]   ;;  %v1561_v33 = vld [vmem:[%s1756_s23 + $0x74] ss:$8 sps:$4 sm:$0xff]  }
  0x30   : > { %v1557_v30 = vld [vmem:[%s1756_s23 + $0x164] ss:$8 sps:$4 sm:$0xff]   ;;  %v1560_v32 = vld [vmem:[%s1756_s23 + $0x160] ss:$8 sps:$4 sm:$0xff]   ;;  %v1563_v34 = vld [vmem:[%s1756_s23 + $0x174] ss:$8 sps:$4 sm:$0xff]  }
  0x31   : > { %936 = vmatpush1.bf16.msra.mxu1 %v1535_v15  ;;  %v1565_v35 = vld [vmem:[%s1756_s23 + $0x70] ss:$8 sps:$4 sm:$0xff]   ;;  %v1567_v37 = vld [vmem:[%s1756_s23 + $0x84] ss:$8 sps:$4 sm:$0xff]   ;;  %v1571_v39 = vld [vmem:[%s1756_s23 + $0x80] ss:$8 sps:$4 sm:$0xff]  }
  0x32   : > { %979 = vmatpush1.bf16.msra.mxu0 %v1536_v16  ;;  %937 = vmatprep.subr.bf16.mxu1 %v1537_v17  ;;  %v1566_v36 = vld [vmem:[%s1756_s23 + $0x170] ss:$8 sps:$4 sm:$0xff]   ;;  %v1569_v38 = vld [vmem:[%s1756_s23 + $0x184] ss:$8 sps:$4 sm:$0xff]   ;;  %v1572_v40 = vld [vmem:[%s1756_s23 + $0x180] ss:$8 sps:$4 sm:$0xff]  }
  0x33   : > { %980 = vmatprep.subr.bf16.mxu0 %v1539_v18  ;;  %v1573_v41 = vld [vmem:[%s1756_s23 + $0x94] ss:$8 sps:$4 sm:$0xff]   ;;  %v1577_v43 = vld [vmem:[%s1756_s23 + $0x90] ss:$8 sps:$4 sm:$0xff]   ;;  %v1579_v45 = vld [vmem:[%s1756_s23 + $0xa4] ss:$8 sps:$4 sm:$0xff]  }
  0x34   : > { %v1575_v42 = vld [vmem:[%s1756_s23 + $0x194] ss:$8 sps:$4 sm:$0xff]   ;;  %v1578_v44 = vld [vmem:[%s1756_s23 + $0x190] ss:$8 sps:$4 sm:$0xff]   ;;  %v1581_v46 = vld [vmem:[%s1756_s23 + $0x1a4] ss:$8 sps:$4 sm:$0xff]  }
  0x35   : > { %938 = vmatpush1.bf16.msra.mxu1 %v1541_v19  ;;  %v1583_v47 = vld [vmem:[%s1756_s23 + $0xa0] ss:$8 sps:$4 sm:$0xff]   ;;  %v1585_v49 = vld [vmem:[%s1756_s23 + $0xb4] ss:$8 sps:$4 sm:$0xff]   ;;  %v1589_v51 = vld [vmem:[%s1756_s23 + $0xb0] ss:$8 sps:$4 sm:$0xff]  }
  0x36   : > { %981 = vmatpush1.bf16.msra.mxu0 %v1542_v20  ;;  %939 = vmatprep.subr.bf16.mxu1 %v1543_v21  ;;  %v1584_v48 = vld [vmem:[%s1756_s23 + $0x1a0] ss:$8 sps:$4 sm:$0xff]   ;;  %v1587_v50 = vld [vmem:[%s1756_s23 + $0x1b4] ss:$8 sps:$4 sm:$0xff]   ;;  %v1590_v53 = vld [vmem:[%s1756_s23 + $0x1b0] ss:$8 sps:$4 sm:$0xff]  }
  0x37   : > { %982 = vmatprep.subr.bf16.mxu0 %v1545_v22  ;;  %v1617_v52 = vld [vmem:[%s1758_s30 + $0x4] ss:$16 sps:$4 sm:$0xff]   ;;  %v1620_v56 = vld [vmem:[%s1758_s30 + $0xc] ss:$16 sps:$4 sm:$0xff]   ;;  %v1595_v57 = vld [vmem:[%s1756_s23 + $0xc0] ss:$8 sps:$4 sm:$0xff]  }
  0x38   : > { %v1591_v54 = vld [vmem:[%s1756_s23 + $0xc4] ss:$8 sps:$4 sm:$0xff]   ;;  %963 = vmatprep.mubr.bf16.mxu1 %v1617_v52  ;;  %1006 = vmatprep.mubr.bf16.mxu0 %v1620_v56  ;;  %v1596_v58 = vld [vmem:[%s1756_s23 + $0x1c0] ss:$8 sps:$4 sm:$0xff]   ;;  %v1597_v59 = vld [vmem:[%s1756_s23 + $0xd4] ss:$8 sps:$4 sm:$0xff]  }
  0x39   : > { %940 = vmatpush1.bf16.msra.mxu1 %v1547_v23  ;;  %v1593_v55 = vld [vmem:[%s1756_s23 + $0x1c4] ss:$8 sps:$4 sm:$0xff]   ;;  %v1599_v60 = vld [vmem:[%s1756_s23 + $0x1d4] ss:$8 sps:$4 sm:$0xff]   ;;  %v1601_v61 = vld [vmem:[%s1756_s23 + $0xd0] ss:$8 sps:$4 sm:$0xff]  }
  0x3a   : > { %983 = vmatpush1.bf16.msra.mxu0 %v1548_v24  ;;  %941 = vmatprep.subr.bf16.mxu1 %v1549_v25  ;;  %v1602_v62 = vld [vmem:[%s1756_s23 + $0x1d0] ss:$8 sps:$4 sm:$0xff]   ;;  %v1603_v63 = vld [vmem:[%s1756_s23 + $0xe4] ss:$8 sps:$4 sm:$0xff]   ;;  %v1607_v1 = vld [vmem:[%s1756_s23 + $0xe0] ss:$8 sps:$4 sm:$0xff]  }
  0x3b   : > { %984 = vmatprep.subr.bf16.mxu0 %v1551_v26  ;;  %v1605_v0 = vld [vmem:[%s1756_s23 + $0x1e4] ss:$8 sps:$4 sm:$0xff]   ;;  %v1608_v2 = vld [vmem:[%s1756_s23 + $0x1e0] ss:$8 sps:$4 sm:$0xff]   ;;  %v1609_v3 = vld [vmem:[%s1756_s23 + $0xf4] ss:$8 sps:$4 sm:$0xff]  }
  0x3c   : > { %v1611_v4 = vld [vmem:[%s1756_s23 + $0x1f4] ss:$8 sps:$4 sm:$0xff]   ;;  %v1613_v5 = vld [vmem:[%s1756_s23 + $0xf0] ss:$8 sps:$4 sm:$0xff]   ;;  %v519_v10 = vld [vmem:[#allocation2] sm:$0xff]  ;;  %p1457_p11 = scmp.ne.s32.totalorder %s1655_s26, 1 }
  0x3d   : > { %942 = vmatpush1.bf16.msra.mxu1 %v1553_v27  ;;  %v1614_v6 = vld [vmem:[%s1756_s23 + $0x1f0] ss:$8 sps:$4 sm:$0xff]   ;;  %v520_v14 = vld [vmem:[#allocation2 + $0x8] sm:$0xff] }
  0x3e   : > { %985 = vmatpush1.bf16.msra.mxu0 %v1554_v28  ;;  %943 = vmatprep.subr.bf16.mxu1 %v1555_v29  ;;  %v1615_v7 = vld [vmem:[%s1758_s30] ss:$16 sps:$4 sm:$0xff]   ;;  %v1618_v8 = vld [vmem:[%s1758_s30 + $0x8] ss:$16 sps:$4 sm:$0xff]   ;;  %v1035_v29 = vlaneseq (!%p1457_p11) }
  0x3f   : > { %986 = vmatprep.subr.bf16.mxu0 %v1557_v30  ;;  %v521_v18 = vld [vmem:[#allocation2 + $0x10] sm:$0xff]  ;;  %v522_v23 = vld [vmem:[#allocation2 + $0x18] sm:$0xff] }
  0x40   : > { %v1036_v30 = vshrl.u32 (!%p1457_p11), %v1035_v29, 7 }
  0x41   : > { %944 = vmatpush1.bf16.msra.mxu1 %v1559_v31  ;;  %v1049_v31 = vld [vmem:[%s1875_s3] sm:$0xff] (!%p1457_p11) }
  0x42   : > { %987 = vmatpush1.bf16.msra.mxu0 %v1560_v32  ;;  %945 = vmatprep.subr.bf16.mxu1 %v1561_v33  ;;  %v1033_v32 = vld [vmem:[%s1874_s2] sm:$0x3] (!%p1457_p11)  ;;  %v1050_v33 = vld [vmem:[%s1875_s3 + $0x8] sm:$0xff] (!%p1457_p11) }
  0x43   : > { %988 = vmatprep.subr.bf16.mxu0 %v1563_v34 }
  0x45   : > { %946 = vmatpush1.bf16.msra.mxu1 %v1565_v35  ;;  %v1037_v35 = vsub.s32 (!%p1457_p11), 0, %v1036_v30 }
  0x46   : > { %989 = vmatpush1.bf16.msra.mxu0 %v1566_v36  ;;  %947 = vmatprep.subr.bf16.mxu1 %v1567_v37  ;;  %v1041_v36 = vsub.s32 (!%p1457_p11), 1, %v1036_v30 }
  0x47   : > { %990 = vmatprep.subr.bf16.mxu0 %v1569_v38  ;;  %v1051_v38 = vunpack.c.l.bf16 (!%p1457_p11), %v1049_v31 }
  0x49   : > { %948 = vmatpush1.bf16.msra.mxu1 %v1571_v39  ;;  %v1052_v39 = vunpack.c.h.bf16 (!%p1457_p11), %v1049_v31 }
  0x4a   : > { %991 = vmatpush1.bf16.msra.mxu0 %v1572_v40  ;;  %949 = vmatprep.subr.bf16.mxu1 %v1573_v41 }
  0x4b   : > { %992 = vmatprep.subr.bf16.mxu0 %v1575_v42  ;;  %v1038_v42 = vrot.slane (!%p1457_p11), %v1033_v32, %v1037_v35 }
  0x4d   : > { %950 = vmatpush1.bf16.msra.mxu1 %v1577_v43  ;;  %v1042_v43 = vrot.slane (!%p1457_p11), %v1033_v32, %v1041_v36 }
  0x4e   : > { %993 = vmatpush1.bf16.msra.mxu0 %v1578_v44  ;;  %951 = vmatprep.subr.bf16.mxu1 %v1579_v45  ;;  %v1053_v44 = vunpack.c.l.bf16 (!%p1457_p11), %v1050_v33  ;;  %v1054_v45 = vunpack.c.h.bf16 (!%p1457_p11), %v1050_v33 }
  0x4f   : > { %994 = vmatprep.subr.bf16.mxu0 %v1581_v46 }
  0x51   : > { %952 = vmatpush1.bf16.msra.mxu1 %v1583_v47 }
  0x52   : > { %995 = vmatpush1.bf16.msra.mxu0 %v1584_v48  ;;  %953 = vmatprep.subr.bf16.mxu1 %v1585_v49 }
  0x53   : > { %996 = vmatprep.subr.bf16.mxu0 %v1587_v50 }
  0x55   : > { %954 = vmatpush1.bf16.msra.mxu1 %v1589_v51 }
  0x56   : > { %997 = vmatpush1.bf16.msra.mxu0 %v1590_v53  ;;  %955 = vmatprep.subr.bf16.mxu1 %v1591_v54 }
  0x57   : > { %998 = vmatprep.subr.bf16.mxu0 %v1593_v55 }
  0x59   : > { %956 = vmatpush1.bf16.msra.mxu1 %v1595_v57 }
  0x5a   : > { %999 = vmatpush1.bf16.msra.mxu0 %v1596_v58  ;;  %957 = vmatprep.subr.bf16.mxu1 %v1597_v59 }
  0x5b   : > { %1000 = vmatprep.subr.bf16.mxu0 %v1599_v60 }
  0x5d   : > { %958 = vmatpush1.bf16.msra.mxu1 %v1601_v61 }
  0x5e   : > { %1001 = vmatpush1.bf16.msra.mxu0 %v1602_v62  ;;  %959 = vmatprep.subr.bf16.mxu1 %v1603_v63 }
  0x5f   : > { %1002 = vmatprep.subr.bf16.mxu0 %v1605_v0 }
  0x61   : > { %960 = vmatpush1.bf16.msra.mxu1 %v1607_v1 }
  0x62   : > { %1003 = vmatpush1.bf16.msra.mxu0 %v1608_v2  ;;  %961 = vmatprep.subr.bf16.mxu1 %v1609_v3 }
  0x63   : > { %1004 = vmatprep.subr.bf16.mxu0 %v1611_v4 }
  0x65   : > { %962 = vmatpush1.bf16.msra.mxu1 %v1613_v5 }
  0x66   : > { %1005 = vmatpush1.bf16.msra.mxu0 %v1614_v6 }
  0x68   : > { %964 = vmatmul.mubr.bf16.vlgmr.msra.gmra.mrb[0].mxu1 %v1615_v7 }
  0x69   : > { %1007 = vmatmul.mubr.bf16.vlgmr.msra.gmra.mrb[0].mxu0 %v1618_v8 }
 0x13b   : > { %v965_v9 = vpop.f32.mrb[0].mxu1 }
 0x13c   : > { %v1008_v11 = vpop.f32.mrb[0].mxu0  ;;  %v967_v13 = vpop.f32.mrb[1].mxu1 }
 0x13d   : > { %v1009_v12 = vadd.f32 %v1008_v11, %v965_v9  ;;  %v1010_v15 = vpop.f32.mrb[1].mxu0  ;;  %v969_v17 = vpop.f32.mrb[2].mxu1 }
 0x13e   : > { %v1011_v16 = vadd.f32 %v1010_v15, %v967_v13  ;;  %v1012_v19 = vpop.f32.mrb[2].mxu0  ;;  %v971_v22 = vpop.f32.mrb[3].mxu1  ;;  %1028 = sbr.rel (%p1457_p11) target bundleno = 510 (0x1fe), region = 75  ;;  %v1125_v15 = vld [vmem:[%s1877_s5] sm:$0x3] (!%p1457_p11) }
 0x13f   : > { %v1017_v20 = vadd.f32 %v1009_v12, %v519_v10  ;;  %v1013_v21 = vadd.f32 %v1012_v19, %v969_v17  ;;  %v1014_v24 = vpop.f32.mrb[3].mxu0 }
 0x140   : > { %v1018_v25 = vadd.f32 %v1011_v16, %v520_v14  ;;  %v1015_v26 = vadd.f32 %v1014_v24, %v971_v22  ;;  %v1109_v14 = vld [vmem:[%s1876_s4] sm:$0x3] (!%p1457_p11)  ;;  %v1134_v22 = vrot.slane (!%p1457_p11), %v1125_v15, %v1041_v36 }
 0x141   : > { %1021 = vst [vmem:[#allocation2] sm:$0xff] %v1017_v20  ;;  %v1019_v27 = vadd.f32 %v1013_v21, %v521_v18  ;;  %v1114_v18 = vrot.slane (!%p1457_p11), %v1109_v14, %v1037_v35  ;;  %v1118_v19 = vrot.slane (!%p1457_p11), %v1109_v14, %v1041_v36  ;;  %v1130_v21 = vrot.slane (!%p1457_p11), %v1125_v15, %v1037_v35 }
 0x142   : > { %1022 = vst [vmem:[#allocation2 + $0x8] sm:$0xff] %v1018_v25  ;;  %v1020_v28 = vadd.f32 %v1015_v26, %v522_v23 }
 0x143   : > { %1023 = vst [vmem:[#allocation2 + $0x10] sm:$0xff] %v1019_v27 }
 0x144   : > { %1024 = vst [vmem:[#allocation2 + $0x18] sm:$0xff] %v1020_v28 }
 0x148   : > { %v1029_v34 = vld [vmem:[#allocation2] sm:$0xff] }
 0x149   : > { %v1030_v37 = vld [vmem:[#allocation2 + $0x8] sm:$0xff]  ;;  %v1045_v46 = vadd.f32 %v1038_v42, %v1029_v34 }
 0x14a   : > { %v1031_v40 = vld [vmem:[#allocation2 + $0x10] sm:$0xff]  ;;  %v1046_v47 = vadd.f32 %v1042_v43, %v1030_v37 }
 0x14b   : > { %v1032_v41 = vld [vmem:[#allocation2 + $0x18] sm:$0xff]  ;;  %v1047_v48 = vadd.f32 %v1038_v42, %v1031_v40  ;;  %v1055_v50 = vadd.f32 %v1051_v38, %v1045_v46 }
 0x14c   : > { %v1048_v49 = vadd.f32 %v1042_v43, %v1032_v41  ;;  %v1056_v51 = vadd.f32 %v1052_v39, %v1046_v47 }
 0x14d   : > { %v1057_v52 = vadd.f32 %v1053_v44, %v1047_v48  ;;  %v1081_v56 = vmul.f32 %v1055_v50, %v1055_v50 }
 0x14e   : > { %v1058_v53 = vadd.f32 %v1054_v45, %v1048_v49  ;;  %v1073_v54 = vadd.f32 %v1056_v51, %v1055_v50  ;;  %v1470_v55 = vpack.c.bf16 %v1056_v51, %v1055_v50  ;;  %v1082_v57 = vmul.f32 %v1056_v51, %v1056_v51 }
 0x14f   : > { %v1083_v59 = vmul.f32 %v1057_v52, %v1057_v52 }
 0x150   : > { %v1471_v58 = vpack.c.bf16 %v1058_v53, %v1057_v52  ;;  %v1084_v60 = vmul.f32 %v1058_v53, %v1058_v53  ;;  %1074 = vadd.xlane.f32.xlu0 %v1073_v54  ;;  %1071 = vst [vmem:[%s1878_s6] sm:$0xff] %v1470_v55  ;;  %v1085_v61 = vadd.f32 %v1082_v57, %v1081_v56 }
 0x151   : > { %v1076_v62 = vadd.f32 %v1058_v53, %v1057_v52 }
 0x152   : > { %1072 = vst [vmem:[%s1878_s6 + $0x8] sm:$0xff] %v1471_v58  ;;  %1086 = vadd.xlane.f32.xlu1 %v1085_v61  ;;  %v1088_v63 = vadd.f32 %v1084_v60, %v1083_v59 }
 0x154   : > { %1077 = vadd.xlane.f32.xlu0 %v1076_v62 }
 0x156   : > { %1089 = vadd.xlane.f32.xlu1 %v1088_v63 }
 0x1dd   : > { %v1075_v0 = vpop.xlane.xlu0 %1074 }
 0x1de   : > { %v1079_v1 = vmul.f32 0.00390625, %v1075_v0 }
 0x1df   : > { %v1087_v2 = vpop.xlane.xlu1 %1086 }
 0x1e0   : > { %v1091_v3 = vmul.f32 0.00390625, %v1087_v2  ;;  %v1093_v4 = vmul.f32 %v1079_v1, %v1079_v1  ;;  %v1097_v16 = vsub.f32 %v1055_v50, %v1079_v1  ;;  %v1098_v17 = vsub.f32 %v1056_v51, %v1079_v1 }
 0x1e1   : > { %v1078_v5 = vpop.xlane.xlu0 %1077 }
 0x1e2   : > { %v1095_v6 = vsub.f32 %v1091_v3, %v1093_v4  ;;  %v1080_v7 = vmul.f32 0.00390625, %v1078_v5 }
 0x1e3   : > { %v1090_v8 = vpop.xlane.xlu1 %1089 }
 0x1e4   : > { %v1101_v9 = vadd.f32 1e-05, %v1095_v6  ;;  %v1092_v10 = vmul.f32 0.00390625, %v1090_v8  ;;  %v1094_v11 = vmul.f32 %v1080_v7, %v1080_v7  ;;  %v1099_v27 = vsub.f32 %v1057_v52, %v1080_v7 }
 0x1e5   : > { %v1100_v28 = vsub.f32 %v1058_v53, %v1080_v7 }
 0x1e6   : > { %1621 = vrsqrt.f32 %v1101_v9  ;;  %v1096_v12 = vsub.f32 %v1092_v10, %v1094_v11 }
 0x1e8   : > { %v1102_v13 = vadd.f32 1e-05, %v1096_v12 }
 0x1ea   : > { %1623 = vrsqrt.f32 %v1102_v13 }
 0x1f0   : > { %v1622_v20 = vpop.eup %1621 }
 0x1f1   : > { %v1105_v23 = vmul.f32 %v1622_v20, %v1097_v16  ;;  %v1106_v24 = vmul.f32 %v1622_v20, %v1098_v17 }
 0x1f3   : > { %v1121_v25 = vmul.f32 %v1114_v18, %v1105_v23  ;;  %v1122_v26 = vmul.f32 %v1118_v19, %v1106_v24 }
 0x1f4   : > { %v1624_v29 = vpop.eup %1623 }
 0x1f5   : > { %v1137_v30 = vadd.f32 %v1130_v21, %v1121_v25  ;;  %v1138_v31 = vadd.f32 %v1134_v22, %v1122_v26  ;;  %v1107_v32 = vmul.f32 %v1624_v29, %v1099_v27  ;;  %v1108_v33 = vmul.f32 %v1624_v29, %v1100_v28 }
 0x1f7   : > { %v1472_v34 = vpack.c.bf16 %v1138_v31, %v1137_v30  ;;  %v1123_v37 = vmul.f32 %v1114_v18, %v1107_v32  ;;  %v1124_v38 = vmul.f32 %v1118_v19, %v1108_v33 }
 0x1f9   : > { %1153 = vst [vmem:[%s1879_s7] sm:$0xff] %v1472_v34  ;;  %v1139_v35 = vadd.f32 %v1130_v21, %v1123_v37  ;;  %v1140_v36 = vadd.f32 %v1134_v22, %v1124_v38 }
 0x1fb   : > { %v1473_v39 = vpack.c.bf16 %v1140_v36, %v1139_v35 }
 0x1fd   : > { %1154 = vst [vmem:[%s1879_s7 + $0x8] sm:$0xff] %v1473_v39 }
 0x1fe PF: > { %s18_s28 = sadd.s32 1, %s1663_s28   ;;  %s1880_s24 = smov %s1651_s25 }
 0x1ff   : > { %p15_p12 = scmp.ge.s32.totalorder %s18_s28, 4   ;;  %s1881_s25 = smov %s1741_s9 }
 0x200   : > { %s1882_s26 = smov %s1659_s27  ;;  %s1883_s27 = smov %s1885_s29 }
 0x201   :  { %17 = sbr.rel (!%p15_p12) target bundleno = 3 (0x3), region = 137 }

// kernel: bloom_forward.20
= control target key start
LH: loop header
LB: loop body
LE: loop exit
PB: predicated region body
PF: predicated region fallthrough
CT: control target
= control target key end

     0   :  { %s1079_s12 = smov 0   ;;  %s1081_s13 = smov 0   ;;  %s1267_s0 = inlined_call_operand.vmem [shape: bf16[16,256], index: 0, kind: input, shape index: {}]   ;;  %s1268_s1 = inlined_call_operand.vmem [shape: bf16[256,768], index: 1, kind: input, shape index: {}]   ;;  %s1269_s2 = inlined_call_operand.vmem [shape: f32[1,768], index: 2, kind: input, shape index: {}]   ;;  %s1270_s3 = inlined_call_operand.vmem [shape: bf16[16,768], index: 3, kind: output, shape index: {}]  }
   0x1   :  { %s1083_s14 = smov 0   ;;  %s1085_s15 = smov 0  }
   0x2   :  { %s1087_s16 = smov 0  }
   0x3 LB: > { %s28_s17 = sadd.s32 1, %s1053_s15  ;;  %s871_s18 = sadd.s32 4294967295, %s1057_s16   ;;  %s1057_s16 = sphi %s1087_s16, %s13_s16   ;;  %s1053_s15 = sphi %s1085_s15, %s1275_s15   ;;  %s1049_s14 = sphi %s1083_s14, %s1274_s14   ;;  %s1045_s13 = sphi %s1081_s13, %s1273_s13   ;;  %s1041_s12 = sphi %s1079_s12, %s1272_s12  }
   0x4   : > { %p30_p0 = scmp.ge.s32.totalorder %s28_s17, 3  ;;  %p76_p1 = scmp.ne.s32.totalorder %s1045_s13, %s1041_s12 }
   0x5   : > { %p77_p2 = scmp.eq.s32.totalorder %s1057_s16, 0  ;;  %p134_p4 = scmp.eq.s32.totalorder %s871_s18, 2 }
   0x6   : > { %s1277_s17 = smov (%p30_p0, %s28_s17), 0  ;;  %s69_s20 = sadd.s32 1, %s1045_s13 }
   0x7   : > { %p78_p3 = por %p77_p2, %p76_p1  ;;  %s65_s19 = ssub.s32 %s1053_s15, %s1277_s17 }
   0x8   : > { %p67_p5 = scmp.eq.s32.totalorder %s65_s19, 0  ;;  %p1114_p6 = por %p134_p4, %p76_p1 }
   0x9   : > { %p875_p7 = scmp.ge.s32.totalorder %s1057_s16, 3 }
   0xa   : > { %s1119_s22 = scalar_select %p67_p5, %s1045_s13, %s69_s20  }
   0xb   : > { %171 = sbr.rel (%p875_p7) target bundleno = 38 (0x26), region = 20 }
  0x12   : > { %174 = sbr.rel (!%p78_p3) target bundleno = 38 (0x26), region = 24  ;;  %s176_s23 = sand.u32 (%p78_p3), 1, %s1045_s13  }
  0x13   : > { %s924_s24 = sshll.u32 (%p78_p3), %s1053_s15, 3  ;;  %s876_s25 = sshll.u32 (%p78_p3), %s176_s23, 8 }
  0x14   : > { %s1127_s28 = scalar_lea.vmem (%p78_p3), %s1268_s1, %s924_s24  ;;  %s1132_s29 = scalar_lea.vmem (%p78_p3), [#allocation3], %s876_s25 }
  0x15   : > { %v274_v0 = vld [vmem:[%s1127_s28] sm:$0xff] (%p78_p3)  ;;  %v276_v1 = vld [vmem:[%s1127_s28 + $0x18] sm:$0xff] (%p78_p3)  ;;  %v278_v2 = vld [vmem:[%s1127_s28 + $0x30] sm:$0xff] (%p78_p3) }
  0x16   : > { %275 = vst [vmem:[%s1132_s29] sm:$0xff] (%p78_p3), %v274_v0  ;;  %277 = vst [vmem:[%s1132_s29 + $0x8] sm:$0xff] (%p78_p3), %v276_v1  ;;  %v280_v3 = vld [vmem:[%s1127_s28 + $0x48] sm:$0xff] (%p78_p3)  ;;  %v282_v4 = vld [vmem:[%s1127_s28 + $0x60] sm:$0xff] (%p78_p3) }
  0x17   : > { %279 = vst [vmem:[%s1132_s29 + $0x10] sm:$0xff] (%p78_p3), %v278_v2  ;;  %v284_v5 = vld [vmem:[%s1127_s28 + $0x78] sm:$0xff] (%p78_p3)  ;;  %281 = vst [vmem:[%s1132_s29 + $0x18] sm:$0xff] (%p78_p3), %v280_v3  ;;  %v286_v6 = vld [vmem:[%s1127_s28 + $0x90] sm:$0xff] (%p78_p3) }
  0x18   : > { %283 = vst [vmem:[%s1132_s29 + $0x20] sm:$0xff] (%p78_p3), %v282_v4  ;;  %285 = vst [vmem:[%s1132_s29 + $0x28] sm:$0xff] (%p78_p3), %v284_v5  ;;  %v288_v7 = vld [vmem:[%s1127_s28 + $0xa8] sm:$0xff] (%p78_p3)  ;;  %v290_v8 = vld [vmem:[%s1127_s28 + $0xc0] sm:$0xff] (%p78_p3) }
  0x19   : > { %287 = vst [vmem:[%s1132_s29 + $0x30] sm:$0xff] %v286_v6  ;;  %289 = vst [vmem:[%s1132_s29 + $0x38] sm:$0xff] %v288_v7  ;;  %v292_v9 = vld [vmem:[%s1127_s28 + $0xd8] sm:$0xff]  ;;  %v294_v10 = vld [vmem:[%s1127_s28 + $0xf0] sm:$0xff] }
  0x1a   : > { %291 = vst [vmem:[%s1132_s29 + $0x40] sm:$0xff] %v290_v8  ;;  %v296_v11 = vld [vmem:[%s1127_s28 + $0x108] sm:$0xff]  ;;  %293 = vst [vmem:[%s1132_s29 + $0x48] sm:$0xff] %v292_v9  ;;  %v298_v12 = vld [vmem:[%s1127_s28 + $0x120] sm:$0xff] }
  0x1b   : > { %295 = vst [vmem:[%s1132_s29 + $0x50] sm:$0xff] %v294_v10  ;;  %297 = vst [vmem:[%s1132_s29 + $0x58] sm:$0xff] %v296_v11  ;;  %v300_v13 = vld [vmem:[%s1127_s28 + $0x138] sm:$0xff]  ;;  %v302_v14 = vld [vmem:[%s1127_s28 + $0x150] sm:$0xff] }
  0x1c   : > { %299 = vst [vmem:[%s1132_s29 + $0x60] sm:$0xff] %v298_v12  ;;  %301 = vst [vmem:[%s1132_s29 + $0x68] sm:$0xff] %v300_v13  ;;  %v304_v15 = vld [vmem:[%s1127_s28 + $0x168] sm:$0xff]  ;;  %v306_v16 = vld [vmem:[%s1127_s28 + $0x180] sm:$0xff] }
  0x1d   : > { %303 = vst [vmem:[%s1132_s29 + $0x70] sm:$0xff] %v302_v14  ;;  %v308_v17 = vld [vmem:[%s1127_s28 + $0x198] sm:$0xff]  ;;  %305 = vst [vmem:[%s1132_s29 + $0x78] sm:$0xff] %v304_v15  ;;  %v310_v18 = vld [vmem:[%s1127_s28 + $0x1b0] sm:$0xff] }
  0x1e   : > { %307 = vst [vmem:[%s1132_s29 + $0x80] sm:$0xff] %v306_v16  ;;  %309 = vst [vmem:[%s1132_s29 + $0x88] sm:$0xff] %v308_v17  ;;  %v312_v19 = vld [vmem:[%s1127_s28 + $0x1c8] sm:$0xff]  ;;  %v314_v20 = vld [vmem:[%s1127_s28 + $0x1e0] sm:$0xff] }
  0x1f   : > { %311 = vst [vmem:[%s1132_s29 + $0x90] sm:$0xff] %v310_v18  ;;  %313 = vst [vmem:[%s1132_s29 + $0x98] sm:$0xff] %v312_v19  ;;  %v316_v21 = vld [vmem:[%s1127_s28 + $0x1f8] sm:$0xff]  ;;  %v318_v22 = vld [vmem:[%s1127_s28 + $0x210] sm:$0xff] }
  0x20   : > { %315 = vst [vmem:[%s1132_s29 + $0xa0] sm:$0xff] %v314_v20  ;;  %v320_v23 = vld [vmem:[%s1127_s28 + $0x228] sm:$0xff]  ;;  %317 = vst [vmem:[%s1132_s29 + $0xa8] sm:$0xff] %v316_v21  ;;  %v322_v24 = vld [vmem:[%s1127_s28 + $0x240] sm:$0xff] }
  0x21   : > { %319 = vst [vmem:[%s1132_s29 + $0xb0] sm:$0xff] %v318_v22  ;;  %321 = vst [vmem:[%s1132_s29 + $0xb8] sm:$0xff] %v320_v23  ;;  %v324_v25 = vld [vmem:[%s1127_s28 + $0x258] sm:$0xff]  ;;  %v326_v26 = vld [vmem:[%s1127_s28 + $0x270] sm:$0xff] }
  0x22   : > { %323 = vst [vmem:[%s1132_s29 + $0xc0] sm:$0xff] %v322_v24  ;;  %325 = vst [vmem:[%s1132_s29 + $0xc8] sm:$0xff] %v324_v25  ;;  %v328_v27 = vld [vmem:[%s1127_s28 + $0x288] sm:$0xff]  ;;  %v330_v28 = vld [vmem:[%s1127_s28 + $0x2a0] sm:$0xff] }
  0x23   : > { %327 = vst [vmem:[%s1132_s29 + $0xd0] sm:$0xff] %v326_v26  ;;  %v332_v29 = vld [vmem:[%s1127_s28 + $0x2b8] sm:$0xff]  ;;  %329 = vst [vmem:[%s1132_s29 + $0xd8] sm:$0xff] %v328_v27  ;;  %v334_v30 = vld [vmem:[%s1127_s28 + $0x2d0] sm:$0xff] }
  0x24   : > { %331 = vst [vmem:[%s1132_s29 + $0xe0] sm:$0xff] %v330_v28  ;;  %333 = vst [vmem:[%s1132_s29 + $0xe8] sm:$0xff] %v332_v29  ;;  %v336_v31 = vld [vmem:[%s1127_s28 + $0x2e8] sm:$0xff] }
  0x25   : > { %335 = vst [vmem:[%s1132_s29 + $0xf0] sm:$0xff] %v334_v30  ;;  %337 = vst [vmem:[%s1132_s29 + $0xf8] sm:$0xff] %v336_v31 }
  0x26 PF: > { %p879_p8 = scmp.ge.s32.totalorder %s1057_s16, 1  ;;  %p350_p9 = scmp.lt.s32.totalorder %s1057_s16, 4 }
  0x28   : > { %p351_p10 = pnand %p879_p8, %p350_p9 }
  0x29   : > { %s357_s30 = sand.u32 (!%p351_p10), 1, %s1041_s12   ;;  %v1018_v32 = vld [vmem:[%s1267_s0 + $0x4] ss:$8 sps:$4 sm:$0xff] (!%p351_p10)   ;;  %v1016_v1 = vld [vmem:[%s1267_s0] ss:$8 sps:$4 sm:$0xff] (!%p351_p10)   ;;  %s882_s10 = sshll.u32 (!%p351_p10), %s1049_s14, 1  ;;  %v690_v2 = vlaneseq (!%p351_p10) }
  0x2a   : > { %354 = sbr.rel (%p351_p10) target bundleno = 337 (0x151), region = 66  ;;  %s880_s4 = sshll.u32 (!%p351_p10), %s357_s30, 8  ;;  %662 = vmatprep.mubr.bf16.mxu0 (!%p351_p10), %v1018_v32 }
  0x2b   : > { %s1203_s7 = scalar_lea.vmem (!%p351_p10), [#allocation3], %s880_s4  ;;  %p408_p11 = scmp.lt.s32.totalorder (!%p351_p10), %s882_s10, 5  ;;  %v691_v3 = vshrl.u32 (!%p351_p10), %v690_v2, 7 }
  0x2c   : > { %v968_v33 = vld [vmem:[%s1203_s7 + $0x4] ss:$8 sps:$4 sm:$0xff] (!%p351_p10)   ;;  %v970_v34 = vld [vmem:[%s1203_s7] ss:$8 sps:$4 sm:$0xff] (!%p351_p10)   ;;  %v971_v35 = vld [vmem:[%s1203_s7 + $0x14] ss:$8 sps:$4 sm:$0xff] (!%p351_p10)  }
  0x2d   : > { %630 = vmatprep.subr.bf16.mxu0 (!%p351_p10), %v968_v33  ;;  %v973_v36 = vld [vmem:[%s1203_s7 + $0x10] ss:$8 sps:$4 sm:$0xff] (!%p351_p10)   ;;  %v974_v37 = vld [vmem:[%s1203_s7 + $0x24] ss:$8 sps:$4 sm:$0xff] (!%p351_p10)   ;;  %v976_v38 = vld [vmem:[%s1203_s7 + $0x20] ss:$8 sps:$4 sm:$0xff] (!%p351_p10)  }
  0x2e   : > { %631 = vmatpush1.bf16.msra.mxu0 (!%p351_p10), %v970_v34  ;;  %v977_v39 = vld [vmem:[%s1203_s7 + $0x34] ss:$8 sps:$4 sm:$0xff] (!%p351_p10)   ;;  %v979_v40 = vld [vmem:[%s1203_s7 + $0x30] ss:$8 sps:$4 sm:$0xff] (!%p351_p10)   ;;  %v980_v41 = vld [vmem:[%s1203_s7 + $0x44] ss:$8 sps:$4 sm:$0xff] (!%p351_p10)  }
  0x2f   : > { %632 = vmatprep.subr.bf16.mxu0 (!%p351_p10), %v971_v35  ;;  %v982_v42 = vld [vmem:[%s1203_s7 + $0x40] ss:$8 sps:$4 sm:$0xff] (!%p351_p10)   ;;  %v983_v43 = vld [vmem:[%s1203_s7 + $0x54] ss:$8 sps:$4 sm:$0xff] (!%p351_p10)   ;;  %v985_v44 = vld [vmem:[%s1203_s7 + $0x50] ss:$8 sps:$4 sm:$0xff] (!%p351_p10)  }
  0x30   : > { %v986_v45 = vld [vmem:[%s1203_s7 + $0x64] ss:$8 sps:$4 sm:$0xff] (!%p351_p10)   ;;  %v988_v46 = vld [vmem:[%s1203_s7 + $0x60] ss:$8 sps:$4 sm:$0xff] (!%p351_p10)   ;;  %v989_v47 = vld [vmem:[%s1203_s7 + $0x74] ss:$8 sps:$4 sm:$0xff] (!%p351_p10)  }
  0x31   : > { %v991_v48 = vld [vmem:[%s1203_s7 + $0x70] ss:$8 sps:$4 sm:$0xff]   ;;  %v992_v49 = vld [vmem:[%s1203_s7 + $0x84] ss:$8 sps:$4 sm:$0xff]   ;;  %v994_v50 = vld [vmem:[%s1203_s7 + $0x80] ss:$8 sps:$4 sm:$0xff]  }
  0x32   : > { %633 = vmatpush1.bf16.msra.mxu0 %v973_v36  ;;  %v995_v51 = vld [vmem:[%s1203_s7 + $0x94] ss:$8 sps:$4 sm:$0xff]   ;;  %v997_v52 = vld [vmem:[%s1203_s7 + $0x90] ss:$8 sps:$4 sm:$0xff]   ;;  %v998_v53 = vld [vmem:[%s1203_s7 + $0xa4] ss:$8 sps:$4 sm:$0xff]  }
  0x33   : > { %634 = vmatprep.subr.bf16.mxu0 %v974_v37  ;;  %v1000_v54 = vld [vmem:[%s1203_s7 + $0xa0] ss:$8 sps:$4 sm:$0xff]   ;;  %v1001_v55 = vld [vmem:[%s1203_s7 + $0xb4] ss:$8 sps:$4 sm:$0xff]   ;;  %v1003_v56 = vld [vmem:[%s1203_s7 + $0xb0] ss:$8 sps:$4 sm:$0xff]  }
  0x34   : > { %v1004_v57 = vld [vmem:[%s1203_s7 + $0xc4] ss:$8 sps:$4 sm:$0xff]   ;;  %v1006_v58 = vld [vmem:[%s1203_s7 + $0xc0] ss:$8 sps:$4 sm:$0xff]   ;;  %v1007_v59 = vld [vmem:[%s1203_s7 + $0xd4] ss:$8 sps:$4 sm:$0xff]  }
  0x35   : > { %v1009_v60 = vld [vmem:[%s1203_s7 + $0xd0] ss:$8 sps:$4 sm:$0xff]   ;;  %v1010_v61 = vld [vmem:[%s1203_s7 + $0xe4] ss:$8 sps:$4 sm:$0xff]   ;;  %v1012_v62 = vld [vmem:[%s1203_s7 + $0xe0] ss:$8 sps:$4 sm:$0xff]  }
  0x36   : > { %635 = vmatpush1.bf16.msra.mxu0 %v976_v38  ;;  %v1013_v63 = vld [vmem:[%s1203_s7 + $0xf4] ss:$8 sps:$4 sm:$0xff]   ;;  %v1015_v0 = vld [vmem:[%s1203_s7 + $0xf0] ss:$8 sps:$4 sm:$0xff]   ;;  %s1279_s10 = smov (!%p408_p11, %s882_s10), 5  ;;  %v692_v4 = vsub.s32 0, %v691_v3 }
  0x37   : > { %636 = vmatprep.subr.bf16.mxu0 %v977_v39  ;;  %s410_s19 = scalar_lea.vmem %s1269_s2, %s1279_s10  ;;  %v696_v6 = vsub.s32 1, %v691_v3  ;;  %s881_s20 = sshll.u32 %s357_s30, 4 }
  0x38   : > { %v688_v5 = vld [vmem:[%s410_s19] sm:$0x3]  ;;  %s392_s23 = scalar_lea.vmem [#allocation4], %s881_s20  ;;  %s927_s24 = sshll.u32 (%p1114_p6), %s1049_s14, 3 }
  0x39   : > { %v693_v7 = vrot.slane %v688_v5, %v692_v4  ;;  %v697_v8 = vrot.slane %v688_v5, %v696_v6  ;;  %s730_s26 = scalar_lea.vmem (%p1114_p6), %s1270_s3, %s927_s24 }
  0x3a   : > { %637 = vmatpush1.bf16.msra.mxu0 %v979_v40 }
  0x3b   : > { %638 = vmatprep.subr.bf16.mxu0 %v980_v41 }
  0x3e   : > { %639 = vmatpush1.bf16.msra.mxu0 %v982_v42 }
  0x3f   : > { %640 = vmatprep.subr.bf16.mxu0 %v983_v43 }
  0x42   : > { %641 = vmatpush1.bf16.msra.mxu0 %v985_v44 }
  0x43   : > { %642 = vmatprep.subr.bf16.mxu0 %v986_v45 }
  0x46   : > { %643 = vmatpush1.bf16.msra.mxu0 %v988_v46 }
  0x47   : > { %644 = vmatprep.subr.bf16.mxu0 %v989_v47 }
  0x4a   : > { %645 = vmatpush1.bf16.msra.mxu0 %v991_v48 }
  0x4b   : > { %646 = vmatprep.subr.bf16.mxu0 %v992_v49 }
  0x4e   : > { %647 = vmatpush1.bf16.msra.mxu0 %v994_v50 }
  0x4f   : > { %648 = vmatprep.subr.bf16.mxu0 %v995_v51 }
  0x52   : > { %649 = vmatpush1.bf16.msra.mxu0 %v997_v52 }
  0x53   : > { %650 = vmatprep.subr.bf16.mxu0 %v998_v53 }
  0x56   : > { %651 = vmatpush1.bf16.msra.mxu0 %v1000_v54 }
  0x57   : > { %652 = vmatprep.subr.bf16.mxu0 %v1001_v55 }
  0x5a   : > { %653 = vmatpush1.bf16.msra.mxu0 %v1003_v56 }
  0x5b   : > { %654 = vmatprep.subr.bf16.mxu0 %v1004_v57 }
  0x5e   : > { %655 = vmatpush1.bf16.msra.mxu0 %v1006_v58 }
  0x5f   : > { %656 = vmatprep.subr.bf16.mxu0 %v1007_v59 }
  0x62   : > { %657 = vmatpush1.bf16.msra.mxu0 %v1009_v60 }
  0x63   : > { %658 = vmatprep.subr.bf16.mxu0 %v1010_v61 }
  0x66   : > { %659 = vmatpush1.bf16.msra.mxu0 %v1012_v62 }
  0x67   : > { %660 = vmatprep.subr.bf16.mxu0 %v1013_v63 }
  0x6a   : > { %661 = vmatpush1.bf16.msra.mxu0 %v1015_v0 }
  0x6d   : > { %663 = vmatmul.mubr.bf16.vlgmr.msra.gmra.mrb[0].mxu0 %v1016_v1 }
 0x140   : > { %v664_v9 = vpop.f32.mrb[0].mxu0 }
 0x141   : > { %v700_v10 = vadd.f32 %v693_v7, %v664_v9  ;;  %v666_v11 = vpop.f32.mrb[1].mxu0 }
 0x142   : > { %v701_v12 = vadd.f32 %v697_v8, %v666_v11  ;;  %v668_v13 = vpop.f32.mrb[2].mxu0  ;;  %724 = sbr.rel (!%p1114_p6) target bundleno = 337 (0x151), region = 82 }
 0x143   : > { %v702_v14 = vadd.f32 %v693_v7, %v668_v13  ;;  %v670_v15 = vpop.f32.mrb[3].mxu0 }
 0x144   : > { %v925_v16 = vpack.c.bf16 %v701_v12, %v700_v10  ;;  %v703_v17 = vadd.f32 %v697_v8, %v670_v15 }
 0x146   : > { %716 = vst [vmem:[%s392_s23] sm:$0xff] %v925_v16  ;;  %v926_v18 = vpack.c.bf16 %v703_v17, %v702_v14 }
 0x148   : > { %717 = vst [vmem:[%s392_s23 + $0x8] sm:$0xff] %v926_v18 }
 0x14d   : > { %v760_v19 = vld [vmem:[%s392_s23] sm:$0xff] }
 0x14e   : > { %761 = vst [vmem:[%s730_s26] sm:$0xff] %v760_v19 }
 0x14f   : > { %v762_v20 = vld [vmem:[%s392_s23 + $0x8] sm:$0xff] }
 0x150   : > { %763 = vst [vmem:[%s730_s26 + $0x18] sm:$0xff] %v762_v20 }
 0x151 PF: > { %s13_s16 = sadd.s32 1, %s1057_s16   ;;  %s1272_s12 = smov %s1045_s13 }
 0x152   : > { %p10_p12 = scmp.ge.s32.totalorder %s13_s16, 5   ;;  %s1273_s13 = smov %s1119_s22 }
 0x153   : > { %s1274_s14 = smov %s1053_s15  ;;  %s1275_s15 = smov %s1277_s17 }
 0x154   :  { %12 = sbr.rel (!%p10_p12) target bundleno = 3 (0x3), region = 157 }

// kernel: bloom_forward.25
= control target key start
LH: loop header
LB: loop body
LE: loop exit
PB: predicated region body
PF: predicated region fallthrough
CT: control target
= control target key end

     0   :  { %s188_s0 = inlined_call_operand.vmem [shape: bf16[16,256], index: 0, kind: input, shape index: {}]   ;;  %s189_s1 = inlined_call_operand.vmem [shape: f32[1,256], index: 1, kind: input, shape index: {}]   ;;  %s190_s2 = inlined_call_operand.vmem [shape: f32[1,256], index: 2, kind: input, shape index: {}]   ;;  %s191_s3 = inlined_call_operand.hbm [shape: f32[16,256], index: 3, kind: output, shape index: {}]  }
   0x1   :  { %v15_v0 = vld [vmem:[%s188_s0] sm:$0xff]  ;;  %v16_v1 = vld [vmem:[%s188_s0 + $0x8] sm:$0xff] }
   0x2   :  { %8 = vsyncpa [#allocation3], 0  ;;  %v17_v2 = vunpack.c.l.bf16 %v15_v0  ;;  %v18_v3 = vunpack.c.h.bf16 %v15_v0  ;;  %v19_v4 = vunpack.c.l.bf16 %v16_v1  ;;  %v20_v5 = vunpack.c.h.bf16 %v16_v1  ;;  %v58_v32 = vld [vmem:[%s189_s1] sm:$0x3]  ;;  %s141_s1 = smov [#allocation2]  }
   0x3   :  { %v60_v22 = vlaneseq  ;;  %v74_v33 = vld [vmem:[%s190_s2] sm:$0x3]  ;;  %s99_s2 = sshll.u32 %s141_s1, 4  ;;  %s100_s2 = int_to_ptr.vmem [resolvable:$true] %s99_s2 }
   0x4   :  { %v21_v6 = vadd.f32 %v18_v3, %v17_v2  ;;  %v30_v7 = vmul.f32 %v17_v2, %v17_v2  ;;  %v31_v8 = vmul.f32 %v18_v3, %v18_v3  ;;  %v32_v9 = vmul.f32 %v19_v4, %v19_v4  ;;  %s117_s19 = scalar_lea.vmem %s100_s2, 512  ;;  %p122_p1 = scmp.lt.s32.totalorder %s100_s2, %s100_s2 }
   0x5   :  { %v33_v10 = vmul.f32 %v20_v5, %v20_v5  ;;  %v24_v12 = vadd.f32 %v20_v5, %v19_v4  ;;  %v61_v27 = vshrl.u32 %v60_v22, 7  ;;  %p118_p0 = scmp.ne.s32.totalorder %s100_s2, %s117_s19  ;;  %p123_p2 = scmp.lt.s32.totalorder %s117_s19, %s117_s19 }
   0x6   :  { %22 = vadd.xlane.f32.xlu0 %v21_v6  ;;  %v34_v11 = vadd.f32 %v31_v8, %v30_v7 }
   0x7   :  { %v37_v13 = vadd.f32 %v33_v10, %v32_v9  ;;  %v62_v30 = vsub.s32 0, %v61_v27  ;;  %v66_v31 = vsub.s32 1, %v61_v27  ;;  %p124_p3 = por %p123_p2, %p122_p1 }
   0x8   :  { %35 = vadd.xlane.f32.xlu1 %v34_v11 }
   0x9   :  { %v63_v36 = vrot.slane %v58_v32, %v62_v30  ;;  %v67_v37 = vrot.slane %v58_v32, %v66_v31  ;;  %v79_v41 = vrot.slane %v74_v33, %v62_v30  ;;  %v83_v42 = vrot.slane %v74_v33, %v66_v31  ;;  %p125_p4 = pnand %p124_p3, %p118_p0 }
   0xa   :  { %25 = vadd.xlane.f32.xlu0 %v24_v12 }
   0xc   :  { %38 = vadd.xlane.f32.xlu1 %v37_v13 }
  0x93   :  { %v23_v14 = vpop.xlane.xlu0 %22 }
  0x94   :  { %v28_v15 = vmul.f32 0.00390625, %v23_v14 }
  0x95   :  { %v36_v16 = vpop.xlane.xlu1 %35 }
  0x96   :  { %v40_v17 = vmul.f32 0.00390625, %v36_v16  ;;  %v42_v18 = vmul.f32 %v28_v15, %v28_v15  ;;  %v46_v34 = vsub.f32 %v17_v2, %v28_v15  ;;  %v47_v35 = vsub.f32 %v18_v3, %v28_v15 }
  0x97   :  { %v26_v19 = vpop.xlane.xlu0 %25 }
  0x98   :  { %v44_v20 = vsub.f32 %v40_v17, %v42_v18  ;;  %v29_v21 = vmul.f32 0.00390625, %v26_v19 }
  0x99   :  { %v39_v23 = vpop.xlane.xlu1 %38 }
  0x9a   :  { %v50_v24 = vadd.f32 1e-05, %v44_v20  ;;  %v41_v25 = vmul.f32 0.00390625, %v39_v23  ;;  %v43_v26 = vmul.f32 %v29_v21, %v29_v21  ;;  %v48_v45 = vsub.f32 %v19_v4, %v29_v21 }
  0x9b   :  { %v49_v46 = vsub.f32 %v20_v5, %v29_v21 }
  0x9c   :  { %113 = vrsqrt.f32 %v50_v24  ;;  %v45_v28 = vsub.f32 %v41_v25, %v43_v26 }
  0x9e   :  { %v51_v29 = vadd.f32 1e-05, %v45_v28 }
  0xa0   :  { %115 = vrsqrt.f32 %v51_v29 }
  0xa6   :  { %v114_v38 = vpop.eup %113 }
  0xa7   :  { %v54_v39 = vmul.f32 %v114_v38, %v46_v34  ;;  %v55_v40 = vmul.f32 %v114_v38, %v47_v35 }
  0xa9   :  { %v70_v43 = vmul.f32 %v63_v36, %v54_v39  ;;  %v71_v44 = vmul.f32 %v67_v37, %v55_v40 }
  0xaa   :  { %v116_v47 = vpop.eup %115 }
  0xab   :  { %v86_v48 = vadd.f32 %v79_v41, %v70_v43  ;;  %v87_v49 = vadd.f32 %v83_v42, %v71_v44  ;;  %v56_v50 = vmul.f32 %v116_v47, %v48_v45  ;;  %v57_v51 = vmul.f32 %v116_v47, %v49_v46 }
  0xad   :  { %90 = vst [vmem:[#allocation2] sm:$0xff] %v86_v48  ;;  %91 = vst [vmem:[#allocation2 + $0x8] sm:$0xff] %v87_v49  ;;  %v72_v52 = vmul.f32 %v63_v36, %v56_v50  ;;  %v73_v53 = vmul.f32 %v67_v37, %v57_v51 }
  0xaf   :  { %v88_v54 = vadd.f32 %v79_v41, %v72_v52  ;;  %v89_v55 = vadd.f32 %v83_v42, %v73_v53 }
  0xb1   :  { %92 = vst [vmem:[#allocation2 + $0x10] sm:$0xff] %v88_v54  ;;  %93 = vst [vmem:[#allocation2 + $0x18] sm:$0xff] %v89_v55 }
  0xb2   :  { %128 = shalt.err (!%p125_p4)
}
  0xb3   :  { %s129_s22 = scalar_lea.hbm %s191_s3, 512 }
  0xb4   :  { %p130_p5 = scmp.ne.s32.totalorder %s191_s3, %s129_s22  ;;  %p133_p6 = scmp.lt.u32.totalorder %s129_s22, %s191_s3 }
  0xb6   :  { %p135_p7 = pnand %p133_p6, %p130_p5 }
  0xb8   :  { %138 = shalt.err (!%p135_p7)
}
  0xb9   :  { %s142_s27 = smov 256   ;;  %s143_s28 = smov 16  }
  0xba   :  { %105 = dma.vmem_to_hbm [thread:$0]  %s100_s2, 512, %s191_s3, [#allocation3], %s142_s27, %s142_s27, %s143_s28  }
  0xbb   :  { %139 = dma.done.wait [#allocation3], 512  }
  0xbc   :  { %140 = vsyncadd [#allocation3], 4294966784 }
  0xbd   :  { %109 = vsyncpa [#allocation3], 1 }

// kernel: bloom_forward.24
= control target key start
LH: loop header
LB: loop body
LE: loop exit
PB: predicated region body
PF: predicated region fallthrough
CT: control target
= control target key end

     0   :  { %s1884_s1 = inlined_call_operand.vmem [shape: bf16[1024,256], index: 1, kind: input, shape index: {}]   ;;  %s1885_s0 = inlined_call_operand.vmem [shape: bf16[16,1024], index: 0, kind: input, shape index: {}]   ;;  %s1886_s2 = inlined_call_operand.vmem [shape: f32[1,256], index: 2, kind: input, shape index: {}]   ;;  %s1887_s3 = inlined_call_operand.vmem [shape: bf16[16,256], index: 3, kind: input, shape index: {}]   ;;  %s1888_s4 = inlined_call_operand.vmem [shape: bf16[16,256], index: 4, kind: output, shape index: {}]  }
   0x1   :  { %v1228_v0 = vld [vmem:[%s1884_s1 + $0x4] ss:$8 sps:$4 sm:$0xff]   ;;  %v1232_v2 = vld [vmem:[%s1884_s1] ss:$8 sps:$4 sm:$0xff]   ;;  %v1234_v4 = vld [vmem:[%s1884_s1 + $0x14] ss:$8 sps:$4 sm:$0xff]  }
   0x2   :  { %v1230_v1 = vld [vmem:[%s1884_s1 + $0x204] ss:$8 sps:$4 sm:$0xff]   ;;  %845 = vmatprep.subr.bf16.mxu1 %v1228_v0  ;;  %v1233_v3 = vld [vmem:[%s1884_s1 + $0x200] ss:$8 sps:$4 sm:$0xff]   ;;  %v1236_v5 = vld [vmem:[%s1884_s1 + $0x214] ss:$8 sps:$4 sm:$0xff]  }
   0x3   :  { %931 = vmatprep.subr.bf16.mxu0 %v1230_v1  ;;  %846 = vmatpush1.bf16.msra.mxu1 %v1232_v2  ;;  %v1238_v6 = vld [vmem:[%s1884_s1 + $0x10] ss:$8 sps:$4 sm:$0xff]   ;;  %v1240_v8 = vld [vmem:[%s1884_s1 + $0x24] ss:$8 sps:$4 sm:$0xff]   ;;  %v1244_v10 = vld [vmem:[%s1884_s1 + $0x20] ss:$8 sps:$4 sm:$0xff]  }
   0x4   :  { %932 = vmatpush1.bf16.msra.mxu0 %v1233_v3  ;;  %847 = vmatprep.subr.bf16.mxu1 %v1234_v4  ;;  %v1239_v7 = vld [vmem:[%s1884_s1 + $0x210] ss:$8 sps:$4 sm:$0xff]   ;;  %v1242_v9 = vld [vmem:[%s1884_s1 + $0x224] ss:$8 sps:$4 sm:$0xff]   ;;  %v1245_v11 = vld [vmem:[%s1884_s1 + $0x220] ss:$8 sps:$4 sm:$0xff]  }
   0x5   :  { %933 = vmatprep.subr.bf16.mxu0 %v1236_v5  ;;  %v1246_v12 = vld [vmem:[%s1884_s1 + $0x34] ss:$8 sps:$4 sm:$0xff]   ;;  %v1250_v14 = vld [vmem:[%s1884_s1 + $0x30] ss:$8 sps:$4 sm:$0xff]   ;;  %v1252_v16 = vld [vmem:[%s1884_s1 + $0x44] ss:$8 sps:$4 sm:$0xff]  }
   0x6   :  { %v1248_v13 = vld [vmem:[%s1884_s1 + $0x234] ss:$8 sps:$4 sm:$0xff]   ;;  %v1251_v15 = vld [vmem:[%s1884_s1 + $0x230] ss:$8 sps:$4 sm:$0xff]   ;;  %v1254_v17 = vld [vmem:[%s1884_s1 + $0x244] ss:$8 sps:$4 sm:$0xff]  }
   0x7   :  { %848 = vmatpush1.bf16.msra.mxu1 %v1238_v6  ;;  %v1256_v18 = vld [vmem:[%s1884_s1 + $0x40] ss:$8 sps:$4 sm:$0xff]   ;;  %v1258_v20 = vld [vmem:[%s1884_s1 + $0x54] ss:$8 sps:$4 sm:$0xff]   ;;  %v1262_v22 = vld [vmem:[%s1884_s1 + $0x50] ss:$8 sps:$4 sm:$0xff]  }
   0x8   :  { %934 = vmatpush1.bf16.msra.mxu0 %v1239_v7  ;;  %849 = vmatprep.subr.bf16.mxu1 %v1240_v8  ;;  %v1257_v19 = vld [vmem:[%s1884_s1 + $0x240] ss:$8 sps:$4 sm:$0xff]   ;;  %v1260_v21 = vld [vmem:[%s1884_s1 + $0x254] ss:$8 sps:$4 sm:$0xff]   ;;  %v1263_v23 = vld [vmem:[%s1884_s1 + $0x250] ss:$8 sps:$4 sm:$0xff]  }
   0x9   :  { %935 = vmatprep.subr.bf16.mxu0 %v1242_v9  ;;  %v1264_v24 = vld [vmem:[%s1884_s1 + $0x64] ss:$8 sps:$4 sm:$0xff]   ;;  %v1268_v26 = vld [vmem:[%s1884_s1 + $0x60] ss:$8 sps:$4 sm:$0xff]   ;;  %v1270_v28 = vld [vmem:[%s1884_s1 + $0x74] ss:$8 sps:$4 sm:$0xff]  }
   0xa   :  { %v1266_v25 = vld [vmem:[%s1884_s1 + $0x264] ss:$8 sps:$4 sm:$0xff]   ;;  %v1269_v27 = vld [vmem:[%s1884_s1 + $0x260] ss:$8 sps:$4 sm:$0xff]   ;;  %v1272_v29 = vld [vmem:[%s1884_s1 + $0x274] ss:$8 sps:$4 sm:$0xff]  }
   0xb   :  { %850 = vmatpush1.bf16.msra.mxu1 %v1244_v10  ;;  %v1274_v30 = vld [vmem:[%s1884_s1 + $0x70] ss:$8 sps:$4 sm:$0xff]   ;;  %v1276_v32 = vld [vmem:[%s1884_s1 + $0x84] ss:$8 sps:$4 sm:$0xff]   ;;  %v1280_v34 = vld [vmem:[%s1884_s1 + $0x80] ss:$8 sps:$4 sm:$0xff]  }
   0xc   :  { %936 = vmatpush1.bf16.msra.mxu0 %v1245_v11  ;;  %851 = vmatprep.subr.bf16.mxu1 %v1246_v12  ;;  %v1275_v31 = vld [vmem:[%s1884_s1 + $0x270] ss:$8 sps:$4 sm:$0xff]   ;;  %v1278_v33 = vld [vmem:[%s1884_s1 + $0x284] ss:$8 sps:$4 sm:$0xff]   ;;  %v1281_v35 = vld [vmem:[%s1884_s1 + $0x280] ss:$8 sps:$4 sm:$0xff]  }
   0xd   :  { %937 = vmatprep.subr.bf16.mxu0 %v1248_v13  ;;  %v1282_v36 = vld [vmem:[%s1884_s1 + $0x94] ss:$8 sps:$4 sm:$0xff]   ;;  %v1286_v38 = vld [vmem:[%s1884_s1 + $0x90] ss:$8 sps:$4 sm:$0xff]   ;;  %v1288_v40 = vld [vmem:[%s1884_s1 + $0xa4] ss:$8 sps:$4 sm:$0xff]  }
   0xe   :  { %v1284_v37 = vld [vmem:[%s1884_s1 + $0x294] ss:$8 sps:$4 sm:$0xff]   ;;  %v1287_v39 = vld [vmem:[%s1884_s1 + $0x290] ss:$8 sps:$4 sm:$0xff]   ;;  %v1290_v41 = vld [vmem:[%s1884_s1 + $0x2a4] ss:$8 sps:$4 sm:$0xff]  }
   0xf   :  { %852 = vmatpush1.bf16.msra.mxu1 %v1250_v14  ;;  %v1292_v42 = vld [vmem:[%s1884_s1 + $0xa0] ss:$8 sps:$4 sm:$0xff]   ;;  %v1294_v44 = vld [vmem:[%s1884_s1 + $0xb4] ss:$8 sps:$4 sm:$0xff]   ;;  %v1298_v46 = vld [vmem:[%s1884_s1 + $0xb0] ss:$8 sps:$4 sm:$0xff]  }
  0x10   :  { %938 = vmatpush1.bf16.msra.mxu0 %v1251_v15  ;;  %853 = vmatprep.subr.bf16.mxu1 %v1252_v16  ;;  %v1293_v43 = vld [vmem:[%s1884_s1 + $0x2a0] ss:$8 sps:$4 sm:$0xff]   ;;  %v1296_v45 = vld [vmem:[%s1884_s1 + $0x2b4] ss:$8 sps:$4 sm:$0xff]   ;;  %v1299_v47 = vld [vmem:[%s1884_s1 + $0x2b0] ss:$8 sps:$4 sm:$0xff]  }
  0x11   :  { %939 = vmatprep.subr.bf16.mxu0 %v1254_v17  ;;  %v29_v48 = vld [vmem:[%s1885_s0] sm:$0xff]  ;;  %v31_v53 = vld [vmem:[%s1885_s0 + $0x10] sm:$0xff] }
  0x12   :  { %v33_v49 = vld [vmem:[%s1885_s0 + $0x20] sm:$0xff]  ;;  %v35_v54 = vld [vmem:[%s1885_s0 + $0x30] sm:$0xff] }
  0x13   :  { %854 = vmatpush1.bf16.msra.mxu1 %v1256_v18  ;;  %v1300_v50 = vld [vmem:[%s1884_s1 + $0xc4] ss:$8 sps:$4 sm:$0xff]   ;;  %v1077_v52 = vcombine.high %v29_v48, %v33_v49  ;;  %v1081_v55 = vcombine.high %v31_v53, %v35_v54  ;;  %v1304_v56 = vld [vmem:[%s1884_s1 + $0xc0] ss:$8 sps:$4 sm:$0xff]   ;;  %v1306_v58 = vld [vmem:[%s1884_s1 + $0xd4] ss:$8 sps:$4 sm:$0xff]   ;;  %v1076_v8 = vcombine.low %v29_v48, %v33_v49  ;;  %v1080_v10 = vcombine.low %v31_v53, %v35_v54 }
  0x14   :  { %940 = vmatpush1.bf16.msra.mxu0 %v1257_v19  ;;  %855 = vmatprep.subr.bf16.mxu1 %v1258_v20  ;;  %v1302_v51 = vld [vmem:[%s1884_s1 + $0x2c4] ss:$8 sps:$4 sm:$0xff]   ;;  %v1305_v57 = vld [vmem:[%s1884_s1 + $0x2c0] ss:$8 sps:$4 sm:$0xff]   ;;  %v1308_v59 = vld [vmem:[%s1884_s1 + $0x2d4] ss:$8 sps:$4 sm:$0xff]  }
  0x15   :  { %941 = vmatprep.subr.bf16.mxu0 %v1260_v21  ;;  %877 = vmatprep.mubr.bf16.mxu1 %v1077_v52  ;;  %v1310_v60 = vld [vmem:[%s1884_s1 + $0xd0] ss:$8 sps:$4 sm:$0xff]   ;;  %v1312_v62 = vld [vmem:[%s1884_s1 + $0xe4] ss:$8 sps:$4 sm:$0xff]   ;;  %v1316_v0 = vld [vmem:[%s1884_s1 + $0xe0] ss:$8 sps:$4 sm:$0xff]  }
  0x16   :  { %963 = vmatprep.mubr.bf16.mxu0 %v1081_v55  ;;  %v1311_v61 = vld [vmem:[%s1884_s1 + $0x2d0] ss:$8 sps:$4 sm:$0xff]   ;;  %v1314_v63 = vld [vmem:[%s1884_s1 + $0x2e4] ss:$8 sps:$4 sm:$0xff]   ;;  %v1317_v1 = vld [vmem:[%s1884_s1 + $0x2e0] ss:$8 sps:$4 sm:$0xff]  }
  0x17   :  { %856 = vmatpush1.bf16.msra.mxu1 %v1262_v22  ;;  %v1318_v2 = vld [vmem:[%s1884_s1 + $0xf4] ss:$8 sps:$4 sm:$0xff]   ;;  %v1322_v4 = vld [vmem:[%s1884_s1 + $0xf0] ss:$8 sps:$4 sm:$0xff]   ;;  %v1326_v6 = vld [vmem:[%s1884_s1 + $0x104] ss:$8 sps:$4 sm:$0xff]  }
  0x18   :  { %942 = vmatpush1.bf16.msra.mxu0 %v1263_v23  ;;  %857 = vmatprep.subr.bf16.mxu1 %v1264_v24  ;;  %v1320_v3 = vld [vmem:[%s1884_s1 + $0x2f4] ss:$8 sps:$4 sm:$0xff]   ;;  %v1323_v5 = vld [vmem:[%s1884_s1 + $0x2f0] ss:$8 sps:$4 sm:$0xff]   ;;  %v1329_v7 = vld [vmem:[%s1884_s1 + $0x304] ss:$8 sps:$4 sm:$0xff]  }
  0x19   :  { %943 = vmatprep.subr.bf16.mxu0 %v1266_v25  ;;  %v1324_v9 = vld [vmem:[%s1884_s1 + $0x100] ss:$8 sps:$4 sm:$0xff]   ;;  %v1332_v12 = vld [vmem:[%s1884_s1 + $0x114] ss:$8 sps:$4 sm:$0xff]   ;;  %v1330_v14 = vld [vmem:[%s1884_s1 + $0x110] ss:$8 sps:$4 sm:$0xff]  }
  0x1a   :  { %v1327_v11 = vld [vmem:[%s1884_s1 + $0x300] ss:$8 sps:$4 sm:$0xff]   ;;  %v1335_v13 = vld [vmem:[%s1884_s1 + $0x314] ss:$8 sps:$4 sm:$0xff]   ;;  %v1333_v15 = vld [vmem:[%s1884_s1 + $0x310] ss:$8 sps:$4 sm:$0xff]  }
  0x1b   :  { %858 = vmatpush1.bf16.msra.mxu1 %v1268_v26  ;;  %v1338_v16 = vld [vmem:[%s1884_s1 + $0x124] ss:$8 sps:$4 sm:$0xff]   ;;  %v1336_v18 = vld [vmem:[%s1884_s1 + $0x120] ss:$8 sps:$4 sm:$0xff]   ;;  %v1344_v20 = vld [vmem:[%s1884_s1 + $0x134] ss:$8 sps:$4 sm:$0xff]  }
  0x1c   :  { %944 = vmatpush1.bf16.msra.mxu0 %v1269_v27  ;;  %859 = vmatprep.subr.bf16.mxu1 %v1270_v28  ;;  %v1341_v17 = vld [vmem:[%s1884_s1 + $0x324] ss:$8 sps:$4 sm:$0xff]   ;;  %v1339_v19 = vld [vmem:[%s1884_s1 + $0x320] ss:$8 sps:$4 sm:$0xff]   ;;  %v1347_v21 = vld [vmem:[%s1884_s1 + $0x334] ss:$8 sps:$4 sm:$0xff]  }
  0x1d   :  { %945 = vmatprep.subr.bf16.mxu0 %v1272_v29  ;;  %v1342_v22 = vld [vmem:[%s1884_s1 + $0x130] ss:$8 sps:$4 sm:$0xff]   ;;  %v1350_v24 = vld [vmem:[%s1884_s1 + $0x144] ss:$8 sps:$4 sm:$0xff]   ;;  %v1348_v26 = vld [vmem:[%s1884_s1 + $0x140] ss:$8 sps:$4 sm:$0xff]  }
  0x1e   :  { %v1345_v23 = vld [vmem:[%s1884_s1 + $0x330] ss:$8 sps:$4 sm:$0xff]   ;;  %v1353_v25 = vld [vmem:[%s1884_s1 + $0x344] ss:$8 sps:$4 sm:$0xff]   ;;  %v1351_v27 = vld [vmem:[%s1884_s1 + $0x340] ss:$8 sps:$4 sm:$0xff]  }
  0x1f   :  { %860 = vmatpush1.bf16.msra.mxu1 %v1274_v30  ;;  %v1356_v28 = vld [vmem:[%s1884_s1 + $0x154] ss:$8 sps:$4 sm:$0xff]   ;;  %v1354_v30 = vld [vmem:[%s1884_s1 + $0x150] ss:$8 sps:$4 sm:$0xff]   ;;  %v1372_v48 = vld [vmem:[%s1884_s1 + $0x180] ss:$8 sps:$4 sm:$0xff]  }
  0x20   :  { %946 = vmatpush1.bf16.msra.mxu0 %v1275_v31  ;;  %861 = vmatprep.subr.bf16.mxu1 %v1276_v32  ;;  %v1359_v29 = vld [vmem:[%s1884_s1 + $0x354] ss:$8 sps:$4 sm:$0xff]   ;;  %v1357_v31 = vld [vmem:[%s1884_s1 + $0x350] ss:$8 sps:$4 sm:$0xff]   ;;  %v1362_v32 = vld [vmem:[%s1884_s1 + $0x164] ss:$8 sps:$4 sm:$0xff]  }
  0x21   :  { %947 = vmatprep.subr.bf16.mxu0 %v1278_v33  ;;  %v1365_v33 = vld [vmem:[%s1884_s1 + $0x364] ss:$8 sps:$4 sm:$0xff]   ;;  %v1375_v49 = vld [vmem:[%s1884_s1 + $0x380] ss:$8 sps:$4 sm:$0xff]   ;;  %v1378_v52 = vld [vmem:[%s1884_s1 + $0x190] ss:$8 sps:$4 sm:$0xff]  }
  0x22   :  { %v1381_v53 = vld [vmem:[%s1884_s1 + $0x390] ss:$8 sps:$4 sm:$0xff]   ;;  %v1386_v54 = vld [vmem:[%s1884_s1 + $0x1a4] ss:$8 sps:$4 sm:$0xff]  }
  0x23   :  { %862 = vmatpush1.bf16.msra.mxu1 %v1280_v34  ;;  %v1730_v34 = vld [vmem:[%s1885_s0 + $0x8] sm:$0xff] }
  0x24   :  { %948 = vmatpush1.bf16.msra.mxu0 %v1281_v35  ;;  %863 = vmatprep.subr.bf16.mxu1 %v1282_v36  ;;  %v1735_v35 = vld [vmem:[%s1885_s0 + $0x28] sm:$0xff]  ;;  %v1740_v36 = vld [vmem:[%s1885_s0 + $0x18] sm:$0xff] }
  0x25   :  { %949 = vmatprep.subr.bf16.mxu0 %v1284_v37  ;;  %v1745_v37 = vld [vmem:[%s1885_s0 + $0x38] sm:$0xff]  ;;  %v1389_v55 = vld [vmem:[%s1884_s1 + $0x3a4] ss:$8 sps:$4 sm:$0xff]  }
  0x27   :  { %864 = vmatpush1.bf16.msra.mxu1 %v1286_v38  ;;  %v1360_v38 = vld [vmem:[%s1884_s1 + $0x160] ss:$8 sps:$4 sm:$0xff]  }
  0x28   :  { %950 = vmatpush1.bf16.msra.mxu0 %v1287_v39  ;;  %865 = vmatprep.subr.bf16.mxu1 %v1288_v40  ;;  %v1363_v39 = vld [vmem:[%s1884_s1 + $0x360] ss:$8 sps:$4 sm:$0xff]   ;;  %v1079_v40 = vcombine.high %v1730_v34, %v1735_v35 }
  0x29   :  { %951 = vmatprep.subr.bf16.mxu0 %v1290_v41  ;;  %v1368_v41 = vld [vmem:[%s1884_s1 + $0x174] ss:$8 sps:$4 sm:$0xff]  }
  0x2b   :  { %866 = vmatpush1.bf16.msra.mxu1 %v1292_v42  ;;  %v1371_v42 = vld [vmem:[%s1884_s1 + $0x374] ss:$8 sps:$4 sm:$0xff]  }
  0x2c   :  { %952 = vmatpush1.bf16.msra.mxu0 %v1293_v43  ;;  %867 = vmatprep.subr.bf16.mxu1 %v1294_v44  ;;  %v1083_v43 = vcombine.high %v1740_v36, %v1745_v37  ;;  %v1366_v44 = vld [vmem:[%s1884_s1 + $0x170] ss:$8 sps:$4 sm:$0xff]  }
  0x2d   :  { %953 = vmatprep.subr.bf16.mxu0 %v1296_v45  ;;  %v1369_v45 = vld [vmem:[%s1884_s1 + $0x370] ss:$8 sps:$4 sm:$0xff]  }
  0x2f   :  { %868 = vmatpush1.bf16.msra.mxu1 %v1298_v46  ;;  %v1374_v46 = vld [vmem:[%s1884_s1 + $0x184] ss:$8 sps:$4 sm:$0xff]  }
  0x30   :  { %954 = vmatpush1.bf16.msra.mxu0 %v1299_v47  ;;  %869 = vmatprep.subr.bf16.mxu1 %v1300_v50  ;;  %v1377_v47 = vld [vmem:[%s1884_s1 + $0x384] ss:$8 sps:$4 sm:$0xff]   ;;  %v1380_v50 = vld [vmem:[%s1884_s1 + $0x194] ss:$8 sps:$4 sm:$0xff]  }
  0x31   :  { %955 = vmatprep.subr.bf16.mxu0 %v1302_v51  ;;  %v1383_v51 = vld [vmem:[%s1884_s1 + $0x394] ss:$8 sps:$4 sm:$0xff]  }
  0x33   :  { %870 = vmatpush1.bf16.msra.mxu1 %v1304_v56  ;;  %v1384_v56 = vld [vmem:[%s1884_s1 + $0x1a0] ss:$8 sps:$4 sm:$0xff]  }
  0x34   :  { %956 = vmatpush1.bf16.msra.mxu0 %v1305_v57  ;;  %871 = vmatprep.subr.bf16.mxu1 %v1306_v58  ;;  %v1387_v57 = vld [vmem:[%s1884_s1 + $0x3a0] ss:$8 sps:$4 sm:$0xff]   ;;  %v1392_v58 = vld [vmem:[%s1884_s1 + $0x1b4] ss:$8 sps:$4 sm:$0xff]  }
  0x35   :  { %957 = vmatprep.subr.bf16.mxu0 %v1308_v59  ;;  %v1395_v59 = vld [vmem:[%s1884_s1 + $0x3b4] ss:$8 sps:$4 sm:$0xff]  }
  0x37   :  { %872 = vmatpush1.bf16.msra.mxu1 %v1310_v60  ;;  %v1390_v60 = vld [vmem:[%s1884_s1 + $0x1b0] ss:$8 sps:$4 sm:$0xff]  }
  0x38   :  { %958 = vmatpush1.bf16.msra.mxu0 %v1311_v61  ;;  %873 = vmatprep.subr.bf16.mxu1 %v1312_v62  ;;  %v1393_v61 = vld [vmem:[%s1884_s1 + $0x3b0] ss:$8 sps:$4 sm:$0xff]   ;;  %v1398_v62 = vld [vmem:[%s1884_s1 + $0x1c4] ss:$8 sps:$4 sm:$0xff]  }
  0x39   :  { %959 = vmatprep.subr.bf16.mxu0 %v1314_v63  ;;  %v1401_v63 = vld [vmem:[%s1884_s1 + $0x3c4] ss:$8 sps:$4 sm:$0xff]  }
  0x3b   :  { %874 = vmatpush1.bf16.msra.mxu1 %v1316_v0  ;;  %v1396_v0 = vld [vmem:[%s1884_s1 + $0x1c0] ss:$8 sps:$4 sm:$0xff]  }
  0x3c   :  { %960 = vmatpush1.bf16.msra.mxu0 %v1317_v1  ;;  %875 = vmatprep.subr.bf16.mxu1 %v1318_v2  ;;  %v1399_v1 = vld [vmem:[%s1884_s1 + $0x3c0] ss:$8 sps:$4 sm:$0xff]   ;;  %v1404_v2 = vld [vmem:[%s1884_s1 + $0x1d4] ss:$8 sps:$4 sm:$0xff]  }
  0x3d   :  { %961 = vmatprep.subr.bf16.mxu0 %v1320_v3  ;;  %v1407_v3 = vld [vmem:[%s1884_s1 + $0x3d4] ss:$8 sps:$4 sm:$0xff]  }
  0x3f   :  { %876 = vmatpush1.bf16.msra.mxu1 %v1322_v4  ;;  %v1402_v4 = vld [vmem:[%s1884_s1 + $0x1d0] ss:$8 sps:$4 sm:$0xff]  }
  0x40   :  { %962 = vmatpush1.bf16.msra.mxu0 %v1323_v5  ;;  %888 = vmatprep.subr.bf16.mxu1 %v1326_v6  ;;  %v1405_v5 = vld [vmem:[%s1884_s1 + $0x3d0] ss:$8 sps:$4 sm:$0xff]   ;;  %v1410_v6 = vld [vmem:[%s1884_s1 + $0x1e4] ss:$8 sps:$4 sm:$0xff]  }
  0x41   :  { %974 = vmatprep.subr.bf16.mxu0 %v1329_v7  ;;  %v1413_v7 = vld [vmem:[%s1884_s1 + $0x3e4] ss:$8 sps:$4 sm:$0xff]  }
  0x42   :  { %878 = vmatmul.mubr.bf16.vlgmr.msra.gmra.mrb[0].mxu1 %v1076_v8  ;;  %v1408_v8 = vld [vmem:[%s1884_s1 + $0x1e0] ss:$8 sps:$4 sm:$0xff]  }
  0x43   :  { %964 = vmatmul.mubr.bf16.vlgmr.msra.gmra.mrb[0].mxu0 %v1080_v10  ;;  %889 = vmatpush1.bf16.msra.mxu1 %v1324_v9  ;;  %v1411_v9 = vld [vmem:[%s1884_s1 + $0x3e0] ss:$8 sps:$4 sm:$0xff]   ;;  %v1416_v10 = vld [vmem:[%s1884_s1 + $0x1f4] ss:$8 sps:$4 sm:$0xff]  }
  0x44   :  { %975 = vmatpush1.bf16.msra.mxu0 %v1327_v11  ;;  %890 = vmatprep.subr.bf16.mxu1 %v1332_v12  ;;  %v1419_v11 = vld [vmem:[%s1884_s1 + $0x3f4] ss:$8 sps:$4 sm:$0xff]   ;;  %v1414_v12 = vld [vmem:[%s1884_s1 + $0x1f0] ss:$8 sps:$4 sm:$0xff]  }
  0x45   :  { %976 = vmatprep.subr.bf16.mxu0 %v1335_v13  ;;  %920 = vmatprep.mubr.bf16.mxu1 %v1079_v40  ;;  %v1417_v13 = vld [vmem:[%s1884_s1 + $0x3f0] ss:$8 sps:$4 sm:$0xff]  }
  0x46   :  { %1006 = vmatprep.mubr.bf16.mxu0 %v1083_v43 }
  0x47   :  { %891 = vmatpush1.bf16.msra.mxu1 %v1330_v14  ;;  %v1078_v14 = vcombine.low %v1730_v34, %v1735_v35 }
  0x48   :  { %977 = vmatpush1.bf16.msra.mxu0 %v1333_v15  ;;  %892 = vmatprep.subr.bf16.mxu1 %v1338_v16  ;;  %v1082_v15 = vcombine.low %v1740_v36, %v1745_v37  ;;  %v1034_v16 = vlaneseq }
  0x49   :  { %978 = vmatprep.subr.bf16.mxu0 %v1341_v17 }
  0x4a   :  { %v1035_v17 = vshrl.u32 %v1034_v16, 7 }
  0x4b   :  { %893 = vmatpush1.bf16.msra.mxu1 %v1336_v18 }
  0x4c   :  { %979 = vmatpush1.bf16.msra.mxu0 %v1339_v19  ;;  %894 = vmatprep.subr.bf16.mxu1 %v1344_v20  ;;  %v1036_v18 = vsub.s32 0, %v1035_v17  ;;  %v1032_v19 = vld [vmem:[%s1886_s2] sm:$0x3]  ;;  %v1040_v20 = vsub.s32 1, %v1035_v17 }
  0x4d   :  { %980 = vmatprep.subr.bf16.mxu0 %v1347_v21  ;;  %v1048_v21 = vld [vmem:[%s1887_s3] sm:$0xff] }
  0x4f   :  { %895 = vmatpush1.bf16.msra.mxu1 %v1342_v22  ;;  %v1037_v22 = vrot.slane %v1032_v19, %v1036_v18 }
  0x50   :  { %981 = vmatpush1.bf16.msra.mxu0 %v1345_v23  ;;  %896 = vmatprep.subr.bf16.mxu1 %v1350_v24 }
  0x51   :  { %982 = vmatprep.subr.bf16.mxu0 %v1353_v25  ;;  %v1041_v25 = vrot.slane %v1032_v19, %v1040_v20 }
  0x53   :  { %897 = vmatpush1.bf16.msra.mxu1 %v1348_v26  ;;  %v1049_v26 = vld [vmem:[%s1887_s3 + $0x8] sm:$0xff] }
  0x54   :  { %983 = vmatpush1.bf16.msra.mxu0 %v1351_v27  ;;  %898 = vmatprep.subr.bf16.mxu1 %v1356_v28  ;;  %v1050_v28 = vunpack.c.l.bf16 %v1048_v21  ;;  %v1052_v37 = vunpack.c.l.bf16 %v1049_v26 }
  0x55   :  { %984 = vmatprep.subr.bf16.mxu0 %v1359_v29 }
  0x57   :  { %899 = vmatpush1.bf16.msra.mxu1 %v1354_v30 }
  0x58   :  { %985 = vmatpush1.bf16.msra.mxu0 %v1357_v31  ;;  %900 = vmatprep.subr.bf16.mxu1 %v1362_v32  ;;  %v1051_v32 = vunpack.c.h.bf16 %v1048_v21 }
  0x59   :  { %986 = vmatprep.subr.bf16.mxu0 %v1365_v33 }
  0x5b   :  { %901 = vmatpush1.bf16.msra.mxu1 %v1360_v38 }
  0x5c   :  { %987 = vmatpush1.bf16.msra.mxu0 %v1363_v39  ;;  %902 = vmatprep.subr.bf16.mxu1 %v1368_v41 }
  0x5d   :  { %988 = vmatprep.subr.bf16.mxu0 %v1371_v42  ;;  %v1053_v42 = vunpack.c.h.bf16 %v1049_v26 }
  0x5f   :  { %903 = vmatpush1.bf16.msra.mxu1 %v1366_v44 }
  0x60   :  { %989 = vmatpush1.bf16.msra.mxu0 %v1369_v45  ;;  %904 = vmatprep.subr.bf16.mxu1 %v1374_v46 }
  0x61   :  { %990 = vmatprep.subr.bf16.mxu0 %v1377_v47 }
  0x63   :  { %905 = vmatpush1.bf16.msra.mxu1 %v1372_v48 }
  0x64   :  { %991 = vmatpush1.bf16.msra.mxu0 %v1375_v49  ;;  %906 = vmatprep.subr.bf16.mxu1 %v1380_v50 }
  0x65   :  { %992 = vmatprep.subr.bf16.mxu0 %v1383_v51 }
  0x67   :  { %907 = vmatpush1.bf16.msra.mxu1 %v1378_v52 }
  0x68   :  { %993 = vmatpush1.bf16.msra.mxu0 %v1381_v53  ;;  %908 = vmatprep.subr.bf16.mxu1 %v1386_v54 }
  0x69   :  { %994 = vmatprep.subr.bf16.mxu0 %v1389_v55 }
  0x6b   :  { %909 = vmatpush1.bf16.msra.mxu1 %v1384_v56 }
  0x6c   :  { %995 = vmatpush1.bf16.msra.mxu0 %v1387_v57  ;;  %910 = vmatprep.subr.bf16.mxu1 %v1392_v58 }
  0x6d   :  { %996 = vmatprep.subr.bf16.mxu0 %v1395_v59 }
  0x6f   :  { %911 = vmatpush1.bf16.msra.mxu1 %v1390_v60 }
  0x70   :  { %997 = vmatpush1.bf16.msra.mxu0 %v1393_v61  ;;  %912 = vmatprep.subr.bf16.mxu1 %v1398_v62 }
  0x71   :  { %998 = vmatprep.subr.bf16.mxu0 %v1401_v63 }
  0x73   :  { %913 = vmatpush1.bf16.msra.mxu1 %v1396_v0 }
  0x74   :  { %999 = vmatpush1.bf16.msra.mxu0 %v1399_v1  ;;  %914 = vmatprep.subr.bf16.mxu1 %v1404_v2 }
  0x75   :  { %1000 = vmatprep.subr.bf16.mxu0 %v1407_v3 }
  0x77   :  { %915 = vmatpush1.bf16.msra.mxu1 %v1402_v4 }
  0x78   :  { %1001 = vmatpush1.bf16.msra.mxu0 %v1405_v5  ;;  %916 = vmatprep.subr.bf16.mxu1 %v1410_v6 }
  0x79   :  { %1002 = vmatprep.subr.bf16.mxu0 %v1413_v7 }
  0x7b   :  { %917 = vmatpush1.bf16.msra.mxu1 %v1408_v8 }
  0x7c   :  { %1003 = vmatpush1.bf16.msra.mxu0 %v1411_v9  ;;  %918 = vmatprep.subr.bf16.mxu1 %v1416_v10 }
  0x7d   :  { %1004 = vmatprep.subr.bf16.mxu0 %v1419_v11 }
  0x7f   :  { %919 = vmatpush1.bf16.msra.mxu1 %v1414_v12 }
  0x80   :  { %1005 = vmatpush1.bf16.msra.mxu0 %v1417_v13 }
  0x82   :  { %921 = vmatmul.mubr.bf16.vlgmr.msra.gmra.mrb[0].mxu1 %v1078_v14 }
  0x83   :  { %1007 = vmatmul.mubr.bf16.vlgmr.msra.gmra.mrb[0].mxu0 %v1082_v15 }
 0x155   :  { %v922_v23 = vpop.f32.mrb[0].mxu1 }
 0x156   :  { %v1008_v24 = vpop.f32.mrb[0].mxu0  ;;  %v924_v29 = vpop.f32.mrb[1].mxu1 }
 0x157   :  { %v1216_v27 = vadd.f32 %v1008_v24, %v922_v23  ;;  %v1010_v30 = vpop.f32.mrb[1].mxu0  ;;  %v926_v33 = vpop.f32.mrb[2].mxu1 }
 0x158   :  { %v1217_v31 = vadd.f32 %v1010_v30, %v924_v29  ;;  %v1012_v34 = vpop.f32.mrb[2].mxu0  ;;  %v928_v38 = vpop.f32.mrb[3].mxu1 }
 0x159   :  { %v1044_v35 = vadd.f32 %v1216_v27, %v1037_v22  ;;  %v1218_v36 = vadd.f32 %v1012_v34, %v926_v33  ;;  %v1014_v39 = vpop.f32.mrb[3].mxu0 }
 0x15a   :  { %v1045_v40 = vadd.f32 %v1217_v31, %v1041_v25  ;;  %v1219_v41 = vadd.f32 %v1014_v39, %v928_v38 }
 0x15b   :  { %v1054_v43 = vadd.f32 %v1050_v28, %v1044_v35  ;;  %v1046_v44 = vadd.f32 %v1218_v36, %v1037_v22 }
 0x15c   :  { %v1055_v45 = vadd.f32 %v1051_v32, %v1045_v40  ;;  %v1047_v46 = vadd.f32 %v1219_v41, %v1041_v25 }
 0x15d   :  { %v1056_v47 = vadd.f32 %v1052_v37, %v1046_v44 }
 0x15e   :  { %v1214_v48 = vpack.c.bf16 %v1055_v45, %v1054_v43  ;;  %v1057_v49 = vadd.f32 %v1053_v42, %v1047_v46 }
 0x160   :  { %1070 = vst [vmem:[%s1888_s4] sm:$0xff] %v1214_v48  ;;  %v1215_v50 = vpack.c.bf16 %v1057_v49, %v1056_v47 }
 0x162   :  { %1071 = vst [vmem:[%s1888_s4 + $0x8] sm:$0xff] %v1215_v50 }

</bundles_post_ra>
